<compile_context>
chip_gen: v5e
topology: v5e:2x2
jax: 0.10.0
libtpu: 0.0.40
codegen_flags: <defaults>
</compile_context>

<pallas_src>
import functools
import math

import jax
import jax.numpy as jnp
from jax.experimental import pallas as pl
from jax.experimental.pallas import tpu as pltpu


# ---------------------------------------------------------------------------
# Kernel 1: fused q/k/v 1x1-conv projection.
# Transposed layout: x is (C, N), weight (3C, C), output (3C, N) -> lane-dense
# stores (last dim = tile_n) and a single MXU push instead of three.
# ---------------------------------------------------------------------------
def _qkv_proj_kernel(x_ref, w_ref, b_ref, o_ref):
    o_ref[...] = (
        jnp.dot(w_ref[...], x_ref[...], preferred_element_type=jnp.float32)
        + b_ref[...]                                   # (3C, 1) broadcast on lanes
    )


def qkv_proj(x_cn, w_qkv, b_qkv, *, tile_n=512):
    C, N = x_cn.shape
    C3 = w_qkv.shape[0]
    tile_n = min(tile_n, N)
    assert N % tile_n == 0
    if tile_n < N:
        assert tile_n % 128 == 0, "partial lane tiles must be 128-aligned"
    return pl.pallas_call(
        _qkv_proj_kernel,
        grid=(N // tile_n,),
        in_specs=[
            pl.BlockSpec((C, tile_n), lambda i: (0, i)),
            pl.BlockSpec((C3, C), lambda i: (0, 0)),
            pl.BlockSpec((C3, 1), lambda i: (0, 0)),
        ],
        out_specs=pl.BlockSpec((C3, tile_n), lambda i: (0, i)),
        out_shape=jax.ShapeDtypeStruct((C3, N), jnp.float32),
        compiler_params=pltpu.CompilerParams(
            dimension_semantics=("parallel",)),
    )(x_cn, w_qkv, b_qkv)


# ---------------------------------------------------------------------------
# Kernel 2: fused window extraction + row attention.
# One grid step = one image.  Inputs are padded (1, H+2p, W+2p, C) blocks; the
# ws*ws shifted views are built in-VMEM (never written to HBM).
#   scores[h,w,k] = sum_p sum_c qp[h+dh, w+dw, c] * kp[h+dh, k+dw, c]
#   out[h,w,c]    = softmax_k(scores) @ (sum_p vp[h+dh, k+dw, c])
# ---------------------------------------------------------------------------
def _window_attn_kernel(q_ref, k_ref, v_ref, o_ref, *, ws, H, W):
    qp = q_ref[0]                                      # (Hp, Wp, C)
    kp = k_ref[0]
    vp = v_ref[0]
    C = qp.shape[-1]

    scores = jnp.zeros((H, W, W), jnp.float32)
    v_sum = jnp.zeros((H, W, C), jnp.float32)
    for dh in range(ws):                               # P = ws*ws shifted views,
        for dw in range(ws):                           # built in-kernel (no HBM)
            q_s = qp[dh:dh + H, dw:dw + W, :]          # (H, W, C)
            k_s = kp[dh:dh + H, dw:dw + W, :]
            v_s = vp[dh:dh + H, dw:dw + W, :]
            scores = scores + jnp.einsum(
                "hwc,hkc->hwk", q_s, k_s,
                preferred_element_type=jnp.float32)    # batched over rows h
            v_sum = v_sum + v_s

    # Max-stabilized softmax over the key (width) axis; exact divide (the
    # approximate EUP reciprocal previously blew the validation tolerance).
    scores = scores - jnp.max(scores, axis=-1, keepdims=True)
    e = jnp.exp(scores)
    attn = e / jnp.sum(e, axis=-1, keepdims=True)

    o_ref[0] = jnp.einsum("hwk,hkc->hwc", attn, v_sum,
                          preferred_element_type=jnp.float32)


def window_attention(q_pad, k_pad, v_pad, *, ws, H, W):
    B, Hp, Wp, C = q_pad.shape
    kern = functools.partial(_window_attn_kernel, ws=ws, H=H, W=W)
    spec_in = pl.BlockSpec((1, Hp, Wp, C), lambda b: (b, 0, 0, 0))
    return pl.pallas_call(
        kern,
        grid=(B,),
        in_specs=[spec_in, spec_in, spec_in],
        out_specs=pl.BlockSpec((1, H, W, C), lambda b: (b, 0, 0, 0)),
        out_shape=jax.ShapeDtypeStruct((B, H, W, C), jnp.float32),
        compiler_params=pltpu.CompilerParams(
            dimension_semantics=("parallel",)),
    )(q_pad, k_pad, v_pad)


# ---------------------------------------------------------------------------
# Full forward pass (SelfAttention.forward).  Only thin XLA glue remains:
# layout transposes and the ws//2 zero padding (a few KB each).
# ---------------------------------------------------------------------------
def self_attention_forward(x, params, window_size):
    B, C, H, W = x.shape
    ws = window_size
    pad = ws // 2

    # Fused q/k/v projection (single concatenated weight, lane-dense output).
    x_cn = jnp.transpose(x, (1, 0, 2, 3)).reshape(C, B * H * W)
    w_qkv = jnp.concatenate(
        [params["wq"], params["wk"], params["wv"]], axis=0)          # (3C, C)
    b_qkv = jnp.concatenate(
        [params["bq"], params["bk"], params["bv"]]).reshape(3 * C, 1)
    qkv = qkv_proj(x_cn, w_qkv, b_qkv)                               # (3C, N)
    qkv = qkv.reshape(3, C, B, H, W)

    def to_padded_nhwc(a):        # (C, B, H, W) -> (B, H+2p, W+2p, C)
        a = jnp.transpose(a, (1, 2, 3, 0))
        return jnp.pad(a, ((0, 0), (pad, pad), (pad, pad), (0, 0)))

    q_pad = to_padded_nhwc(qkv[0])
    k_pad = to_padded_nhwc(qkv[1])
    v_pad = to_padded_nhwc(qkv[2])

    out_nhwc = window_attention(q_pad, k_pad, v_pad, ws=ws, H=H, W=W)
    return jnp.transpose(out_nhwc, (0, 3, 1, 2))                     # NCHW


# ---------------------------------------------------------------------------
# Pure-JAX reference (mirrors the torch einsums) for validation.
# Runs at Precision.HIGHEST so the reference itself is not a source of error.
# ---------------------------------------------------------------------------
_HI = jax.lax.Precision.HIGHEST


def extract_windows(x, ws):
    # x: (B, C, H, W) -> (B, C, H, W, ws*ws), zero padded; p = dh*ws + dw
    pad = ws // 2
    B, C, H, W = x.shape
    xp = jnp.pad(x, ((0, 0), (0, 0), (pad, pad), (pad, pad)))
    slices = []
    for dh in range(ws):
        for dw in range(ws):
            slices.append(xp[:, :, dh:dh + H, dw:dw + W])
    return jnp.stack(slices, axis=-1)


def self_attention_reference(x, params, window_size):
    B, C, H, W = x.shape
    conv1x1 = lambda a, w, b: (
        jnp.einsum("bchw,oc->bohw", a, w, precision=_HI)
        + b.reshape(1, C, 1, 1))
    q = conv1x1(x, params["wq"], params["bq"])
    k = conv1x1(x, params["wk"], params["bk"])
    v = conv1x1(x, params["wv"], params["bv"])
    qw = extract_windows(q, window_size)
    kw = extract_windows(k, window_size)
    vw = extract_windows(v, window_size)
    attn = jnp.einsum("bchwp,bchkp->bhwk", qw, kw, precision=_HI)
    attn = jax.nn.softmax(attn, axis=-1)
    wv = jnp.einsum("bhwk,bchkp->bchwp", attn, vw, precision=_HI)
    return wv.sum(axis=-1)


if __name__ == "__main__":
    B, C, H, W = 2, 4, 16, 16
    window_size = 3

    key = jax.random.PRNGKey(0)
    k0, k1, k2, k3, k4, k5, k6 = jax.random.split(key, 7)
    bound = 1.0 / math.sqrt(C)   # Conv2d(kernel=1)-style init, deterministic
    params = {
        "wq": jax.random.uniform(k0, (C, C), jnp.float32, -bound, bound),
        "wk": jax.random.uniform(k1, (C, C), jnp.float32, -bound, bound),
        "wv": jax.random.uniform(k2, (C, C), jnp.float32, -bound, bound),
        "bq": jax.random.uniform(k3, (C,), jnp.float32, -bound, bound),
        "bk": jax.random.uniform(k4, (C,), jnp.float32, -bound, bound),
        "bv": jax.random.uniform(k5, (C,), jnp.float32, -bound, bound),
    }
    x = jax.random.normal(k6, (B, C, H, W), jnp.float32)

    fwd = jax.jit(self_attention_forward, static_argnums=2)
    out = jax.block_until_ready(fwd(x, params, window_size))

    ref = self_attention_reference(x, params, window_size)
    assert out.shape == (B, C, H, W), out.shape
    max_err = float(jnp.max(jnp.abs(out - ref)))
    assert jnp.allclose(out, ref, rtol=5e-3, atol=5e-3), max_err
    print("KERNEL_OK")
</pallas_src>

<mosaic_0001>
module attributes {stable_mosaic.version = 11 : i64} {
  func.func @_qkv_proj_kernel(%arg0: i32, %arg1: memref<4x512xf32, #tpu.memory_space<vmem>>, %arg2: memref<12x4xf32, #tpu.memory_space<vmem>>, %arg3: memref<12x1xf32, #tpu.memory_space<vmem>>, %arg4: memref<12x512xf32, #tpu.memory_space<vmem>>) attributes {dimension_semantics = [#tpu.dimension_semantics<parallel>], iteration_bounds = array<i64: 1>, scalar_prefetch = 0 : i64, scratch_operands = 0 : i64, tpu.core_type = #tpu.core_type<tc>, window_params = [{transform_indices = @transform_0, window_bounds = array<i64: 4, 512>}, {pipeline_mode = #tpu.pipeline_mode<synchronous>, transform_indices = @transform_1, window_bounds = array<i64: 12, 4>}, {pipeline_mode = #tpu.pipeline_mode<synchronous>, transform_indices = @transform_2, window_bounds = array<i64: 12, 1>}, {transform_indices = @transform_3, window_bounds = array<i64: 12, 512>}]} {
    %c0 = arith.constant 0 : index
    %c0_0 = arith.constant 0 : index
    %0 = vector.load %arg2[%c0, %c0_0] : memref<12x4xf32, #tpu.memory_space<vmem>>, vector<12x4xf32>
    %c0_1 = arith.constant 0 : index
    %c0_2 = arith.constant 0 : index
    %1 = vector.load %arg1[%c0_1, %c0_2] : memref<4x512xf32, #tpu.memory_space<vmem>>, vector<4x512xf32>
    %cst = arith.constant dense<0.000000e+00> : vector<12x512xf32>
    %2 = tpu.matmul %0, %1, %cst {dimension_numbers = #tpu.dot_dimension_numbers<[1], [0], [0], [1], [0, 0, 1, 1], [], []>} : vector<12x4xf32>, vector<4x512xf32>, vector<12x512xf32> -> vector<12x512xf32>
    %c0_3 = arith.constant 0 : index
    %c0_4 = arith.constant 0 : index
    %3 = vector.load %arg3[%c0_3, %c0_4] : memref<12x1xf32, #tpu.memory_space<vmem>>, vector<12x1xf32>
    %4 = vector.broadcast %3 : vector<12x1xf32> to vector<12x512xf32>
    %5 = arith.addf %2, %4 : vector<12x512xf32>
    %c0_5 = arith.constant 0 : index
    %c0_6 = arith.constant 0 : index
    %6 = vector.load %arg4[%c0_5, %c0_6] : memref<12x512xf32, #tpu.memory_space<vmem>>, vector<12x512xf32>
    tpu.vector_store %arg4[%c0_5, %c0_6], %5 {strides = array<i32>} : memref<12x512xf32, #tpu.memory_space<vmem>>, vector<12x512xf32>,
    return
  }
  func.func @transform_0(%arg0: i32) -> (i32, i32) {
    %c0_i32 = arith.constant 0 : i32
    %c0_i32_0 = arith.constant 0 : i32
    return %c0_i32, %arg0 : i32, i32
  }
  func.func @transform_1(%arg0: i32) -> (i32, i32) {
    %c0_i32 = arith.constant 0 : i32
    %c0_i32_0 = arith.constant 0 : i32
    %c0_i32_1 = arith.constant 0 : i32
    return %c0_i32, %c0_i32_0 : i32, i32
  }
  func.func @transform_2(%arg0: i32) -> (i32, i32) {
    %c0_i32 = arith.constant 0 : i32
    %c0_i32_0 = arith.constant 0 : i32
    %c0_i32_1 = arith.constant 0 : i32
    return %c0_i32, %c0_i32_0 : i32, i32
  }
  func.func @transform_3(%arg0: i32) -> (i32, i32) {
    %c0_i32 = arith.constant 0 : i32
    %c0_i32_0 = arith.constant 0 : i32
    return %c0_i32, %arg0 : i32, i32
  }
}

module attributes {stable_mosaic.version = 11 : i64} {
  func.func @_window_attn_kernel(%arg0: i32, %arg1: memref<1x18x18x4xf32, #tpu.memory_space<vmem>>, %arg2: memref<1x18x18x4xf32, #tpu.memory_space<vmem>>, %arg3: memref<1x18x18x4xf32, #tpu.memory_space<vmem>>, %arg4: memref<1x16x16x4xf32, #tpu.memory_space<vmem>>) attributes {dimension_semantics = [#tpu.dimension_semantics<parallel>], iteration_bounds = array<i64: 2>, scalar_prefetch = 0 : i64, scratch_operands = 0 : i64, tpu.core_type = #tpu.core_type<tc>, window_params = [{transform_indices = @transform_0, window_bounds = array<i64: 1, 18, 18, 4>}, {transform_indices = @transform_1, window_bounds = array<i64: 1, 18, 18, 4>}, {transform_indices = @transform_2, window_bounds = array<i64: 1, 18, 18, 4>}, {transform_indices = @transform_3, window_bounds = array<i64: 1, 16, 16, 4>}]} {
    %c0 = arith.constant 0 : index
    %c0_0 = arith.constant 0 : index
    %c0_1 = arith.constant 0 : index
    %c0_2 = arith.constant 0 : index
    %0 = vector.load %arg1[%c0, %c0_0, %c0_1, %c0_2] : memref<1x18x18x4xf32, #tpu.memory_space<vmem>>, vector<1x18x18x4xf32>
    %1 = vector.shape_cast %0 : vector<1x18x18x4xf32> to vector<18x18x4xf32>
    %c0_3 = arith.constant 0 : index
    %c0_4 = arith.constant 0 : index
    %c0_5 = arith.constant 0 : index
    %c0_6 = arith.constant 0 : index
    %2 = vector.load %arg2[%c0_3, %c0_4, %c0_5, %c0_6] : memref<1x18x18x4xf32, #tpu.memory_space<vmem>>, vector<1x18x18x4xf32>
    %3 = vector.shape_cast %2 : vector<1x18x18x4xf32> to vector<18x18x4xf32>
    %c0_7 = arith.constant 0 : index
    %c0_8 = arith.constant 0 : index
    %c0_9 = arith.constant 0 : index
    %c0_10 = arith.constant 0 : index
    %4 = vector.load %arg3[%c0_7, %c0_8, %c0_9, %c0_10] : memref<1x18x18x4xf32, #tpu.memory_space<vmem>>, vector<1x18x18x4xf32>
    %5 = vector.shape_cast %4 : vector<1x18x18x4xf32> to vector<18x18x4xf32>
    %cst = arith.constant 0.000000e+00 : f32
    %6 = vector.broadcast %cst : f32 to vector<16x16x16xf32>
    %cst_11 = arith.constant 0.000000e+00 : f32
    %7 = vector.broadcast %cst_11 : f32 to vector<16x16x4xf32>
    %8 = vector.extract_strided_slice %1 {offsets = [0, 0, 0], sizes = [16, 16, 4], strides = [1, 1, 1]} : vector<18x18x4xf32> to vector<16x16x4xf32>
    %9 = vector.extract_strided_slice %3 {offsets = [0, 0, 0], sizes = [16, 16, 4], strides = [1, 1, 1]} : vector<18x18x4xf32> to vector<16x16x4xf32>
    %10 = vector.extract_strided_slice %5 {offsets = [0, 0, 0], sizes = [16, 16, 4], strides = [1, 1, 1]} : vector<18x18x4xf32> to vector<16x16x4xf32>
    "tpu.trace_start"() <{level = 10 : i32, message = "hwc,hkc->hwk"}> : () -> ()
    %cst_12 = arith.constant dense<0.000000e+00> : vector<16x16x16xf32>
    %11 = tpu.matmul %8, %9, %cst_12 {dimension_numbers = #tpu.dot_dimension_numbers<[2], [2], [1], [1], [0, 0, 0, 1, 1, 1], [0], [0]>} : vector<16x16x4xf32>, vector<16x16x4xf32>, vector<16x16x16xf32> -> vector<16x16x16xf32>
    "tpu.trace_stop"() : () -> ()
    %12 = arith.addf %6, %11 : vector<16x16x16xf32>
    %13 = arith.addf %7, %10 : vector<16x16x4xf32>
    %14 = vector.extract_strided_slice %1 {offsets = [0, 1, 0], sizes = [16, 16, 4], strides = [1, 1, 1]} : vector<18x18x4xf32> to vector<16x16x4xf32>
    %15 = vector.extract_strided_slice %3 {offsets = [0, 1, 0], sizes = [16, 16, 4], strides = [1, 1, 1]} : vector<18x18x4xf32> to vector<16x16x4xf32>
    %16 = vector.extract_strided_slice %5 {offsets = [0, 1, 0], sizes = [16, 16, 4], strides = [1, 1, 1]} : vector<18x18x4xf32> to vector<16x16x4xf32>
    "tpu.trace_start"() <{level = 10 : i32, message = "hwc,hkc->hwk"}> : () -> ()
    %cst_13 = arith.constant dense<0.000000e+00> : vector<16x16x16xf32>
    %17 = tpu.matmul %14, %15, %cst_13 {dimension_numbers = #tpu.dot_dimension_numbers<[2], [2], [1], [1], [0, 0, 0, 1, 1, 1], [0], [0]>} : vector<16x16x4xf32>, vector<16x16x4xf32>, vector<16x16x16xf32> -> vector<16x16x16xf32>
    "tpu.trace_stop"() : () -> ()
    %18 = arith.addf %12, %17 : vector<16x16x16xf32>
    %19 = arith.addf %13, %16 : vector<16x16x4xf32>
    %20 = vector.extract_strided_slice %1 {offsets = [0, 2, 0], sizes = [16, 16, 4], strides = [1, 1, 1]} : vector<18x18x4xf32> to vector<16x16x4xf32>
    %21 = vector.extract_strided_slice %3 {offsets = [0, 2, 0], sizes = [16, 16, 4], strides = [1, 1, 1]} : vector<18x18x4xf32> to vector<16x16x4xf32>
    %22 = vector.extract_strided_slice %5 {offsets = [0, 2, 0], sizes = [16, 16, 4], strides = [1, 1, 1]} : vector<18x18x4xf32> to vector<16x16x4xf32>
    "tpu.trace_start"() <{level = 10 : i32, message = "hwc,hkc->hwk"}> : () -> ()
    %cst_14 = arith.constant dense<0.000000e+00> : vector<16x16x16xf32>
    %23 = tpu.matmul %20, %21, %cst_14 {dimension_numbers = #tpu.dot_dimension_numbers<[2], [2], [1], [1], [0, 0, 0, 1, 1, 1], [0], [0]>} : vector<16x16x4xf32>, vector<16x16x4xf32>, vector<16x16x16xf32> -> vector<16x16x16xf32>
    "tpu.trace_stop"() : () -> ()
    %24 = arith.addf %18, %23 : vector<16x16x16xf32>
    %25 = arith.addf %19, %22 : vector<16x16x4xf32>
    %26 = vector.extract_strided_slice %1 {offsets = [1, 0, 0], sizes = [16, 16, 4], strides = [1, 1, 1]} : vector<18x18x4xf32> to vector<16x16x4xf32>
    %27 = vector.extract_strided_slice %3 {offsets = [1, 0, 0], sizes = [16, 16, 4], strides = [1, 1, 1]} : vector<18x18x4xf32> to vector<16x16x4xf32>
    %28 = vector.extract_strided_slice %5 {offsets = [1, 0, 0], sizes = [16, 16, 4], strides = [1, 1, 1]} : vector<18x18x4xf32> to vector<16x16x4xf32>
    "tpu.trace_start"() <{level = 10 : i32, message = "hwc,hkc->hwk"}> : () -> ()
    %cst_15 = arith.constant dense<0.000000e+00> : vector<16x16x16xf32>
    %29 = tpu.matmul %26, %27, %cst_15 {dimension_numbers = #tpu.dot_dimension_numbers<[2], [2], [1], [1], [0, 0, 0, 1, 1, 1], [0], [0]>} : vector<16x16x4xf32>, vector<16x16x4xf32>, vector<16x16x16xf32> -> vector<16x16x16xf32>
    "tpu.trace_stop"() : () -> ()
    %30 = arith.addf %24, %29 : vector<16x16x16xf32>
    %31 = arith.addf %25, %28 : vector<16x16x4xf32>
    %32 = vector.extract_strided_slice %1 {offsets = [1, 1, 0], sizes = [16, 16, 4], strides = [1, 1, 1]} : vector<18x18x4xf32> to vector<16x16x4xf32>
    %33 = vector.extract_strided_slice %3 {offsets = [1, 1, 0], sizes = [16, 16, 4], strides = [1, 1, 1]} : vector<18x18x4xf32> to vector<16x16x4xf32>
    %34 = vector.extract_strided_slice %5 {offsets = [1, 1, 0], sizes = [16, 16, 4], strides = [1, 1, 1]} : vector<18x18x4xf32> to vector<16x16x4xf32>
    "tpu.trace_start"() <{level = 10 : i32, message = "hwc,hkc->hwk"}> : () -> ()
    %cst_16 = arith.constant dense<0.000000e+00> : vector<16x16x16xf32>
    %35 = tpu.matmul %32, %33, %cst_16 {dimension_numbers = #tpu.dot_dimension_numbers<[2], [2], [1], [1], [0, 0, 0, 1, 1, 1], [0], [0]>} : vector<16x16x4xf32>, vector<16x16x4xf32>, vector<16x16x16xf32> -> vector<16x16x16xf32>
    "tpu.trace_stop"() : () -> ()
    %36 = arith.addf %30, %35 : vector<16x16x16xf32>
    %37 = arith.addf %31, %34 : vector<16x16x4xf32>
    %38 = vector.extract_strided_slice %1 {offsets = [1, 2, 0], sizes = [16, 16, 4], strides = [1, 1, 1]} : vector<18x18x4xf32> to vector<16x16x4xf32>
    %39 = vector.extract_strided_slice %3 {offsets = [1, 2, 0], sizes = [16, 16, 4], strides = [1, 1, 1]} : vector<18x18x4xf32> to vector<16x16x4xf32>
    %40 = vector.extract_strided_slice %5 {offsets = [1, 2, 0], sizes = [16, 16, 4], strides = [1, 1, 1]} : vector<18x18x4xf32> to vector<16x16x4xf32>
    "tpu.trace_start"() <{level = 10 : i32, message = "hwc,hkc->hwk"}> : () -> ()
    %cst_17 = arith.constant dense<0.000000e+00> : vector<16x16x16xf32>
    %41 = tpu.matmul %38, %39, %cst_17 {dimension_numbers = #tpu.dot_dimension_numbers<[2], [2], [1], [1], [0, 0, 0, 1, 1, 1], [0], [0]>} : vector<16x16x4xf32>, vector<16x16x4xf32>, vector<16x16x16xf32> -> vector<16x16x16xf32>
    "tpu.trace_stop"() : () -> ()
    %42 = arith.addf %36, %41 : vector<16x16x16xf32>
    %43 = arith.addf %37, %40 : vector<16x16x4xf32>
    %44 = vector.extract_strided_slice %1 {offsets = [2, 0, 0], sizes = [16, 16, 4], strides = [1, 1, 1]} : vector<18x18x4xf32> to vector<16x16x4xf32>
    %45 = vector.extract_strided_slice %3 {offsets = [2, 0, 0], sizes = [16, 16, 4], strides = [1, 1, 1]} : vector<18x18x4xf32> to vector<16x16x4xf32>
    %46 = vector.extract_strided_slice %5 {offsets = [2, 0, 0], sizes = [16, 16, 4], strides = [1, 1, 1]} : vector<18x18x4xf32> to vector<16x16x4xf32>
    "tpu.trace_start"() <{level = 10 : i32, message = "hwc,hkc->hwk"}> : () -> ()
    %cst_18 = arith.constant dense<0.000000e+00> : vector<16x16x16xf32>
    %47 = tpu.matmul %44, %45, %cst_18 {dimension_numbers = #tpu.dot_dimension_numbers<[2], [2], [1], [1], [0, 0, 0, 1, 1, 1], [0], [0]>} : vector<16x16x4xf32>, vector<16x16x4xf32>, vector<16x16x16xf32> -> vector<16x16x16xf32>
    "tpu.trace_stop"() : () -> ()
    %48 = arith.addf %42, %47 : vector<16x16x16xf32>
    %49 = arith.addf %43, %46 : vector<16x16x4xf32>
    %50 = vector.extract_strided_slice %1 {offsets = [2, 1, 0], sizes = [16, 16, 4], strides = [1, 1, 1]} : vector<18x18x4xf32> to vector<16x16x4xf32>
    %51 = vector.extract_strided_slice %3 {offsets = [2, 1, 0], sizes = [16, 16, 4], strides = [1, 1, 1]} : vector<18x18x4xf32> to vector<16x16x4xf32>
    %52 = vector.extract_strided_slice %5 {offsets = [2, 1, 0], sizes = [16, 16, 4], strides = [1, 1, 1]} : vector<18x18x4xf32> to vector<16x16x4xf32>
    "tpu.trace_start"() <{level = 10 : i32, message = "hwc,hkc->hwk"}> : () -> ()
    %cst_19 = arith.constant dense<0.000000e+00> : vector<16x16x16xf32>
    %53 = tpu.matmul %50, %51, %cst_19 {dimension_numbers = #tpu.dot_dimension_numbers<[2], [2], [1], [1], [0, 0, 0, 1, 1, 1], [0], [0]>} : vector<16x16x4xf32>, vector<16x16x4xf32>, vector<16x16x16xf32> -> vector<16x16x16xf32>
    "tpu.trace_stop"() : () -> ()
    %54 = arith.addf %48, %53 : vector<16x16x16xf32>
    %55 = arith.addf %49, %52 : vector<16x16x4xf32>
    %56 = vector.extract_strided_slice %1 {offsets = [2, 2, 0], sizes = [16, 16, 4], strides = [1, 1, 1]} : vector<18x18x4xf32> to vector<16x16x4xf32>
    %57 = vector.extract_strided_slice %3 {offsets = [2, 2, 0], sizes = [16, 16, 4], strides = [1, 1, 1]} : vector<18x18x4xf32> to vector<16x16x4xf32>
    %58 = vector.extract_strided_slice %5 {offsets = [2, 2, 0], sizes = [16, 16, 4], strides = [1, 1, 1]} : vector<18x18x4xf32> to vector<16x16x4xf32>
    "tpu.trace_start"() <{level = 10 : i32, message = "hwc,hkc->hwk"}> : () -> ()
    %cst_20 = arith.constant dense<0.000000e+00> : vector<16x16x16xf32>
    %59 = tpu.matmul %56, %57, %cst_20 {dimension_numbers = #tpu.dot_dimension_numbers<[2], [2], [1], [1], [0, 0, 0, 1, 1, 1], [0], [0]>} : vector<16x16x4xf32>, vector<16x16x4xf32>, vector<16x16x16xf32> -> vector<16x16x16xf32>
    "tpu.trace_stop"() : () -> ()
    %60 = arith.addf %54, %59 : vector<16x16x16xf32>
    %61 = arith.addf %55, %58 : vector<16x16x4xf32>
    %cst_21 = arith.constant dense<0xFF800000> : vector<16x16xf32>
    %62 = vector.multi_reduction <maximumf>, %60, %cst_21 [2] : vector<16x16x16xf32> to vector<16x16xf32>
    %63 = vector.shape_cast %62 : vector<16x16xf32> to vector<16x16x1xf32>
    %64 = vector.broadcast %63 : vector<16x16x1xf32> to vector<16x16x16xf32>
    %65 = arith.subf %60, %64 : vector<16x16x16xf32>
    %66 = math.exp %65 : vector<16x16x16xf32>
    %cst_22 = arith.constant dense<0.000000e+00> : vector<16x16xf32>
    %67 = vector.multi_reduction <add>, %66, %cst_22 [2] : vector<16x16x16xf32> to vector<16x16xf32>
    %68 = vector.shape_cast %67 : vector<16x16xf32> to vector<16x16x1xf32>
    %69 = vector.broadcast %68 : vector<16x16x1xf32> to vector<16x16x16xf32>
    %70 = arith.divf %66, %69 : vector<16x16x16xf32>
    "tpu.trace_start"() <{level = 10 : i32, message = "hwk,hkc->hwc"}> : () -> ()
    %cst_23 = arith.constant dense<0.000000e+00> : vector<16x16x4xf32>
    %71 = tpu.matmul %70, %61, %cst_23 {dimension_numbers = #tpu.dot_dimension_numbers<[2], [1], [1], [2], [0, 0, 0, 1, 1, 2], [0], [0]>} : vector<16x16x16xf32>, vector<16x16x4xf32>, vector<16x16x4xf32> -> vector<16x16x4xf32>
    "tpu.trace_stop"() : () -> ()
    %c0_24 = arith.constant 0 : index
    %c0_25 = arith.constant 0 : index
    %c0_26 = arith.constant 0 : index
    %c0_27 = arith.constant 0 : index
    %72 = vector.load %arg4[%c0_24, %c0_25, %c0_26, %c0_27] : memref<1x16x16x4xf32, #tpu.memory_space<vmem>>, vector<1x16x16x4xf32>
    %73 = vector.shape_cast %72 : vector<1x16x16x4xf32> to vector<16x16x4xf32>
    %74 = vector.shape_cast %71 : vector<16x16x4xf32> to vector<1x16x16x4xf32>
    tpu.vector_store %arg4[%c0_24, %c0_25, %c0_26, %c0_27], %74 {strides = array<i32>} : memref<1x16x16x4xf32, #tpu.memory_space<vmem>>, vector<1x16x16x4xf32>,
    return
  }
  func.func @transform_0(%arg0: i32) -> (i32, i32, i32, i32) {
    %c0_i32 = arith.constant 0 : i32
    %c0_i32_0 = arith.constant 0 : i32
    %c0_i32_1 = arith.constant 0 : i32
    %c0_i32_2 = arith.constant 0 : i32
    return %arg0, %c0_i32, %c0_i32_0, %c0_i32_1 : i32, i32, i32, i32
  }
  func.func @transform_1(%arg0: i32) -> (i32, i32, i32, i32) {
    %c0_i32 = arith.constant 0 : i32
    %c0_i32_0 = arith.constant 0 : i32
    %c0_i32_1 = arith.constant 0 : i32
    %c0_i32_2 = arith.constant 0 : i32
    return %arg0, %c0_i32, %c0_i32_0, %c0_i32_1 : i32, i32, i32, i32
  }
  func.func @transform_2(%arg0: i32) -> (i32, i32, i32, i32) {
    %c0_i32 = arith.constant 0 : i32
    %c0_i32_0 = arith.constant 0 : i32
    %c0_i32_1 = arith.constant 0 : i32
    %c0_i32_2 = arith.constant 0 : i32
    return %arg0, %c0_i32, %c0_i32_0, %c0_i32_1 : i32, i32, i32, i32
  }
  func.func @transform_3(%arg0: i32) -> (i32, i32, i32, i32) {
    %c0_i32 = arith.constant 0 : i32
    %c0_i32_0 = arith.constant 0 : i32
    %c0_i32_1 = arith.constant 0 : i32
    %c0_i32_2 = arith.constant 0 : i32
    return %arg0, %c0_i32, %c0_i32_0, %c0_i32_1 : i32, i32, i32, i32
  }
}

</mosaic_0001>

<bundles_post_ra>
// kernel: self_attention_forward.2
= control target key start
LH: loop header
LB: loop body
LE: loop exit
PB: predicated region body
PF: predicated region fallthrough
CT: control target
= control target key end

     0   :  { %v173_v2 = vmov 0   ;;  %vm46_vm0 = vcmask 1043456   ;;  %vm39_vm1 = vcmask 31744   ;;  %s244_s0 = inlined_call_operand.vmem [shape: f32[4,512], index: 0, kind: input, shape index: {}]   ;;  %s245_s2 = inlined_call_operand.vmem [shape: f32[12,1], index: 2, kind: input, shape index: {}]   ;;  %s246_s1 = inlined_call_operand.vmem [shape: f32[12,4], index: 1, kind: input, shape index: {}]   ;;  %s247_s3 = inlined_call_operand.vmem [shape: f32[12,512], index: 3, kind: output, shape index: {}]  }
   0x1   :  { %v16_v0 = vld [vmem:[%s244_s0] sm:$0xff]  ;;  %v17_v1 = vld [vmem:[%s244_s0 + $0x8] sm:$0xff]  ;;  %172 = vset.pattern.permute.xlu0 %v173_v2 }
   0x2   :  { %32 = vst [vmem:[#allocation1] ss:$2 sm:$0xff] %v16_v0  ;;  %v18_v3 = vld [vmem:[%s245_s2] sm:$0xff]  ;;  %v19_v9 = vld [vmem:[%s245_s2 + $0x8] sm:$0xf] }
   0x3   :  { %34 = vst [vmem:[#allocation1 + $0x10] ss:$2 sm:$0xff] %v17_v1  ;;  %22 = vperm.xlu0 %172, %v18_v3   ;;  %v14_v4 = vld [vmem:[%s246_s1] sm:$0xff]  ;;  %v15_v10 = vld [vmem:[%s246_s1 + $0x8] sm:$0xf] }
   0x9   :  { %v35_v5 = vld.sshfl [vmem:[#allocation1] sm:$0xff pattern:$0x75316420]  ;;  %v36_v6 = vld.sshfl [vmem:[#allocation1 + $0x8] sm:$0xff pattern:$0x75316420] }
   0xa   :  { %159 = vmatpush.msk.msra.mxu0 %vm46_vm0, %v35_v5  ;;  %162 = vmatpush.msk.msra.mxu1 %vm46_vm0, %v36_v6  ;;  %v37_v7 = vld.sshfl [vmem:[#allocation1 + $0x10] sm:$0xff pattern:$0x75316420]  ;;  %v38_v8 = vld.sshfl [vmem:[#allocation1 + $0x18] sm:$0xff pattern:$0x75316420] }
   0xb   :  { %165 = vmatpush.msk.msra.mxu2 %vm46_vm0, %v37_v7  ;;  %168 = vmatpush.msk.msra.mxu3 %vm46_vm0, %v38_v8 }
   0xc   :  { %160 = vmatmul.msk.f32.vlgmr.msra.gmra.mxu0 %vm39_vm1, %v14_v4  ;;  %163 = vmatmul.msk.f32.vlgmr.msra.gmra.mxu1 %vm39_vm1, %v14_v4 }
   0xd   :  { %166 = vmatmul.msk.f32.vlgmr.msra.gmra.mxu2 %vm39_vm1, %v14_v4  ;;  %169 = vmatmul.msk.f32.vlgmr.msra.gmra.mxu3 %vm39_vm1, %v14_v4 }
   0xe   :  { %27 = vperm.xlu0 %172, %v19_v9  }
  0x14   :  { %161 = vmatmul.msk.f32.gmra.mxu0 %vm39_vm1, %v15_v10  ;;  %164 = vmatmul.msk.f32.gmra.mxu1 %vm39_vm1, %v15_v10 }
  0x15   :  { %167 = vmatmul.msk.f32.gmra.mxu2 %vm39_vm1, %v15_v10  ;;  %170 = vmatmul.msk.f32.gmra.mxu3 %vm39_vm1, %v15_v10 }
  0x75   :  { %v23_v11 = vpop.permute.xlu0 %22 }
  0x80   :  { %v28_v16 = vpop.permute.xlu0 %27 }
  0x89   :  { %v72_v12 = vpop.f32.mrf.mxu0  ;;  %v95_v13 = vpop.f32.mrf.mxu1 }
  0x8a   :  { %v73_v14 = vadd.f32 %v72_v12, %v23_v11  ;;  %v96_v15 = vadd.f32 %v95_v13, %v23_v11 }
  0x8c   :  { %147 = vst [vmem:[%s247_s3] sm:$0xff] %v73_v14 }
  0x8d   :  { %148 = vst [vmem:[%s247_s3 + $0x8] sm:$0xff] %v96_v15 }
  0x90   :  { %v118_v17 = vpop.f32.mrf.mxu2  ;;  %v141_v18 = vpop.f32.mrf.mxu3 }
  0x91   :  { %v119_v19 = vadd.f32 %v118_v17, %v23_v11  ;;  %v142_v20 = vadd.f32 %v141_v18, %v23_v11  ;;  %v75_v21 = vpop.f32.mrf.mxu0  ;;  %v98_v22 = vpop.f32.mrf.mxu1 }
  0x92   :  { %v76_v23 = vadd.f32 %v75_v21, %v28_v16  ;;  %v99_v24 = vadd.f32 %v98_v22, %v28_v16 }
  0x93   :  { %149 = vst [vmem:[%s247_s3 + $0x10] sm:$0xff] %v119_v19 }
  0x94   :  { %150 = vst [vmem:[%s247_s3 + $0x18] sm:$0xff] %v142_v20 }
  0x95   :  { %151 = vst [vmem:[%s247_s3 + $0x20] sm:$0xf] %v76_v23 }
  0x96   :  { %152 = vst [vmem:[%s247_s3 + $0x28] sm:$0xf] %v99_v24 }
  0x98   :  { %v121_v25 = vpop.f32.mrf.mxu2  ;;  %v144_v26 = vpop.f32.mrf.mxu3 }
  0x99   :  { %v122_v27 = vadd.f32 %v121_v25, %v28_v16  ;;  %v145_v28 = vadd.f32 %v144_v26, %v28_v16 }
  0x9b   :  { %153 = vst [vmem:[%s247_s3 + $0x30] sm:$0xf] %v122_v27 }
  0x9c   :  { %154 = vst [vmem:[%s247_s3 + $0x38] sm:$0xf] %v145_v28 }

// kernel: self_attention_forward.3
= control target key start
LH: loop header
LB: loop body
LE: loop exit
PB: predicated region body
PF: predicated region fallthrough
CT: control target
= control target key end

     0   :  { %s5552_s12 = smov 0   ;;  %s9053_s0 = inlined_call_operand.vmem [shape: f32[2,18,18,4], index: 0, kind: input, shape index: {}]   ;;  %s9054_s1 = inlined_call_operand.vmem [shape: f32[2,18,18,4], index: 1, kind: input, shape index: {}]   ;;  %s9055_s2 = inlined_call_operand.vmem [shape: f32[2,18,18,4], index: 2, kind: input, shape index: {}]   ;;  %s9056_s3 = inlined_call_operand.vmem [shape: f32[2,16,16,4], index: 3, kind: output, shape index: {}]  }
   0x1 LB: > { %s5025_s13 = sadd.s32 4294967295, %s5530_s12   ;;  %p5029_p0 = scmp.ge.s32.totalorder %s5530_s12, 1  ;;  %s5530_s12 = sphi %s5552_s12, %s13_s12  }
   0x2   : > { %p157_p1 = scmp.lt.s32.totalorder %s5530_s12, 3 }
   0x4   : > { %p158_p2 = pnand %p5029_p0, %p157_p1 }
   0x6   : > { %161 = sbr.rel (%p158_p2) target bundleno = 948 (0x3b4), region = 32 }
   0xb   : > { %p191_p3 = scmp.lt.s32.totalorder %s5025_s13, 1  ;;  %vm408_vm0 = vcmask 1046528   ;;  %vm9171_vm1 = vcmask 31744   ;;  %vm9173_vm2 = vcmask 1045504   ;;  %vm9172_vm3 = vcmask 130048  }
   0xd   : > { %s9557_s13 = smov (!%p191_p3, %s5025_s13), 1 }
   0xe   : > { %s5563_s14 = smul.u32 432, %s9557_s13  ;;  %s5345_s24 = sshll.u32 %s9557_s13, 8 }
   0xf   : > { %s8831_s27 = scalar_lea.vmem %s9056_s3, %s5345_s24 }
  0x10   : > { %s5569_s17 = scalar_lea.vmem %s9054_s1, %s5563_s14  ;;  %s5589_s20 = scalar_lea.vmem %s9053_s0, %s5563_s14 }
  0x11   : > { %v5572_v0 = vld [vmem:[%s5569_s17 + $0x8] sm:$0xff]  ;;  %v5575_v1 = vld [vmem:[%s5569_s17 + $0x10] sm:$0x3]  ;;  %v5578_v2 = vld [vmem:[%s5569_s17 + $0x38] sm:$0xff]  ;;  %s7361_s23 = scalar_lea.vmem %s9055_s2, %s5563_s14 }
  0x12   : > { %v418_v3 = vrot.slane %v5572_v0, 1  ;;  %v420_v4 = vrot.slane %v5575_v1, 1  ;;  %v5583_v5 = vld [vmem:[%s5569_s17 + $0x40] sm:$0x3]  ;;  %v513_v6 = vrot.slane %v5578_v2, 1  ;;  %v5594_v8 = vld [vmem:[%s5569_s17 + $0x50] sm:$0xff] }
  0x13   : > { %9174 = vst [vmem:[#allocation2_spill] sm:$0xff] %v5583_v5  ;;  %v515_v7 = vrot.slane %v5583_v5, 1  ;;  %v5597_v9 = vld [vmem:[%s5569_s17 + $0x58] sm:$0x3]  ;;  %v560_v11 = vrot.slane %v5594_v8, 1  ;;  %v5603_v13 = vld [vmem:[%s5569_s17] sm:$0xff] }
  0x14   : > { %9175 = vst [vmem:[#allocation3_spill] sm:$0xff] %v5597_v9  ;;  %v421_v10 = vsel %vm408_vm0, %v418_v3, %v420_v4  ;;  %v562_v12 = vrot.slane %v5597_v9, 1  ;;  %v5606_v14 = vld [vmem:[%s5569_s17 + $0x30] sm:$0xff]  ;;  %v5609_v15 = vld [vmem:[%s5569_s17 + $0x48] sm:$0xff]  ;;  %v417_v17 = vrot.slane %v5603_v13, 1  ;;  %v5618_v20 = vld [vmem:[%s5589_s20] sm:$0xff] }
  0x15   : > { %5035 = vmatpush.xpose.msk.msra.mxu0 %vm9171_vm1, %v421_v10  ;;  %5346 = vmatpush.xpose.msk.msra.mxu1 %vm9171_vm1, %v421_v10  ;;  %v516_v16 = vsel %vm408_vm0, %v513_v6, %v515_v7  ;;  %v512_v18 = vrot.slane %v5606_v14, 1  ;;  %v559_v19 = vrot.slane %v5609_v15, 1  ;;  %v5621_v21 = vld [vmem:[%s5589_s20 + $0x8] sm:$0xff]  ;;  %v5624_v22 = vld [vmem:[%s5589_s20 + $0x30] sm:$0xff]  ;;  %v409_v24 = vrot.slane %v5618_v20, 1  ;;  %v5634_v27 = vld [vmem:[%s5589_s20 + $0x38] sm:$0xff] }
  0x16   : > { %5043 = vmatpush.xpose.msk.msra.mxu2 %vm9171_vm1, %v516_v16  ;;  %v563_v23 = vsel %vm408_vm0, %v560_v11, %v562_v12  ;;  %v410_v25 = vrot.slane %v5621_v21, 1  ;;  %v5631_v26 = vld [vmem:[%s5589_s20 + $0x10] sm:$0x3]  ;;  %v504_v28 = vrot.slane %v5624_v22, 1  ;;  %v419_v29 = vsel %vm408_vm0, %v417_v17, %v418_v3  ;;  %v5642_v32 = vld [vmem:[%s5589_s20 + $0x48] sm:$0xff]  ;;  %v5648_v34 = vld [vmem:[%s5569_s17 + $0x98] sm:$0xff] }
  0x17   : > { %9176 = vst [vmem:[#allocation4_spill] sm:$0xff] %v5631_v26  ;;  %5047 = vmatpush.xpose.msk.msra.mxu3 %vm9171_vm1, %v563_v23  ;;  %v514_v30 = vsel %vm408_vm0, %v512_v18, %v513_v6  ;;  %v412_v31 = vrot.slane %v5631_v26, 1  ;;  %v5645_v33 = vld [vmem:[%s5589_s20 + $0x50] sm:$0xff]  ;;  %v561_v35 = vsel %vm408_vm0, %v559_v19, %v560_v11  ;;  %v505_v36 = vrot.slane %v5634_v27, 1  ;;  %v5655_v39 = vld [vmem:[%s5569_s17 + $0xa0] sm:$0x3] }
  0x18   : > { %v551_v37 = vrot.slane %v5642_v32, 1  ;;  %v552_v38 = vrot.slane %v5645_v33, 1  ;;  %9177 = vst [vmem:[#allocation5_spill] sm:$0xff] %v5655_v39  ;;  %v5658_v40 = vld [vmem:[%s5569_s17 + $0x20] sm:$0xff]  ;;  %v411_v41 = vsel %vm408_vm0, %v409_v24, %v410_v25  ;;  %v701_v43 = vrot.slane %v5648_v34, 1  ;;  %v5670_v46 = vld [vmem:[%s5569_s17 + $0x68] sm:$0xff] }
  0x19   : > { %5036 = vmatpush.xpose.msk.msra.mxu0 %vm9171_vm1, %v419_v29  ;;  %5347 = vmatpush.xpose.msk.msra.mxu1 %vm9171_vm1, %v419_v29  ;;  %v413_v42 = vsel %vm408_vm0, %v410_v25, %v412_v31  ;;  %v703_v44 = vrot.slane %v5655_v39, 1  ;;  %v5667_v45 = vld [vmem:[%s5569_s17 + $0x28] sm:$0x3]  ;;  %v506_v47 = vsel %vm408_vm0, %v504_v28, %v505_v36  ;;  %v466_v48 = vrot.slane %v5658_v40, 1  ;;  %v5679_v50 = vld [vmem:[%s5569_s17 + $0x70] sm:$0x3] }
  0x1a   : > { %9178 = vst [vmem:[#allocation6_spill] sm:$0xff] %v5667_v45  ;;  %5044 = vmatpush.xpose.msk.msra.mxu2 %vm9171_vm1, %v514_v30  ;;  %v468_v49 = vrot.slane %v5667_v45, 1  ;;  %v5682_v51 = vld [vmem:[%s5569_s17 + $0x18] sm:$0xff]  ;;  %v5685_v52 = vld [vmem:[%s5569_s17 + $0x60] sm:$0xff]  ;;  %v553_v53 = vsel %vm408_vm0, %v551_v37, %v552_v38  ;;  %v607_v55 = vrot.slane %v5670_v46, 1  ;;  %v609_v56 = vrot.slane %v5679_v50, 1 }
  0x1b   : > { %9179 = vst [vmem:[#allocation7_spill] sm:$0xff] %v5679_v50  ;;  %5048 = vmatpush.xpose.msk.msra.mxu3 %vm9171_vm1, %v561_v35  ;;  %v704_v54 = vsel %vm408_vm0, %v701_v43, %v703_v44  ;;  %v5697_v57 = vld [vmem:[%s5569_s17 + $0xb0] sm:$0xff]  ;;  %v5700_v58 = vld [vmem:[%s5569_s17 + $0xb8] sm:$0x3]  ;;  %v465_v60 = vrot.slane %v5682_v51, 1  ;;  %v606_v61 = vrot.slane %v5685_v52, 1 }
  0x1c   : > { %9180 = vst [vmem:[#allocation8_spill] sm:$0xff] %v5700_v58  ;;  %5037 = vmatmul.msk.f32.vlgmr.msra.gmra.mxu0 %vm9171_vm1, %v411_v41  ;;  %5038 = vmatmul.msk.f32.vlgmr.msra.gmra.mxu1 %vm9171_vm1, %v413_v42  ;;  %v469_v59 = vsel %vm408_vm0, %v466_v48, %v468_v49  ;;  %v5708_v62 = vld [vmem:[%s5589_s20 + $0x18] sm:$0xff]  ;;  %v5711_v63 = vld [vmem:[%s5589_s20 + $0x20] sm:$0xff]  ;;  %v610_v4 = vsel %vm408_vm0, %v607_v55, %v609_v56  ;;  %v748_v6 = vrot.slane %v5697_v57, 1  ;;  %v750_v7 = vrot.slane %v5700_v58, 1  ;;  %v5725_v11 = vld [vmem:[%s5589_s20 + $0x68] sm:$0xff] }
  0x1d   : > { %9181 = vst [vmem:[#allocation9_spill] sm:$0xff] %v5711_v63  ;;  %v5714_v3 = vld [vmem:[%s5589_s20 + $0x60] sm:$0xff]  ;;  %5045 = vmatmul.msk.f32.vlgmr.msra.gmra.mxu2 %vm9171_vm1, %v506_v47  ;;  %5039 = vmatpush.xpose.msk.msrb.mxu1 %vm9171_vm1, %v469_v59  ;;  %v467_v12 = vsel %vm408_vm0, %v465_v60, %v466_v48  ;;  %v457_v16 = vrot.slane %v5708_v62, 1  ;;  %v9058_v17 = vrot.slane %v5711_v63, 1  ;;  %v5733_v18 = vld [vmem:[%s5589_s20 + $0x58] sm:$0x3]  ;;  %v608_v35 = vsel %vm408_vm0, %v606_v61, %v607_v55 }
  0x1e   : > { %v5722_v10 = vld [vmem:[%s5589_s20 + $0x40] sm:$0x3]  ;;  %9183 = vst [vmem:[#allocation11_spill] sm:$0xff] %v5725_v11  ;;  %5049 = vmatmul.msk.f32.vlgmr.msra.gmra.mxu3 %vm9171_vm1, %v553_v53  ;;  %5059 = vmatpush.xpose.msk.msrb.mxu2 %vm9171_vm1, %v704_v54  ;;  %v5736_v19 = vld [vmem:[%s5569_s17 + $0x90] sm:$0xff]  ;;  %v751_v24 = vsel %vm408_vm0, %v748_v6, %v750_v7  ;;  %v554_v28 = vrot.slane %v5733_v18, 1  ;;  %v598_v29 = vrot.slane %v5714_v3, 1 }
  0x1f   : > { %9182 = vst [vmem:[#allocation10_spill] sm:$0xff] %v5722_v10  ;;  %v5739_v23 = vld [vmem:[%s5569_s17 + $0x80] sm:$0xff]  ;;  %5051 = vmatpush.xpose.msk.msrb.mxu0 %vm9171_vm1, %v610_v4  ;;  %v507_v25 = vrot.slane %v5722_v10, 1  ;;  %v5747_v30 = vld [vmem:[%s5569_s17 + $0x88] sm:$0x3]  ;;  %5063 = vmatpush.xpose.msk.msrb.mxu3 %vm9171_vm1, %v751_v24  ;;  %v9057_v37 = vrot.slane %v5725_v11, 1  ;;  %v459_v48 = vsel %vm408_vm0, %v457_v16, %v9058_v17 }
  0x20   : > { %9184 = vst [vmem:[#allocation12_spill] sm:$0xff] %v5733_v18  ;;  %v5750_v31 = vld [vmem:[%s5569_s17 + $0xa8] sm:$0xff]  ;;  %v700_v41 = vrot.slane %v5736_v19, 1  ;;  %v654_v42 = vrot.slane %v5739_v23, 1  ;;  %v5761_v47 = vld [vmem:[%s5589_s20 + $0x90] sm:$0xff]  ;;  %v656_v49 = vrot.slane %v5747_v30, 1  ;;  %v555_v60 = vsel %vm408_vm0, %v552_v38, %v554_v28 }
  0x21   : > { %9185 = vst [vmem:[#allocation13_spill] sm:$0xff] %v5747_v30  ;;  %v5758_v44 = vld [vmem:[%s5589_s20 + $0x28] sm:$0x3]  ;;  %5040 = vmatpush.xpose.msk.msrb.mxu1 %vm9171_vm1, %v467_v12  ;;  %v747_v53 = vrot.slane %v5750_v31, 1  ;;  %v5770_v54 = vld [vmem:[%s5589_s20 + $0x70] sm:$0x3]  ;;  %v508_v59 = vsel %vm408_vm0, %v505_v36, %v507_v25  ;;  %v600_v36 = vsel %vm408_vm0, %v598_v29, %v9057_v37 }
  0x22   : > { %9186 = vst [vmem:[#allocation14_spill] sm:$0xff] %v5758_v44  ;;  %v5773_v55 = vld [vmem:[%s5589_s20 + $0x98] sm:$0xff]  ;;  %v5776_v56 = vld [vmem:[%s5589_s20 + $0xa8] sm:$0xff]  ;;  %v702_v61 = vsel %vm408_vm0, %v700_v41, %v701_v43  ;;  %v5788_v4 = vld [vmem:[%s5589_s20 + $0xb0] sm:$0xff]  ;;  %v657_v38 = vsel %vm408_vm0, %v654_v42, %v656_v49  ;;  %v460_v16 = vrot.slane %v5758_v44, 1  ;;  %v601_v29 = vrot.slane %v5770_v54, 1 }
  0x23   : > { %9187 = vst [vmem:[#allocation15_spill] sm:$0xff] %v5761_v47  ;;  %v5791_v7 = vld [vmem:[%s5569_s17 + $0xf8] sm:$0xff]  ;;  %v5794_v12 = vld [vmem:[%s5569_s17 + $0x100] sm:$0x3]  ;;  %5052 = vmatpush.xpose.msk.msrb.mxu0 %vm9171_vm1, %v608_v35  ;;  %5060 = vmatpush.xpose.msk.msrb.mxu2 %vm9171_vm1, %v702_v61  ;;  %v749_v43 = vsel %vm408_vm0, %v747_v53, %v748_v6  ;;  %v5805_v24 = vld [vmem:[%s5569_s17 + $0xc8] sm:$0xff]  ;;  %v692_v35 = vrot.slane %v5761_v47, 1 }
  0x24   : > { %9188 = vst [vmem:[#allocation16_spill] sm:$0xff] %v5770_v54  ;;  %v5808_v25 = vld [vmem:[%s5569_s17 + $0xd0] sm:$0x3]  ;;  %v5811_v28 = vld [vmem:[%s5569_s17 + $0x78] sm:$0xff]  ;;  %5041 = vmatmul.msk.f32.vlgmr.msrb.gmra.mxu1 %vm9171_vm1, %v459_v48  ;;  %5064 = vmatpush.xpose.msk.msrb.mxu3 %vm9171_vm1, %v749_v43  ;;  %v5818_v41 = vld [vmem:[%s5569_s17 + $0xc0] sm:$0xff]  ;;  %v889_v48 = vrot.slane %v5791_v7, 1 }
  0x25   : > { %9189 = vst [vmem:[#allocation17_spill] sm:$0xff] %v5773_v55  ;;  %v5821_v49 = vld [vmem:[%s5569_s17 + $0x110] sm:$0xff]  ;;  %v5824_v6 = vld [vmem:[%s5569_s17 + $0x118] sm:$0x3]  ;;  %5046 = vmatmul.msk.f32.gmra.mxu2 %vm9171_vm1, %v508_v59  ;;  %5055 = vmatpush.xpose.msk.msra.mxu1 %vm9171_vm1, %v657_v38  ;;  %v891_v61 = vrot.slane %v5794_v12, 1  ;;  %v795_v43 = vrot.slane %v5805_v24, 1 }
  0x26   : > { %9190 = vst [vmem:[#allocation18_spill] sm:$0xff] %v5776_v56  ;;  %5050 = vmatmul.msk.f32.gmra.mxu3 %vm9171_vm1, %v555_v60  ;;  %5053 = vmatmul.msk.f32.vlgmr.msrb.gmra.mxu0 %vm9171_vm1, %v600_v36  ;;  %v739_v59 = vrot.slane %v5776_v56, 1  ;;  %v797_v37 = vrot.slane %v5808_v25, 1  ;;  %v653_v38 = vrot.slane %v5811_v28, 1  ;;  %v794_v53 = vrot.slane %v5818_v41, 1  ;;  %v5843_v18 = vld [vmem:[%s5569_s17 + $0xf0] sm:$0xff] }
  0x27   : > { %9191 = vst [vmem:[#allocation19_spill] sm:$0xff] %v5794_v12  ;;  %v892_v54 = vsel %vm408_vm0, %v889_v48, %v891_v61  ;;  %v936_v44 = vrot.slane %v5821_v49, 1  ;;  %v938_v60 = vrot.slane %v5824_v6, 1  ;;  %v5849_v12 = vld [vmem:[%s5569_s17 + $0xe0] sm:$0xff]  ;;  %v5852_v17 = vld [vmem:[%s5569_s17 + $0xe8] sm:$0x3] }
  0x28   : > { %9192 = vst [vmem:[#allocation20_spill] sm:$0xff] %v5808_v25  ;;  %5075 = vmatpush.xpose.msk.msra.mxu2 %vm9171_vm1, %v892_v54  ;;  %v798_v36 = vsel %vm408_vm0, %v795_v43, %v797_v37  ;;  %v655_v10 = vsel %vm408_vm0, %v653_v38, %v654_v42  ;;  %v5855_v61 = vld [vmem:[%s5569_s17 + $0x108] sm:$0xff]  ;;  %v9195_v26 = vrot.slane %v5711_v63, 1  ;;  %v9196_v42 = vrot.slane %v5773_v55, 1  ;;  %v5869_v25 = vld [vmem:[%s5589_s20 + $0x78] sm:$0xff]  ;;  %v5920_v9 = vld [vmem:[%s5569_s17 + $0x120] sm:$0xff] }
  0x29   : > { %9193 = vst [vmem:[#allocation21_spill] sm:$0xff] %v5824_v6  ;;  %5067 = vmatpush.xpose.msk.msra.mxu0 %vm9171_vm1, %v798_v36  ;;  %5056 = vmatpush.xpose.msk.msra.mxu1 %vm9171_vm1, %v655_v10  ;;  %v939_v37 = vsel %vm408_vm0, %v936_v44, %v938_v60  ;;  %v796_v38 = vsel %vm408_vm0, %v794_v53, %v795_v43  ;;  %v888_v10 = vrot.slane %v5843_v18, 1  ;;  %v842_v60 = vrot.slane %v5849_v12, 1  ;;  %v5892_v30 = vld [vmem:[%s5589_s20 + $0xc8] sm:$0xff]  ;;  %v5917_v45 = vld [vmem:[%s5569_s17 + $0xd8] sm:$0xff]  ;;  %v5928_v5 = vld [vmem:[%s5569_s17 + $0x170] sm:$0xff] }
  0x2a   : > { %9194 = vst [vmem:[#allocation22_spill] sm:$0xff] %v5852_v17  ;;  %v461_v6 = vsel %vm408_vm0, %v9195_v26, %v460_v16  ;;  %v694_v54 = vsel %vm408_vm0, %v692_v35, %v9196_v42  ;;  %5079 = vmatpush.xpose.msk.msra.mxu3 %vm9171_vm1, %v939_v37  ;;  %v5872_v26 = vld [vmem:[%s5589_s20 + $0x80] sm:$0xff]  ;;  %v9199_v36 = vrot.slane %v5725_v11, 1  ;;  %v9200_v53 = vrot.slane %v5788_v4, 1  ;;  %v5886_v37 = vld [vmem:[%s5589_s20 + $0xb8] sm:$0x3] }
  0x2b   : > { %9197 = vst [vmem:[#allocation23_spill] sm:$0xff] %v5869_v25  ;;  %v5875_v16 = vld [vmem:[%s5589_s20 + $0xa0] sm:$0x3]  ;;  %v844_v58 = vrot.slane %v5852_v17, 1  ;;  %v935_v39 = vrot.slane %v5855_v61, 1  ;;  %v645_v17 = vrot.slane %v5869_v25, 1 }
  0x2c   : > { %9198 = vst [vmem:[#allocation24_spill] sm:$0xff] %v5875_v16  ;;  %v602_v35 = vsel %vm408_vm0, %v9199_v36, %v601_v29  ;;  %v741_v43 = vsel %vm408_vm0, %v739_v59, %v9200_v53  ;;  %v5889_v42 = vld [vmem:[%s5589_s20 + $0xc0] sm:$0xff]  ;;  %5042 = vmatmul.msk.f32.gmra.mxu1 %vm9171_vm1, %v461_v6  ;;  %v890_v29 = vsel %vm408_vm0, %v888_v10, %v889_v48  ;;  %v5899_v36 = vld [vmem:[%s5569_s17 + $0x158] sm:$0xff]  ;;  %v5905_v53 = vld [vmem:[%s5569_s17 + $0x128] sm:$0xff] }
  0x2d   : > { %9201 = vst [vmem:[#allocation25_spill] sm:$0xff] %v5886_v37  ;;  %v5902_v59 = vld [vmem:[%s5569_s17 + $0x160] sm:$0x3]  ;;  %5061 = vmatmul.msk.f32.vlgmr.msrb.gmra.mxu2 %vm9171_vm1, %v694_v54  ;;  %5068 = vmatpush.xpose.msk.msra.mxu0 %vm9171_vm1, %v796_v38  ;;  %v845_v6 = vsel %vm408_vm0, %v842_v60, %v844_v58  ;;  %v937_v48 = vsel %vm408_vm0, %v935_v39, %v936_v44  ;;  %v5914_v10 = vld [vmem:[%s5569_s17 + $0x130] sm:$0x3]  ;;  %v695_v54 = vrot.slane %v5875_v16, 1 }
  0x2e   : > { %9202 = vst [vmem:[#allocation26_spill] sm:$0xff] %v5889_v42  ;;  %5054 = vmatmul.msk.f32.gmra.mxu0 %vm9171_vm1, %v602_v35  ;;  %5065 = vmatmul.msk.f32.vlgmr.msrb.gmra.mxu3 %vm9171_vm1, %v741_v43  ;;  %v742_v38 = vrot.slane %v5886_v37, 1  ;;  %v786_v50 = vrot.slane %v5889_v42, 1  ;;  %v5931_v39 = vld [vmem:[%s5569_s17 + $0x178] sm:$0x3]  ;;  %v1077_v44 = vrot.slane %v5899_v36, 1 }
  0x2f   : > { %9203 = vst [vmem:[#allocation27_spill] sm:$0xff] %v5899_v36  ;;  %5076 = vmatpush.xpose.msk.msra.mxu2 %vm9171_vm1, %v890_v29  ;;  %5071 = vmatpush.xpose.msk.msrb.mxu1 %vm9171_vm1, %v845_v6  ;;  %v1079_v35 = vrot.slane %v5902_v59, 1  ;;  %v983_v43 = vrot.slane %v5905_v53, 1  ;;  %v985_v37 = vrot.slane %v5914_v10, 1  ;;  %v841_v16 = vrot.slane %v5917_v45, 1  ;;  %v5950_v25 = vld [vmem:[%s5569_s17 + $0x150] sm:$0xff] }
  0x30   : > { %9204 = vst [vmem:[#allocation28_spill] sm:$0xff] %v5902_v59  ;;  %5080 = vmatpush.xpose.msk.msra.mxu3 %vm9171_vm1, %v937_v48  ;;  %v982_v58 = vrot.slane %v5920_v9, 1  ;;  %v9208_v29 = vrot.slane %v5872_v26, 1  ;;  %v1124_v42 = vrot.slane %v5928_v5, 1  ;;  %v1126_v48 = vrot.slane %v5931_v39, 1  ;;  %v5980_v63 = vld [vmem:[%s5589_s20 + $0xf0] sm:$0xff] }
  0x31   : > { %9205 = vst [vmem:[#allocation29_spill] sm:$0xff] %v5914_v10  ;;  %v1080_v59 = vsel %vm408_vm0, %v1077_v44, %v1079_v35  ;;  %v5953_v10 = vld [vmem:[%s5569_s17 + $0x140] sm:$0xff]  ;;  %v9210_v36 = vrot.slane %v5773_v55, 1  ;;  %v5959_v11 = vld [vmem:[%s5589_s20 + $0x88] sm:$0x3]  ;;  %v843_v35 = vsel %vm408_vm0, %v841_v16, %v842_v60 }
  0x32   : > { %9206 = vst [vmem:[#allocation30_spill] sm:$0xff] %v5928_v5  ;;  %v647_v6 = vsel %vm408_vm0, %v645_v17, %v9208_v29  ;;  %v986_v17 = vsel %vm408_vm0, %v983_v43, %v985_v37  ;;  %v5965_v29 = vld [vmem:[%s5569_s17 + $0x148] sm:$0x3]  ;;  %v9214_v5 = vrot.slane %v5788_v4, 1  ;;  %v5977_v47 = vld [vmem:[%s5589_s20 + $0xd0] sm:$0x3]  ;;  %v1127_v16 = vsel %vm408_vm0, %v1124_v42, %v1126_v48 }
  0x33   : > { %9207 = vst [vmem:[#allocation31_spill] sm:$0xff] %v5931_v39  ;;  %v696_v56 = vsel %vm408_vm0, %v9210_v36, %v695_v54  ;;  %5091 = vmatpush.xpose.msk.msrb.mxu2 %vm9171_vm1, %v1080_v59  ;;  %v5968_v39 = vld [vmem:[%s5569_s17 + $0x168] sm:$0xff]  ;;  %v9215_v36 = vrot.slane %v5892_v30, 1  ;;  %v5983_v59 = vld [vmem:[%s5589_s20 + $0xf8] sm:$0xff]  ;;  %5083 = vmatpush.xpose.msk.msrb.mxu0 %vm9171_vm1, %v986_v17  ;;  %v1076_v37 = vrot.slane %v5950_v25, 1  ;;  %v648_v17 = vrot.slane %v5959_v11, 1 }
  0x34   : > { %9209 = vst [vmem:[#allocation32_spill] sm:$0xff] %v5950_v25  ;;  %v743_v55 = vsel %vm408_vm0, %v9214_v5, %v742_v38  ;;  %5072 = vmatpush.xpose.msk.msrb.mxu1 %vm9171_vm1, %v843_v35  ;;  %v5990_v60 = vld [vmem:[%s5589_s20 + $0x108] sm:$0xff]  ;;  %v5993_v5 = vld [vmem:[%s5589_s20 + $0x110] sm:$0xff]  ;;  %5095 = vmatpush.xpose.msk.msrb.mxu3 %vm9171_vm1, %v1127_v16  ;;  %v1030_v38 = vrot.slane %v5953_v10, 1  ;;  %v1032_v48 = vrot.slane %v5965_v29, 1  ;;  %v881_v35 = vrot.slane %v5983_v59, 1 }
  0x35   : > { %9211 = vst [vmem:[#allocation33_spill] sm:$0xff] %v5959_v11  ;;  %v788_v54 = vsel %vm408_vm0, %v786_v50, %v9215_v36  ;;  %5057 = vmatmul.msk.f32.vlgmr.msra.gmra.mxu1 %vm9171_vm1, %v647_v6  ;;  %v984_v50 = vsel %vm408_vm0, %v982_v58, %v983_v43  ;;  %5062 = vmatmul.msk.f32.gmra.mxu2 %vm9171_vm1, %v696_v56  ;;  %v1123_v6 = vrot.slane %v5968_v39, 1  ;;  %v789_v58 = vrot.slane %v5977_v47, 1  ;;  %v6010_v36 = vld [vmem:[%s5569_s17 + $0x138] sm:$0xff] }
  0x36   : > { %9212 = vst [vmem:[#allocation34_spill] sm:$0xff] %v5965_v29  ;;  %5066 = vmatmul.msk.f32.gmra.mxu3 %vm9171_vm1, %v743_v55  ;;  %5069 = vmatmul.msk.f32.vlgmr.msra.gmra.mxu0 %vm9171_vm1, %v788_v54  ;;  %v880_v43 = vrot.slane %v5980_v63, 1  ;;  %v1078_v56 = vsel %vm408_vm0, %v1076_v37, %v1077_v44  ;;  %v927_v16 = vrot.slane %v5990_v60, 1  ;;  %v928_v11 = vrot.slane %v5993_v5, 1  ;;  %v6046_v29 = vld [vmem:[%s5589_s20 + $0x120] sm:$0xff] }
  0x37   : > { %9213 = vst [vmem:[#allocation35_spill] sm:$0xff] %v5968_v39  ;;  %5084 = vmatpush.xpose.msk.msrb.mxu0 %vm9171_vm1, %v984_v50  ;;  %5092 = vmatpush.xpose.msk.msrb.mxu2 %vm9171_vm1, %v1078_v56  ;;  %v1033_v55 = vsel %vm408_vm0, %v1030_v38, %v1032_v48  ;;  %v1125_v54 = vsel %vm408_vm0, %v1123_v6, %v1124_v42  ;;  %v9219_v44 = vrot.slane %v5872_v26, 1  ;;  %v1029_v50 = vrot.slane %v6010_v36, 1  ;;  %v6028_v48 = vld [vmem:[%s5589_s20 + $0xd8] sm:$0xff] }
  0x38   : > { %9216 = vst [vmem:[#allocation36_spill] sm:$0xff] %v5977_v47  ;;  %5087 = vmatpush.xpose.msk.msra.mxu1 %vm9171_vm1, %v1033_v55  ;;  %5096 = vmatpush.xpose.msk.msrb.mxu3 %vm9171_vm1, %v1125_v54  ;;  %v882_v56 = vsel %vm408_vm0, %v880_v43, %v881_v35  ;;  %v6031_v47 = vld [vmem:[%s5589_s20 + $0xe0] sm:$0xff]  ;;  %v9220_v42 = vrot.slane %v5892_v30, 1  ;;  %v929_v55 = vsel %vm408_vm0, %v927_v16, %v928_v11  ;;  %v6049_v43 = vld [vmem:[%s5589_s20 + $0x128] sm:$0xff] }
  0x39   : > { %9217 = vst [vmem:[#allocation37_spill] sm:$0xff] %v5980_v63  ;;  %v649_v37 = vsel %vm408_vm0, %v9219_v44, %v648_v17  ;;  %v6038_v54 = vld [vmem:[%s5589_s20 + $0x100] sm:$0x3]  ;;  %v1031_v17 = vsel %vm408_vm0, %v1029_v50, %v1030_v38  ;;  %v6043_v44 = vld [vmem:[%s5589_s20 + $0x118] sm:$0x3]  ;;  %v975_v50 = vrot.slane %v6049_v43, 1 }
  0x3a   : > { %9218 = vst [vmem:[#allocation38_spill] sm:$0xff] %v5993_v5  ;;  %v790_v6 = vsel %vm408_vm0, %v9220_v42, %v789_v58  ;;  %v833_v5 = vrot.slane %v6028_v48, 1  ;;  %v834_v58 = vrot.slane %v6031_v47, 1  ;;  %v883_v38 = vrot.slane %v6038_v54, 1 }
  0x3b   : > { %5099 = vmatpush.xpose.msk.msra.mxu0 %vm9171_vm1, %v5572_v0  ;;  %9221 = vst [vmem:[#allocation39_spill] sm:$0xff] %v6038_v54  ;;  %v930_v16 = vrot.slane %v6043_v44, 1  ;;  %v6078_v54 = vld [vmem:[%s5589_s20 + $0x158] sm:$0xff] }
  0x3c   : > { %9222 = vst [vmem:[#allocation40_spill] sm:$0xff] %v6043_v44  ;;  %5088 = vmatpush.xpose.msk.msra.mxu1 %vm9171_vm1, %v1031_v17  ;;  %v884_v42 = vsel %vm408_vm0, %v881_v35, %v883_v38  ;;  %v6075_v44 = vld [vmem:[%s5589_s20 + $0x150] sm:$0xff] }
  0x3d   : > { %5058 = vmatmul.msk.f32.gmra.mxu1 %vm9171_vm1, %v649_v37  ;;  %9223 = vst [vmem:[#allocation41_spill] sm:$0xff] %v6049_v43  ;;  %5077 = vmatmul.msk.f32.vlgmr.msra.gmra.mxu2 %vm9171_vm1, %v882_v56  ;;  %v974_v37 = vrot.slane %v6046_v29, 1  ;;  %v835_v56 = vsel %vm408_vm0, %v833_v5, %v834_v58  ;;  %v6084_v43 = vld [vmem:[%s5589_s20 + $0x130] sm:$0x3]  ;;  %v6087_v5 = vld [vmem:[%s5589_s20 + $0x168] sm:$0xff]  ;;  %v1068_v38 = vrot.slane %v6075_v44, 1 }
  0x3e   : > { %5070 = vmatmul.msk.f32.gmra.mxu0 %vm9171_vm1, %v790_v6  ;;  %5081 = vmatmul.msk.f32.vlgmr.msra.gmra.mxu3 %vm9171_vm1, %v929_v55  ;;  %v6070_v6 = vld [vmem:[%s5589_s20 + $0xe8] sm:$0x3]  ;;  %v931_v55 = vsel %vm408_vm0, %v928_v11, %v930_v16  ;;  %9225 = vst [vmem:[#allocation43_spill] sm:$0xff] %v6075_v44  ;;  %v6090_v35 = vld [vmem:[%s5589_s20 + $0x170] sm:$0xff]  ;;  %v1069_v16 = vrot.slane %v6078_v54, 1  ;;  %v6115_v44 = vld [vmem:[%s5589_s20 + $0x140] sm:$0xff] }
  0x3f   : > { %5107 = vmatpush.xpose.msk.msra.mxu2 %vm9171_vm1, %v5578_v2  ;;  %5100 = vmatpush.xpose.msk.msra.mxu0 %vm9171_vm1, %v5603_v13  ;;  %9224 = vst [vmem:[#allocation42_spill] sm:$0xff] %v6070_v6  ;;  %v976_v17 = vsel %vm408_vm0, %v974_v37, %v975_v50  ;;  %v836_v11 = vrot.slane %v6070_v6, 1  ;;  %v977_v37 = vrot.slane %v6084_v43, 1 }
  0x40   : > { %5111 = vmatpush.xpose.msk.msra.mxu3 %vm9171_vm1, %v5594_v8  ;;  %9226 = vst [vmem:[#allocation44_spill] sm:$0xff] %v6078_v54 }
  0x41   : > { %9227 = vst [vmem:[#allocation45_spill] sm:$0xff] %v6084_v43  ;;  %v837_v6 = vsel %vm408_vm0, %v834_v58, %v836_v11  ;;  %v978_v43 = vsel %vm408_vm0, %v975_v50, %v977_v37  ;;  %v6126_v58 = vld [vmem:[%s5589_s20 + $0x178] sm:$0x3] }
  0x42   : > { %9228 = vst [vmem:[#allocation46_spill] sm:$0xff] %v6090_v35  ;;  %v1118_v37 = vrot.slane %v6126_v58, 1 }
  0x43   : > { %5108 = vmatpush.xpose.msk.msra.mxu2 %vm9171_vm1, %v5606_v14  ;;  %9230 = vst [vmem:[#allocation48_spill] sm:$0xff] %v6126_v58 }
  0x44   : > { %5112 = vmatpush.xpose.msk.msra.mxu3 %vm9171_vm1, %v5609_v15 }
  0x45   : > { %5073 = vmatmul.msk.f32.vlgmr.msrb.gmra.mxu1 %vm9171_vm1, %v835_v56  ;;  %5078 = vmatmul.msk.f32.gmra.mxu2 %vm9171_vm1, %v884_v42  ;;  %v1115_v56 = vrot.slane %v6087_v5, 1  ;;  %v1116_v42 = vrot.slane %v6090_v35, 1  ;;  %v6120_v35 = vld [vmem:[%s5589_s20 + $0x160] sm:$0x3] }
  0x46   : > { %5103 = vmatpush.xpose.msk.msrb.mxu1 %vm9171_vm1, %v5658_v40  ;;  %5082 = vmatmul.msk.f32.gmra.mxu3 %vm9171_vm1, %v931_v55  ;;  %v1070_v55 = vsel %vm408_vm0, %v1068_v38, %v1069_v16  ;;  %9229 = vst [vmem:[#allocation47_spill] sm:$0xff] %v6120_v35  ;;  %v1022_v38 = vrot.slane %v6115_v44, 1  ;;  %v1071_v50 = vrot.slane %v6120_v35, 1  ;;  %v9242_v35 = vld [vmem:[#allocation3_spill] sm:$0xff] }
  0x47   : > { %5085 = vmatmul.msk.f32.vlgmr.msrb.gmra.mxu0 %vm9171_vm1, %v976_v17  ;;  %v6112_v17 = vld [vmem:[%s5589_s20 + $0x138] sm:$0xff]  ;;  %v1117_v54 = vsel %vm408_vm0, %v1115_v56, %v1116_v42 }
  0x48   : > { %5115 = vmatpush.xpose.msk.msrb.mxu0 %vm9171_vm1, %v5670_v46  ;;  %v1021_v11 = vrot.slane %v6112_v17, 1  ;;  %v1072_v56 = vsel %vm408_vm0, %v1069_v16, %v1071_v50  ;;  %v9233_v50 = vld [vmem:[#allocation15_spill] sm:$0xff] }
  0x4a   : > { %5104 = vmatpush.xpose.msk.msrb.mxu1 %vm9171_vm1, %v5682_v51 }
  0x4c   : > { %5116 = vmatpush.xpose.msk.msrb.mxu0 %vm9171_vm1, %v5685_v52 }
  0x4d   : > { %5074 = vmatmul.msk.f32.gmra.mxu1 %vm9171_vm1, %v837_v6  ;;  %5093 = vmatmul.msk.f32.vlgmr.msrb.gmra.mxu2 %vm9171_vm1, %v1070_v55  ;;  %v1023_v6 = vsel %vm408_vm0, %v1021_v11, %v1022_v38  ;;  %v6142_v55 = vld [vmem:[%s5589_s20 + $0x148] sm:$0x3]  ;;  %v1856_v11 = vrot.slane %v5575_v1, 2  ;;  %v9237_v1 = vld [vmem:[#allocation30_spill] sm:$0xff] }
  0x4e   : > { %5097 = vmatmul.msk.f32.vlgmr.msrb.gmra.mxu3 %vm9171_vm1, %v1117_v54  ;;  %5123 = vmatpush.xpose.msk.msrb.mxu2 %vm9171_vm1, %v5648_v34  ;;  %9231 = vst [vmem:[#allocation49_spill] sm:$0xff] %v6142_v55  ;;  %v1024_v54 = vrot.slane %v6142_v55, 1  ;;  %v9241_v55 = vld [vmem:[#allocation2_spill] sm:$0xff] }
  0x4f   : > { %5086 = vmatmul.msk.f32.gmra.mxu0 %vm9171_vm1, %v978_v43  ;;  %5127 = vmatpush.xpose.msk.msrb.mxu3 %vm9171_vm1, %v5697_v57  ;;  %v1119_v43 = vsel %vm408_vm0, %v1116_v42, %v1118_v37  ;;  %v1854_v42 = vrot.slane %v5572_v0, 2  ;;  %v9234_v37 = vld [vmem:[#allocation11_spill] sm:$0xff]  ;;  %v1938_v58 = vrot.slane %v9241_v55, 2 }
  0x50   : > { %v1025_v16 = vsel %vm408_vm0, %v1022_v38, %v1024_v54  ;;  %v9232_v38 = vld [vmem:[#allocation9_spill] sm:$0xff]  ;;  %v1853_v54 = vrot.slane %v5603_v13, 2  ;;  %v1936_v13 = vrot.slane %v5578_v2, 2  ;;  %v1976_v2 = vrot.slane %v5609_v15, 2 }
  0x51   : > { %v1857_v0 = vsel %vm9173_vm2, %v1854_v42, %v1856_v11  ;;  %v9240_v11 = vld [vmem:[#allocation26_spill] sm:$0xff] }
  0x52   : > { %5124 = vmatpush.xpose.msk.msrb.mxu2 %vm9171_vm1, %v5736_v19  ;;  %v1939_v55 = vsel %vm9173_vm2, %v1936_v13, %v1938_v58 }
  0x53   : > { %5128 = vmatpush.xpose.msk.msrb.mxu3 %vm9171_vm1, %v5750_v31 }
  0x55   : > { %5089 = vmatmul.msk.f32.vlgmr.msra.gmra.mxu1 %vm9171_vm1, %v1023_v6  ;;  %5094 = vmatmul.msk.f32.gmra.mxu2 %vm9171_vm1, %v1072_v56  ;;  %v9235_v6 = vld [vmem:[#allocation18_spill] sm:$0xff]  ;;  %v9236_v56 = vld [vmem:[#allocation27_spill] sm:$0xff] }
  0x56   : > { %5119 = vmatpush.xpose.msk.msra.mxu1 %vm9171_vm1, %v5739_v23  ;;  %5098 = vmatmul.msk.f32.gmra.mxu3 %vm9171_vm1, %v1119_v43  ;;  %v9238_v43 = vld [vmem:[#allocation23_spill] sm:$0xff] }
  0x57   : > { %5101 = vmatmul.msk.f32.vlgmr.msra.gmra.mxu0 %vm9171_vm1, %v5618_v20 }
  0x58   : > { %5131 = vmatpush.xpose.msk.msra.mxu0 %vm9171_vm1, %v5805_v24 }
  0x5a   : > { %5120 = vmatpush.xpose.msk.msra.mxu1 %vm9171_vm1, %v5811_v28 }
  0x5c   : > { %5132 = vmatpush.xpose.msk.msra.mxu0 %vm9171_vm1, %v5818_v41 }
  0x5d   : > { %5090 = vmatmul.msk.f32.gmra.mxu1 %vm9171_vm1, %v1025_v16  ;;  %5109 = vmatmul.msk.f32.vlgmr.msra.gmra.mxu2 %vm9171_vm1, %v5624_v22  ;;  %v9239_v16 = vld [vmem:[#allocation17_spill] sm:$0xff] }
  0x5e   : > { %5113 = vmatmul.msk.f32.vlgmr.msra.gmra.mxu3 %vm9171_vm1, %v5642_v32  ;;  %5139 = vmatpush.xpose.msk.msra.mxu2 %vm9171_vm1, %v5791_v7 }
  0x5f   : > { %5102 = vmatmul.msk.f32.gmra.mxu0 %vm9171_vm1, %v5621_v21  ;;  %5143 = vmatpush.xpose.msk.msra.mxu3 %vm9171_vm1, %v5821_v49 }
  0x62   : > { %5140 = vmatpush.xpose.msk.msra.mxu2 %vm9171_vm1, %v5843_v18 }
  0x63   : > { %5144 = vmatpush.xpose.msk.msra.mxu3 %vm9171_vm1, %v5855_v61 }
  0x65   : > { %5105 = vmatmul.msk.f32.vlgmr.msrb.gmra.mxu1 %vm9171_vm1, %v5708_v62  ;;  %5110 = vmatmul.msk.f32.gmra.mxu2 %vm9171_vm1, %v5634_v27 }
  0x66   : > { %5135 = vmatpush.xpose.msk.msrb.mxu1 %vm9171_vm1, %v5849_v12  ;;  %5114 = vmatmul.msk.f32.gmra.mxu3 %vm9171_vm1, %v5645_v33 }
  0x67   : > { %5117 = vmatmul.msk.f32.vlgmr.msrb.gmra.mxu0 %vm9171_vm1, %v5714_v3 }
  0x68   : > { %5147 = vmatpush.xpose.msk.msrb.mxu0 %vm9171_vm1, %v5905_v53 }
  0x6a   : > { %5136 = vmatpush.xpose.msk.msrb.mxu1 %vm9171_vm1, %v5917_v45 }
  0x6c   : > { %5148 = vmatpush.xpose.msk.msrb.mxu0 %vm9171_vm1, %v5920_v9 }
  0x6d   : > { %5106 = vmatmul.msk.f32.gmra.mxu1 %vm9171_vm1, %v9232_v38  ;;  %5125 = vmatmul.msk.f32.vlgmr.msrb.gmra.mxu2 %vm9171_vm1, %v9233_v50 }
  0x6e   : > { %5129 = vmatmul.msk.f32.vlgmr.msrb.gmra.mxu3 %vm9171_vm1, %v9235_v6  ;;  %5155 = vmatpush.xpose.msk.msrb.mxu2 %vm9171_vm1, %v9236_v56 }
  0x6f   : > { %5118 = vmatmul.msk.f32.gmra.mxu0 %vm9171_vm1, %v9234_v37  ;;  %5159 = vmatpush.xpose.msk.msrb.mxu3 %vm9171_vm1, %v9237_v1 }
  0x72   : > { %5156 = vmatpush.xpose.msk.msrb.mxu2 %vm9171_vm1, %v5950_v25  ;;  %v1977_v25 = vrot.slane %v5594_v8, 2  ;;  %v9243_v8 = vld [vmem:[#allocation6_spill] sm:$0xff] }
  0x73   : > { %5160 = vmatpush.xpose.msk.msrb.mxu3 %vm9171_vm1, %v5968_v39  ;;  %v1855_v39 = vsel %vm9173_vm2, %v1853_v54, %v1854_v42  ;;  %v1897_v42 = vrot.slane %v9243_v8, 2  ;;  %v2018_v54 = vrot.slane %v5670_v46, 2  ;;  %v9245_v46 = vld [vmem:[#allocation38_spill] sm:$0xff] }
  0x75   : > { %5121 = vmatmul.msk.f32.vlgmr.msra.gmra.mxu1 %vm9171_vm1, %v9238_v43  ;;  %5126 = vmatmul.msk.f32.gmra.mxu2 %vm9171_vm1, %v9239_v16  ;;  %v1979_v43 = vrot.slane %v9242_v35, 2  ;;  %v1935_v35 = vrot.slane %v5606_v14, 2  ;;  %v9244_v14 = vld [vmem:[#allocation7_spill] sm:$0xff] }
  0x76   : > { %5151 = vmatpush.xpose.msk.msra.mxu1 %vm9171_vm1, %v5953_v10  ;;  %5130 = vmatmul.msk.f32.gmra.mxu3 %vm9171_vm1, %v5788_v4  ;;  %v2020_v58 = vrot.slane %v9244_v14, 2  ;;  %v2099_v14 = vrot.slane %v5736_v19, 2 }
  0x77   : > { %5133 = vmatmul.msk.f32.vlgmr.msra.gmra.mxu0 %vm9171_vm1, %v9240_v11  ;;  %v1937_v15 = vsel %vm9173_vm2, %v1935_v35, %v1936_v13 }
  0x78   : > { %5163 = vmatpush.xpose.msk.msra.mxu0 %vm9171_vm1, %v1857_v0  ;;  %v1980_v0 = vsel %vm9173_vm2, %v1977_v25, %v1979_v43  ;;  %v1978_v43 = vsel %vm9173_vm2, %v1976_v2, %v1977_v25  ;;  %v9246_v25 = vld [vmem:[#allocation5_spill] sm:$0xff] }
  0x79   : > { %v2102_v13 = vrot.slane %v9246_v25, 2 }
  0x7a   : > { %5152 = vmatpush.xpose.msk.msra.mxu1 %vm9171_vm1, %v6010_v36 }
  0x7c   : > { %5164 = vmatpush.xpose.msk.msra.mxu0 %vm9171_vm1, %v1855_v39  ;;  %v1895_v39 = vrot.slane %v5658_v40, 2  ;;  %v2021_v40 = vsel %vm9173_vm2, %v2018_v54, %v2020_v58  ;;  %v2140_v58 = vrot.slane %v5750_v31, 2 }
  0x7d   : > { %5122 = vmatmul.msk.f32.gmra.mxu1 %vm9171_vm1, %v5872_v26  ;;  %5141 = vmatmul.msk.f32.vlgmr.msra.gmra.mxu2 %vm9171_vm1, %v5980_v63  ;;  %v1894_v63 = vrot.slane %v5682_v51, 2 }
  0x7e   : > { %5145 = vmatmul.msk.f32.vlgmr.msra.gmra.mxu3 %vm9171_vm1, %v5990_v60  ;;  %5171 = vmatpush.xpose.msk.msra.mxu2 %vm9171_vm1, %v1939_v55  ;;  %v1898_v8 = vsel %vm9173_vm2, %v1895_v39, %v1897_v42  ;;  %v2017_v55 = vrot.slane %v5685_v52, 2  ;;  %v2100_v52 = vrot.slane %v5648_v34, 2  ;;  %v2141_v42 = vrot.slane %v5697_v57, 2  ;;  %v9248_v34 = vld [vmem:[#allocation43_spill] sm:$0xff] }
  0x7f   : > { %5134 = vmatmul.msk.f32.gmra.mxu0 %vm9171_vm1, %v5892_v30  ;;  %5175 = vmatpush.xpose.msk.msra.mxu3 %vm9171_vm1, %v1980_v0  ;;  %v1896_v51 = vsel %vm9173_vm2, %v1894_v63, %v1895_v39  ;;  %v9247_v0 = vld [vmem:[#allocation8_spill] sm:$0xff]  ;;  %v2059_v57 = vrot.slane %v5739_v23, 2 }
  0x80   : > { %v2143_v35 = vrot.slane %v9247_v0, 2  ;;  %v2019_v2 = vsel %vm9173_vm2, %v2017_v55, %v2018_v54  ;;  %v2103_v63 = vsel %vm9173_vm2, %v2100_v52, %v2102_v13  ;;  %v2101_v19 = vsel %vm9173_vm2, %v2099_v14, %v2100_v52 }
  0x81   : > { %v2142_v31 = vsel %vm9173_vm2, %v2140_v58, %v2141_v42  ;;  %v2182_v55 = vrot.slane %v5805_v24, 2  ;;  %v2058_v13 = vrot.slane %v5811_v28, 2  ;;  %v2181_v0 = vrot.slane %v5818_v41, 2  ;;  %v9252_v24 = vld [vmem:[#allocation44_spill] sm:$0xff] }
  0x82   : > { %5172 = vmatpush.xpose.msk.msra.mxu2 %vm9171_vm1, %v1937_v15  ;;  %v2144_v39 = vsel %vm9173_vm2, %v2141_v42, %v2143_v35  ;;  %v9249_v15 = vld [vmem:[#allocation41_spill] sm:$0xff]  ;;  %v9253_v35 = vld [vmem:[#allocation46_spill] sm:$0xff]  ;;  %v1930_v52 = vrot.slane %v5624_v22, 2  ;;  %v1971_v41 = vrot.slane %v5642_v32, 2  ;;  %v1972_v14 = vrot.slane %v5645_v33, 2 }
  0x83   : > { %5176 = vmatpush.xpose.msk.msra.mxu3 %vm9171_vm1, %v1978_v43  ;;  %v9250_v43 = vld [vmem:[#allocation13_spill] sm:$0xff]  ;;  %v2060_v42 = vsel %vm9173_vm2, %v2058_v13, %v2059_v57  ;;  %v2264_v58 = vrot.slane %v5791_v7, 2  ;;  %v2305_v22 = vrot.slane %v5821_v49, 2  ;;  %v9257_v13 = vld [vmem:[#allocation10_spill] sm:$0xff] }
  0x84   : > { %v2061_v54 = vrot.slane %v9250_v43, 2  ;;  %v9255_v43 = vld [vmem:[#allocation19_spill] sm:$0xff]  ;;  %v1973_v7 = vsel %vm9173_vm2, %v1971_v41, %v1972_v14  ;;  %v2346_v41 = vrot.slane %v5905_v53, 2 }
  0x85   : > { %5137 = vmatmul.msk.f32.vlgmr.msrb.gmra.mxu1 %vm9171_vm1, %v6028_v48  ;;  %5142 = vmatmul.msk.f32.gmra.mxu2 %vm9171_vm1, %v5983_v59 }
  0x86   : > { %5167 = vmatpush.xpose.msk.msrb.mxu1 %vm9171_vm1, %v1898_v8  ;;  %5146 = vmatmul.msk.f32.gmra.mxu3 %vm9171_vm1, %v9245_v46  ;;  %v1848_v8 = vrot.slane %v5618_v20, 2  ;;  %v2062_v23 = vsel %vm9173_vm2, %v2059_v57, %v2061_v54  ;;  %v2266_v54 = vrot.slane %v9255_v43, 2  ;;  %v9260_v43 = vld [vmem:[#allocation29_spill] sm:$0xff] }
  0x87   : > { %5149 = vmatmul.msk.f32.vlgmr.msrb.gmra.mxu0 %vm9171_vm1, %v6046_v29 }
  0x88   : > { %5179 = vmatpush.xpose.msk.msrb.mxu0 %vm9171_vm1, %v2021_v40  ;;  %v1849_v40 = vrot.slane %v5621_v21, 2  ;;  %v2267_v49 = vsel %vm9173_vm2, %v2264_v58, %v2266_v54  ;;  %v2348_v54 = vrot.slane %v9260_v43, 2 }
  0x8a   : > { %5168 = vmatpush.xpose.msk.msrb.mxu1 %vm9171_vm1, %v1896_v51  ;;  %v9251_v51 = vld [vmem:[#allocation20_spill] sm:$0xff]  ;;  %v1850_v20 = vsel %vm9173_vm2, %v1848_v8, %v1849_v40  ;;  %v2183_v8 = vsel %vm9173_vm2, %v2181_v0, %v2182_v55  ;;  %v9258_v0 = vld [vmem:[#allocation22_spill] sm:$0xff] }
  0x8b   : > { %v2184_v25 = vrot.slane %v9251_v51, 2  ;;  %v2263_v51 = vrot.slane %v5843_v18, 2 }
  0x8c   : > { %5180 = vmatpush.xpose.msk.msrb.mxu0 %vm9171_vm1, %v2019_v2  ;;  %v1931_v2 = vrot.slane %v5634_v27, 2 }
  0x8d   : > { %5138 = vmatmul.msk.f32.gmra.mxu1 %vm9171_vm1, %v6031_v47  ;;  %5157 = vmatmul.msk.f32.vlgmr.msrb.gmra.mxu2 %vm9171_vm1, %v9248_v34  ;;  %v2185_v21 = vsel %vm9173_vm2, %v2182_v55, %v2184_v25  ;;  %v2304_v25 = vrot.slane %v5855_v61, 2  ;;  %v2012_v61 = vrot.slane %v5714_v3, 2 }
  0x8e   : > { %5161 = vmatmul.msk.f32.vlgmr.msrb.gmra.mxu3 %vm9171_vm1, %v6087_v5  ;;  %5187 = vmatpush.xpose.msk.msrb.mxu2 %vm9171_vm1, %v2103_v63  ;;  %v9254_v63 = vld [vmem:[#allocation4_spill] sm:$0xff]  ;;  %v1932_v32 = vsel %vm9173_vm2, %v1930_v52, %v1931_v2  ;;  %v2225_v52 = vrot.slane %v9258_v0, 2  ;;  %v2136_v0 = vrot.slane %v5788_v4, 2 }
  0x8f   : > { %5150 = vmatmul.msk.f32.gmra.mxu0 %vm9171_vm1, %v9249_v15  ;;  %5191 = vmatpush.xpose.msk.msrb.mxu3 %vm9171_vm1, %v2144_v39  ;;  %v1851_v39 = vrot.slane %v9254_v63, 2  ;;  %v2013_v63 = vrot.slane %v9234_v37, 2 }
  0x91   : > { %v1852_v33 = vsel %vm9173_vm2, %v1849_v40, %v1851_v39  ;;  %v1890_v40 = vrot.slane %v9232_v38, 2  ;;  %v2265_v38 = vsel %vm9173_vm2, %v2263_v51, %v2264_v58  ;;  %v2306_v39 = vsel %vm9173_vm2, %v2304_v25, %v2305_v22 }
  0x92   : > { %5188 = vmatpush.xpose.msk.msrb.mxu2 %vm9171_vm1, %v2101_v19  ;;  %v9256_v19 = vld [vmem:[#allocation21_spill] sm:$0xff]  ;;  %v2095_v51 = vrot.slane %v9239_v16, 2  ;;  %v2469_v16 = vrot.slane %v9237_v1, 2 }
  0x93   : > { %5192 = vmatpush.xpose.msk.msrb.mxu3 %vm9171_vm1, %v2142_v31  ;;  %v2307_v27 = vrot.slane %v9256_v19, 2 }
  0x95   : > { %5153 = vmatmul.msk.f32.vlgmr.msra.gmra.mxu1 %vm9171_vm1, %v6112_v17  ;;  %5158 = vmatmul.msk.f32.gmra.mxu2 %vm9171_vm1, %v9252_v24  ;;  %v2308_v55 = vsel %vm9173_vm2, %v2305_v22, %v2307_v27  ;;  %v2014_v22 = vsel %vm9173_vm2, %v2012_v61, %v2013_v63 }
  0x96   : > { %5183 = vmatpush.xpose.msk.msra.mxu1 %vm9171_vm1, %v2062_v23  ;;  %5162 = vmatmul.msk.f32.gmra.mxu3 %vm9171_vm1, %v9253_v35  ;;  %v1889_v23 = vrot.slane %v5708_v62, 2 }
  0x97   : > { %5165 = vmatmul.msk.f32.vlgmr.msra.gmra.mxu0 %vm9171_vm1, %v1850_v20  ;;  %v1933_v20 = vrot.slane %v9257_v13, 2 }
  0x98   : > { %5195 = vmatpush.xpose.msk.msra.mxu0 %vm9171_vm1, %v2185_v21  ;;  %v2223_v21 = vrot.slane %v5849_v12, 2  ;;  %v1891_v3 = vsel %vm9173_vm2, %v1889_v23, %v1890_v40  ;;  %v9262_v23 = vld [vmem:[#allocation16_spill] sm:$0xff] }
  0x99   : > { %v6327_v31 = vpop.f32.mrf.mxu0  ;;  %v6329_v57 = vpop.f32.mrf.mxu1  ;;  %v1934_v37 = vsel %vm9173_vm2, %v1931_v2, %v1933_v20  ;;  %v2345_v2 = vrot.slane %v5920_v9, 2  ;;  %v2015_v13 = vrot.slane %v9262_v23, 2  ;;  %v2135_v20 = vrot.slane %v9235_v6, 2  ;;  %v9270_v23 = vld [vmem:[#allocation25_spill] sm:$0xff] }
  0x9a   : > { %5184 = vmatpush.xpose.msk.msra.mxu1 %vm9171_vm1, %v2060_v42  ;;  %v9259_v42 = vld [vmem:[#allocation12_spill] sm:$0xff]  ;;  %v2226_v27 = vsel %vm9173_vm2, %v2223_v21, %v2225_v52  ;;  %v2428_v52 = vrot.slane %v9236_v56, 2 }
  0x9b   : > { %v1974_v18 = vrot.slane %v9259_v42, 2 }
  0x9c   : > { %5196 = vmatpush.xpose.msk.msra.mxu0 %vm9171_vm1, %v2183_v8 }
  0x9d   : > { %5154 = vmatmul.msk.f32.gmra.mxu1 %vm9171_vm1, %v6115_v44  ;;  %5173 = vmatmul.msk.f32.vlgmr.msra.gmra.mxu2 %vm9171_vm1, %v1932_v32  ;;  %v2222_v32 = vrot.slane %v5917_v45, 2  ;;  %v1975_v58 = vsel %vm9173_vm2, %v1972_v14, %v1974_v18  ;;  %v2094_v14 = vrot.slane %v9233_v50, 2  ;;  %v9263_v18 = vld [vmem:[#allocation28_spill] sm:$0xff]  ;;  %v2347_v50 = vsel %vm9173_vm2, %v2345_v2, %v2346_v41 }
  0x9e   : > { %5177 = vmatmul.msk.f32.vlgmr.msra.gmra.mxu3 %vm9171_vm1, %v1973_v7  ;;  %5203 = vmatpush.xpose.msk.msra.mxu2 %vm9171_vm1, %v2267_v49  ;;  %v2349_v7 = vsel %vm9173_vm2, %v2346_v41, %v2348_v54  ;;  %v9261_v49 = vld [vmem:[#allocation14_spill] sm:$0xff]  ;;  %v2430_v61 = vrot.slane %v9263_v18, 2  ;;  %v2016_v54 = vsel %vm9173_vm2, %v2013_v63, %v2015_v13  ;;  %v2137_v41 = vsel %vm9173_vm2, %v2135_v20, %v2136_v0  ;;  %v9268_v2 = vld [vmem:[#allocation24_spill] sm:$0xff] }
  0x9f   : > { %5166 = vmatmul.msk.f32.gmra.mxu0 %vm9171_vm1, %v1852_v33  ;;  %5207 = vmatpush.xpose.msk.msra.mxu3 %vm9171_vm1, %v2308_v55  ;;  %v1892_v55 = vrot.slane %v9261_v49, 2  ;;  %v2224_v25 = vsel %vm9173_vm2, %v2222_v32, %v2223_v21  ;;  %v2096_v6 = vsel %vm9173_vm2, %v2094_v14, %v2095_v51  ;;  %v9266_v32 = vld [vmem:[#allocation35_spill] sm:$0xff]  ;;  %v2054_v63 = vrot.slane %v5872_v26, 2  ;;  %v9269_v14 = vld [vmem:[#allocation34_spill] sm:$0xff] }
  0xa0   : > { %v6355_v62 = vpop.f32.mrf.mxu2  ;;  %v2097_v49 = vrot.slane %v9268_v2, 2  ;;  %v2138_v13 = vrot.slane %v9270_v23, 2  ;;  %v2176_v20 = vrot.slane %v9240_v11, 2  ;;  %v2177_v18 = vrot.slane %v5892_v30, 2 }
  0xa1   : > { %v6361_v8 = vpop.f32.mrf.mxu3  ;;  %v6363_v19 = vpop.f32.mrf.mxu1  ;;  %v1893_v4 = vsel %vm9173_vm2, %v1890_v40, %v1892_v55  ;;  %v2387_v55 = vrot.slane %v5953_v10, 2  ;;  %v2300_v2 = vrot.slane %v9245_v46, 2 }
  0xa2   : > { %5204 = vmatpush.xpose.msk.msra.mxu2 %vm9171_vm1, %v2265_v38  ;;  %v9264_v38 = vld [vmem:[#allocation31_spill] sm:$0xff]  ;;  %v2098_v11 = vsel %vm9173_vm2, %v2095_v51, %v2097_v49  ;;  %v9271_v51 = vld [vmem:[#allocation33_spill] sm:$0xff]  ;;  %v5485_v49 = vld [vmem:[%s5569_s17 + $0x20] sm:$0xff] }
  0xa3   : > { %v6369_v33 = vpop.f32.mrf.mxu0  ;;  %5208 = vmatpush.xpose.msk.msra.mxu3 %vm9171_vm1, %v2306_v39  ;;  %v2471_v21 = vrot.slane %v9264_v38, 2 }
  0xa5   : > { %5169 = vmatmul.msk.f32.vlgmr.msrb.gmra.mxu1 %vm9171_vm1, %v1891_v3  ;;  %5174 = vmatmul.msk.f32.gmra.mxu2 %vm9171_vm1, %v1934_v37  ;;  %v2431_v3 = vsel %vm9173_vm2, %v2428_v52, %v2430_v61  ;;  %v2472_v37 = vsel %vm9173_vm2, %v2469_v16, %v2471_v21 }
  0xa6   : > { %5199 = vmatpush.xpose.msk.msrb.mxu1 %vm9171_vm1, %v2226_v27  ;;  %5178 = vmatmul.msk.f32.gmra.mxu3 %vm9171_vm1, %v1975_v58  ;;  %v9265_v27 = vld [vmem:[#allocation32_spill] sm:$0xff]  ;;  %v2468_v58 = vrot.slane %v9266_v32, 2 }
  0xa7   : > { %5181 = vmatmul.msk.f32.vlgmr.msrb.gmra.mxu0 %vm9171_vm1, %v2014_v22  ;;  %v2427_v40 = vrot.slane %v9265_v27, 2  ;;  %v9267_v22 = vld [vmem:[#allocation23_spill] sm:$0xff] }
  0xa8   : > { %5211 = vmatpush.xpose.msk.msrb.mxu0 %vm9171_vm1, %v2349_v7  ;;  %v6391_v42 = vpop.f32.mrf.mxu2  ;;  %v2053_v7 = vrot.slane %v9267_v22, 2 }
  0xa9   : > { %v6397_v39 = vpop.f32.mrf.mxu3  ;;  %v6399_v43 = vpop.f32.mrf.mxu1  ;;  %v2429_v61 = vsel %vm9173_vm2, %v2427_v40, %v2428_v52  ;;  %v2178_v52 = vsel %vm9173_vm2, %v2176_v20, %v2177_v18 }
  0xaa   : > { %5200 = vmatpush.xpose.msk.msrb.mxu1 %vm9171_vm1, %v2224_v25  ;;  %v2389_v25 = vrot.slane %v9269_v14, 2 }
  0xab   : > { %v6404_v56 = vpop.f32.mrf.mxu0 }
  0xac   : > { %5212 = vmatpush.xpose.msk.msrb.mxu0 %vm9171_vm1, %v2347_v50  ;;  %v2470_v50 = vsel %vm9173_vm2, %v2468_v58, %v2469_v16  ;;  %v2390_v30 = vsel %vm9173_vm2, %v2387_v55, %v2389_v25  ;;  %v2056_v16 = vrot.slane %v9271_v51, 2  ;;  %v9273_v58 = vld [vmem:[#allocation36_spill] sm:$0xff]  ;;  %v5488_v51 = vld [vmem:[%s5569_s17 + $0x68] sm:$0xff] }
  0xad   : > { %5170 = vmatmul.msk.f32.gmra.mxu1 %vm9171_vm1, %v1893_v4  ;;  %5189 = vmatmul.msk.f32.vlgmr.msrb.gmra.mxu2 %vm9171_vm1, %v2096_v6  ;;  %v2055_v4 = vsel %vm9173_vm2, %v2053_v7, %v2054_v63  ;;  %v2386_v6 = vrot.slane %v6010_v36, 2  ;;  %v2179_v22 = vrot.slane %v9273_v58, 2  ;;  %v2299_v7 = vrot.slane %v5990_v60, 2 }
  0xae   : > { %5193 = vmatmul.msk.f32.vlgmr.msrb.gmra.mxu3 %vm9171_vm1, %v2137_v41  ;;  %5219 = vmatpush.xpose.msk.msrb.mxu2 %vm9171_vm1, %v2431_v3  ;;  %v2139_v41 = vsel %vm9173_vm2, %v2136_v0, %v2138_v13  ;;  %v9272_v0 = vld [vmem:[#allocation37_spill] sm:$0xff] }
  0xaf   : > { %5182 = vmatmul.msk.f32.gmra.mxu0 %vm9171_vm1, %v2016_v54  ;;  %5223 = vmatpush.xpose.msk.msrb.mxu3 %vm9171_vm1, %v2472_v37  ;;  %v2258_v3 = vrot.slane %v9272_v0, 2  ;;  %v2259_v37 = vrot.slane %v5983_v59, 2  ;;  %v2388_v40 = vsel %vm9173_vm2, %v2386_v6, %v2387_v55  ;;  %v2057_v59 = vsel %vm9173_vm2, %v2054_v63, %v2056_v16 }
  0xb0   : > { %v6427_v26 = vpop.f32.mrf.mxu2  ;;  %v2180_v46 = vsel %vm9173_vm2, %v2177_v18, %v2179_v22  ;;  %v2301_v20 = vsel %vm9173_vm2, %v2299_v7, %v2300_v2  ;;  %v2217_v63 = vrot.slane %v6028_v48, 2  ;;  %v2340_v6 = vrot.slane %v6046_v29, 2 }
  0xb1   : > { %v6431_v38 = vpop.f32.mrf.mxu3  ;;  %v2260_v55 = vsel %vm9173_vm2, %v2258_v3, %v2259_v37 }
  0xb2   : > { %v6433_v21 = vpop.f32.mrf.mxu1  ;;  %5220 = vmatpush.xpose.msk.msrb.mxu2 %vm9171_vm1, %v2429_v61  ;;  %v5486_v61 = vld [vmem:[%s5569_s17 + $0x18] sm:$0xff] }
  0xb3   : > { %v6439_v54 = vpop.f32.mrf.mxu0  ;;  %5224 = vmatpush.xpose.msk.msrb.mxu3 %vm9171_vm1, %v2470_v50  ;;  %v2218_v50 = vrot.slane %v6031_v47, 2 }
  0xb5   : > { %5185 = vmatmul.msk.f32.vlgmr.msra.gmra.mxu1 %vm9171_vm1, %v2055_v4  ;;  %5190 = vmatmul.msk.f32.gmra.mxu2 %vm9171_vm1, %v2098_v11  ;;  %v9275_v4 = vld [vmem:[#allocation39_spill] sm:$0xff]  ;;  %v9276_v11 = vld [vmem:[#allocation40_spill] sm:$0xff] }
  0xb6   : > { %5215 = vmatpush.xpose.msk.msra.mxu1 %vm9171_vm1, %v2390_v30  ;;  %5194 = vmatmul.msk.f32.gmra.mxu3 %vm9171_vm1, %v2139_v41  ;;  %v2261_v18 = vrot.slane %v9275_v4, 2  ;;  %v2302_v30 = vrot.slane %v9276_v11, 2  ;;  %v2341_v41 = vrot.slane %v9249_v15, 2  ;;  %v2464_v11 = vrot.slane %v9253_v35, 2 }
  0xb7   : > { %5197 = vmatmul.msk.f32.vlgmr.msra.gmra.mxu0 %vm9171_vm1, %v2178_v52  ;;  %v5487_v52 = vld [vmem:[%s5569_s17 + $0x50] sm:$0xff] }
  0xb8   : > { %5227 = vmatpush.xpose.msk.msra.mxu0 %vm9171_vm1, %v5485_v49  ;;  %v6459_v14 = vpop.f32.mrf.mxu2  ;;  %v2262_v58 = vsel %vm9173_vm2, %v2259_v37, %v2261_v18  ;;  %v2303_v7 = vsel %vm9173_vm2, %v2300_v2, %v2302_v30  ;;  %v2342_v49 = vsel %vm9173_vm2, %v2340_v6, %v2341_v41  ;;  %v5491_v37 = vld [vmem:[%s5569_s17 + $0x38] sm:$0xff]  ;;  %v2422_v2 = vrot.slane %v9248_v34, 2  ;;  %v5492_v30 = vld [vmem:[%s5569_s17 + $0x80] sm:$0xff] }
  0xb9   : > { %v6461_v25 = vpop.f32.mrf.mxu3  ;;  %v2463_v18 = vrot.slane %v6087_v5, 2 }
  0xba   : > { %v6463_v23 = vpop.f32.mrf.mxu1  ;;  %5216 = vmatpush.xpose.msk.msra.mxu1 %vm9171_vm1, %v2388_v40  ;;  %v2219_v40 = vsel %vm9173_vm2, %v2217_v63, %v2218_v50  ;;  %v9282_v63 = vld [vmem:[#allocation45_spill] sm:$0xff] }
  0xbb   : > { %v6468_v13 = vpop.f32.mrf.mxu0  ;;  %v2343_v4 = vrot.slane %v9282_v63, 2  ;;  %v5494_v63 = vld [vmem:[%s5569_s17 + $0xb0] sm:$0xff] }
  0xbc   : > { %9274 = vst [vmem:[#allocation9_spill] sm:$0xff] %v6468_v13  ;;  %5228 = vmatpush.xpose.msk.msra.mxu0 %vm9171_vm1, %v5486_v61  ;;  %v2423_v61 = vrot.slane %v9252_v24, 2 }
  0xbd   : > { %5186 = vmatmul.msk.f32.gmra.mxu1 %vm9171_vm1, %v2057_v59  ;;  %5205 = vmatmul.msk.f32.vlgmr.msra.gmra.mxu2 %vm9171_vm1, %v2260_v55  ;;  %v5489_v59 = vld [vmem:[%s5569_s17 + $0x48] sm:$0xff]  ;;  %v5490_v55 = vld [vmem:[%s5569_s17 + $0x60] sm:$0xff] }
  0xbe   : > { %5209 = vmatmul.msk.f32.vlgmr.msra.gmra.mxu3 %vm9171_vm1, %v2301_v20  ;;  %5235 = vmatpush.xpose.msk.msra.mxu2 %vm9171_vm1, %v5487_v52 }
  0xbf   : > { %5198 = vmatmul.msk.f32.gmra.mxu0 %vm9171_vm1, %v2180_v46  ;;  %5239 = vmatpush.xpose.msk.msra.mxu3 %vm9171_vm1, %v5488_v51  ;;  %v9281_v46 = vld [vmem:[#allocation42_spill] sm:$0xff] }
  0xc0   : > { %v6488_v16 = vpop.f32.mrf.mxu2  ;;  %v2220_v20 = vrot.slane %v9281_v46, 2  ;;  %v2382_v46 = vrot.slane %v6115_v44, 2 }
  0xc1   : > { %9277 = vst [vmem:[#allocation15_spill] sm:$0xff] %v6488_v16  ;;  %v6490_v0 = vpop.f32.mrf.mxu3 }
  0xc2   : > { %9278 = vst [vmem:[#allocation11_spill] sm:$0xff] %v6490_v0  ;;  %v6492_v3 = vpop.f32.mrf.mxu1  ;;  %5236 = vmatpush.xpose.msk.msra.mxu2 %vm9171_vm1, %v5489_v59  ;;  %v2344_v59 = vsel %vm9173_vm2, %v2341_v41, %v2343_v4 }
  0xc3   : > { %9279 = vst [vmem:[#allocation18_spill] sm:$0xff] %v6492_v3  ;;  %5240 = vmatpush.xpose.msk.msra.mxu3 %vm9171_vm1, %v5490_v55  ;;  %v2465_v55 = vsel %vm9173_vm2, %v2463_v18, %v2464_v11 }
  0xc4   : > { %v6496_v22 = vpop.f32.mrf.mxu0 }
  0xc5   : > { %9280 = vst [vmem:[#allocation27_spill] sm:$0xff] %v6496_v22  ;;  %5201 = vmatmul.msk.f32.vlgmr.msrb.gmra.mxu1 %vm9171_vm1, %v2219_v40  ;;  %5206 = vmatmul.msk.f32.gmra.mxu2 %vm9171_vm1, %v2262_v58  ;;  %v2221_v40 = vsel %vm9173_vm2, %v2218_v50, %v2220_v20  ;;  %v5493_v58 = vld [vmem:[%s5569_s17 + $0x30] sm:$0xff]  ;;  %v2381_v50 = vrot.slane %v6112_v17, 2  ;;  %v9287_v20 = vld [vmem:[#allocation47_spill] sm:$0xff] }
  0xc6   : > { %5231 = vmatpush.xpose.msk.msrb.mxu1 %vm9171_vm1, %v5491_v37  ;;  %5210 = vmatmul.msk.f32.gmra.mxu3 %vm9171_vm1, %v2303_v7  ;;  %v2424_v7 = vsel %vm9173_vm2, %v2422_v2, %v2423_v61  ;;  %v2425_v41 = vrot.slane %v9287_v20, 2  ;;  %v9288_v37 = vld [vmem:[#allocation48_spill] sm:$0xff]  ;;  %v5497_v20 = vld [vmem:[%s5569_s17 + $0xc0] sm:$0xff] }
  0xc7   : > { %5213 = vmatmul.msk.f32.vlgmr.msrb.gmra.mxu0 %vm9171_vm1, %v2342_v49  ;;  %v2466_v2 = vrot.slane %v9288_v37, 2  ;;  %v9292_v37 = vld [vmem:[#allocation49_spill] sm:$0xff] }
  0xc8   : > { %5243 = vmatpush.xpose.msk.msrb.mxu0 %vm9171_vm1, %v5492_v30  ;;  %v6518_v6 = vpop.f32.mrf.mxu2 }
  0xc9   : > { %9283 = vst [vmem:[#allocation30_spill] sm:$0xff] %v6518_v6  ;;  %v6520_v52 = vpop.f32.mrf.mxu3 }
  0xca   : > { %9284 = vst [vmem:[#allocation17_spill] sm:$0xff] %v6520_v52  ;;  %v6522_v51 = vpop.f32.mrf.mxu1  ;;  %5232 = vmatpush.xpose.msk.msrb.mxu1 %vm9171_vm1, %v5493_v58  ;;  %v2426_v58 = vsel %vm9173_vm2, %v2423_v61, %v2425_v41  ;;  %v5499_v61 = vld [vmem:[%s5589_s20 + $0x18] sm:$0xff] }
  0xcb   : > { %9285 = vst [vmem:[#allocation26_spill] sm:$0xff] %v6522_v51 }
  0xcc   : > { %v6528_v49 = vpop.f32.mrf.mxu0  ;;  %5244 = vmatpush.xpose.msk.msrb.mxu0 %vm9171_vm1, %v5811_v28  ;;  %v5495_v28 = vld [vmem:[%s5569_s17 + $0xc8] sm:$0xff] }
  0xcd   : > { %9286 = vst [vmem:[#allocation2_spill] sm:$0xff] %v6528_v49  ;;  %5202 = vmatmul.msk.f32.gmra.mxu1 %vm9171_vm1, %v2221_v40  ;;  %5221 = vmatmul.msk.f32.vlgmr.msrb.gmra.mxu2 %vm9171_vm1, %v2424_v7  ;;  %v2383_v40 = vsel %vm9173_vm2, %v2381_v50, %v2382_v46  ;;  %v5498_v50 = vld [vmem:[%s5569_s17 + $0x98] sm:$0xff] }
  0xce   : > { %5225 = vmatmul.msk.f32.vlgmr.msrb.gmra.mxu3 %vm9171_vm1, %v2465_v55  ;;  %5251 = vmatpush.xpose.msk.msrb.mxu2 %vm9171_vm1, %v5494_v63  ;;  %v5496_v55 = vld [vmem:[%s5569_s17 + $0xa8] sm:$0xff]  ;;  %v2384_v63 = vrot.slane %v9292_v37, 2 }
  0xcf   : > { %5214 = vmatmul.msk.f32.gmra.mxu0 %vm9171_vm1, %v2344_v59  ;;  %5255 = vmatpush.xpose.msk.msrb.mxu3 %vm9171_vm1, %v5495_v28  ;;  %v2467_v59 = vsel %vm9173_vm2, %v2464_v11, %v2466_v2 }
  0xd0   : > { %v6546_v4 = vpop.f32.mrf.mxu2  ;;  %v2385_v28 = vsel %vm9173_vm2, %v2382_v46, %v2384_v63  ;;  %v5503_v46 = vld [vmem:[%s5589_s20 + $0x60] sm:$0xff] }
  0xd1   : > { %9289 = vst [vmem:[#allocation3_spill] sm:$0xff] %v6546_v4  ;;  %v6548_v18 = vpop.f32.mrf.mxu3  ;;  %v5518_v4 = vld [vmem:[%s5569_s17 + $0x158] sm:$0xff] }
  0xd2   : > { %9290 = vst [vmem:[#allocation6_spill] sm:$0xff] %v6548_v18  ;;  %v6550_v30 = vpop.f32.mrf.mxu1  ;;  %5252 = vmatpush.xpose.msk.msrb.mxu2 %vm9171_vm1, %v5496_v55  ;;  %v5504_v55 = vld [vmem:[%s5569_s17 + $0x110] sm:$0xff] }
  0xd3   : > { %9291 = vst [vmem:[#allocation7_spill] sm:$0xff] %v6550_v30  ;;  %5256 = vmatpush.xpose.msk.msrb.mxu3 %vm9171_vm1, %v5497_v20  ;;  %v5517_v18 = vld [vmem:[%s5589_s20 + $0xb0] sm:$0xff]  ;;  %v318_v30 = vld [vmem:[%s5569_s17 + $0x1a8] sm:$0x3] }
  0xd4   : > { %v6554_v7 = vpop.f32.mrf.mxu0  ;;  %v3462_v52 = vrot.slane %v318_v30, 1 }
  0xd5   : > { %5217 = vmatmul.msk.f32.vlgmr.msra.gmra.mxu1 %vm9171_vm1, %v2383_v40  ;;  %5222 = vmatmul.msk.f32.gmra.mxu2 %vm9171_vm1, %v2426_v58  ;;  %v5500_v40 = vld [vmem:[%s5569_s17 + $0x90] sm:$0xff] }
  0xd6   : > { %5247 = vmatpush.xpose.msk.msra.mxu1 %vm9171_vm1, %v5498_v50  ;;  %5226 = vmatmul.msk.f32.gmra.mxu3 %vm9171_vm1, %v2467_v59  ;;  %v5502_v59 = vld [vmem:[%s5589_s20 + $0x20] sm:$0xff]  ;;  %v5505_v50 = vld [vmem:[%s5569_s17 + $0x108] sm:$0xff] }
  0xd7   : > { %5229 = vmatmul.msk.f32.vlgmr.msra.gmra.mxu0 %vm9171_vm1, %v5499_v61  ;;  %v5507_v61 = vld [vmem:[%s5589_s20 + $0x50] sm:$0xff] }
  0xd8   : > { %5259 = vmatpush.xpose.msk.msra.mxu0 %vm9171_vm1, %v5849_v12  ;;  %v6571_v11 = vpop.f32.mrf.mxu2  ;;  %v5501_v12 = vld [vmem:[%s5589_s20 + $0x48] sm:$0xff] }
  0xd9   : > { %9293 = vst [vmem:[#allocation38_spill] sm:$0xff] %v6571_v11  ;;  %v6573_v41 = vpop.f32.mrf.mxu3 }
  0xda   : > { %9294 = vst [vmem:[#allocation5_spill] sm:$0xff] %v6573_v41  ;;  %v6575_v2 = vpop.f32.mrf.mxu1  ;;  %5248 = vmatpush.xpose.msk.msra.mxu1 %vm9171_vm1, %v5500_v40  ;;  %v5509_v40 = vld [vmem:[%s5589_s20 + $0x68] sm:$0xff] }
  0xdb   : > { %9295 = vst [vmem:[#allocation8_spill] sm:$0xff] %v6575_v2 }
  0xdc   : > { %v6580_v58 = vpop.f32.mrf.mxu0  ;;  %5260 = vmatpush.xpose.msk.msra.mxu0 %vm9171_vm1, %v5917_v45 }
  0xdd   : > { %5218 = vmatmul.msk.f32.gmra.mxu1 %vm9171_vm1, %v2385_v28  ;;  %5237 = vmatmul.msk.f32.vlgmr.msra.gmra.mxu2 %vm9171_vm1, %v5501_v12  ;;  %v5508_v28 = vld [vmem:[%s5569_s17 + $0xf8] sm:$0xff] }
  0xde   : > { %5241 = vmatmul.msk.f32.vlgmr.msra.gmra.mxu3 %vm9171_vm1, %v5503_v46  ;;  %5267 = vmatpush.xpose.msk.msra.mxu2 %vm9171_vm1, %v5504_v55  ;;  %v5510_v12 = vld [vmem:[%s5589_s20 + $0x78] sm:$0xff]  ;;  %v5511_v55 = vld [vmem:[%s5569_s17 + $0xf0] sm:$0xff] }
  0xdf   : > { %5230 = vmatmul.msk.f32.gmra.mxu0 %vm9171_vm1, %v5502_v59  ;;  %5271 = vmatpush.xpose.msk.msra.mxu3 %vm9171_vm1, %v5905_v53  ;;  %v5506_v53 = vld [vmem:[%s5589_s20 + $0x30] sm:$0xff] }
  0xe0   : > { %v6595_v45 = vpop.f32.mrf.mxu2 }
  0xe1   : > { %v6597_v20 = vpop.f32.mrf.mxu3 }
  0xe2   : > { %v6599_v37 = vpop.f32.mrf.mxu1  ;;  %5268 = vmatpush.xpose.msk.msra.mxu2 %vm9171_vm1, %v5505_v50 }
  0xe3   : > { %5272 = vmatpush.xpose.msk.msra.mxu3 %vm9171_vm1, %v5920_v9 }
  0xe4   : > { %v6601_v63 = vpop.f32.mrf.mxu0 }
  0xe5   : > { %5233 = vmatmul.msk.f32.vlgmr.msrb.gmra.mxu1 %vm9171_vm1, %v5506_v53  ;;  %5238 = vmatmul.msk.f32.gmra.mxu2 %vm9171_vm1, %v5507_v61  ;;  %v5512_v53 = vld [vmem:[%s5589_s20 + $0x38] sm:$0xff]  ;;  %v5513_v61 = vld [vmem:[%s5589_s20 + $0xa8] sm:$0xff] }
  0xe6   : > { %5263 = vmatpush.xpose.msk.msrb.mxu1 %vm9171_vm1, %v5508_v28  ;;  %5242 = vmatmul.msk.f32.gmra.mxu3 %vm9171_vm1, %v5509_v40  ;;  %v315_v28 = vld [vmem:[%s5569_s17 + $0x190] sm:$0x3]  ;;  %v5514_v40 = vld [vmem:[%s5589_s20 + $0x80] sm:$0xff] }
  0xe7   : > { %5245 = vmatmul.msk.f32.vlgmr.msrb.gmra.mxu0 %vm9171_vm1, %v5510_v12  ;;  %v5515_v12 = vld [vmem:[%s5589_s20 + $0xc0] sm:$0xff] }
  0xe8   : > { %5275 = vmatpush.xpose.msk.msrb.mxu0 %vm9171_vm1, %v5953_v10  ;;  %v6619_v9 = vpop.f32.mrf.mxu2  ;;  %v6634_v10 = vld [vmem:[%s5569_s17 + $0x188] sm:$0xff] }
  0xe9   : > { %v6621_v59 = vpop.f32.mrf.mxu3 }
  0xea   : > { %v6623_v46 = vpop.f32.mrf.mxu1  ;;  %5264 = vmatpush.xpose.msk.msrb.mxu1 %vm9171_vm1, %v5511_v55  ;;  %v3132_v55 = vrot.slane %v6634_v10, 1 }
  0xec   : > { %v6627_v50 = vpop.f32.mrf.mxu0  ;;  %5276 = vmatpush.xpose.msk.msrb.mxu0 %vm9171_vm1, %v6010_v36 }
  0xed   : > { %5234 = vmatmul.msk.f32.gmra.mxu1 %vm9171_vm1, %v5512_v53  ;;  %5253 = vmatmul.msk.f32.vlgmr.msrb.gmra.mxu2 %vm9171_vm1, %v5513_v61  ;;  %v6651_v53 = vld [vmem:[%s5569_s17 + $0x180] sm:$0xff]  ;;  %v3134_v61 = vrot.slane %v315_v28, 1 }
  0xee   : > { %5257 = vmatmul.msk.f32.vlgmr.msrb.gmra.mxu3 %vm9171_vm1, %v5515_v12  ;;  %5283 = vmatpush.xpose.msk.msrb.mxu2 %vm9171_vm1, %v9237_v1  ;;  %v5516_v1 = vld [vmem:[%s5589_s20 + $0x90] sm:$0xff]  ;;  %v3131_v2 = vrot.slane %v6651_v53, 1 }
  0xef   : > { %5246 = vmatmul.msk.f32.gmra.mxu0 %vm9171_vm1, %v5514_v40  ;;  %5287 = vmatpush.xpose.msk.msrb.mxu3 %vm9171_vm1, %v6634_v10  ;;  %v3135_v11 = vsel %vm408_vm0, %v3132_v55, %v3134_v61 }
  0xf0   : > { %v6647_v36 = vpop.f32.mrf.mxu2  ;;  %v3133_v61 = vsel %vm408_vm0, %v3131_v2, %v3132_v55  ;;  %v316_v2 = vld [vmem:[%s5569_s17 + $0x198] sm:$0xff]  ;;  %v3249_v55 = vrot.slane %v315_v28, 2  ;;  %v3577_v28 = vrot.slane %v318_v30, 2 }
  0xf1   : > { %v6653_v40 = vpop.f32.mrf.mxu3 }
  0xf2   : > { %v6655_v41 = vpop.f32.mrf.mxu1  ;;  %5284 = vmatpush.xpose.msk.msrb.mxu2 %vm9171_vm1, %v9266_v32  ;;  %v5519_v32 = vld [vmem:[%s5589_s20 + $0xc8] sm:$0xff] }
  0xf3   : > { %5288 = vmatpush.xpose.msk.msrb.mxu3 %vm9171_vm1, %v6651_v53 }
  0xf4   : > { %v6657_v12 = vpop.f32.mrf.mxu0 }
  0xf5   : > { %5249 = vmatmul.msk.f32.vlgmr.msra.gmra.mxu1 %vm9171_vm1, %v5516_v1  ;;  %5254 = vmatmul.msk.f32.gmra.mxu2 %vm9171_vm1, %v5517_v18 }
  0xf6   : > { %5279 = vmatpush.xpose.msk.msra.mxu1 %vm9171_vm1, %v5518_v4  ;;  %5258 = vmatmul.msk.f32.gmra.mxu3 %vm9171_vm1, %v5519_v32  ;;  %v317_v4 = vld [vmem:[%s5569_s17 + $0x1a0] sm:$0xff] }
  0xf7   : > { %5261 = vmatmul.msk.f32.vlgmr.msra.gmra.mxu0 %vm9171_vm1, %v6028_v48  ;;  %v3460_v32 = vrot.slane %v317_v4, 1  ;;  %v5520_v48 = vld [vmem:[%s5589_s20 + $0x98] sm:$0xff] }
  0xf8   : > { %5291 = vmatpush.xpose.msk.msra.mxu0 %vm9171_vm1, %v3135_v11  ;;  %v6676_v1 = vpop.f32.mrf.mxu2 }
  0xf9   : > { %v6679_v49 = vpop.f32.mrf.mxu3  ;;  %v3463_v11 = vsel %vm408_vm0, %v3460_v32, %v3462_v52 }
  0xfa   : > { %v6681_v18 = vpop.f32.mrf.mxu1  ;;  %5280 = vmatpush.xpose.msk.msra.mxu1 %vm9171_vm1, %v9265_v27  ;;  %v3247_v27 = vrot.slane %v6634_v10, 2 }
  0xfc   : > { %v6687_v6 = vpop.f32.mrf.mxu0  ;;  %5292 = vmatpush.xpose.msk.msra.mxu0 %vm9171_vm1, %v3133_v61  ;;  %v3459_v61 = vrot.slane %v316_v2, 1  ;;  %v3250_v10 = vsel %vm9173_vm2, %v3247_v27, %v3249_v55 }
  0xfd   : > { %9296 = vst [vmem:[#allocation43_spill] sm:$0xff] %v6687_v6  ;;  %5250 = vmatmul.msk.f32.gmra.mxu1 %vm9171_vm1, %v5520_v48  ;;  %5269 = vmatmul.msk.f32.vlgmr.msra.gmra.mxu2 %vm9171_vm1, %v5990_v60  ;;  %v3575_v60 = vrot.slane %v317_v4, 2 }
  0xfe   : > { %5273 = vmatmul.msk.f32.vlgmr.msra.gmra.mxu3 %vm9171_vm1, %v6046_v29  ;;  %5299 = vmatpush.xpose.msk.msra.mxu2 %vm9171_vm1, %v317_v4  ;;  %v3461_v48 = vsel %vm408_vm0, %v3459_v61, %v3460_v32  ;;  %v3246_v29 = vrot.slane %v6651_v53, 2  ;;  %v3574_v4 = vrot.slane %v316_v2, 2  ;;  %v5522_v61 = vld [vmem:[%s5589_s20 + $0x110] sm:$0xff] }
  0xff   : > { %5262 = vmatmul.msk.f32.gmra.mxu0 %vm9171_vm1, %v6031_v47  ;;  %5303 = vmatpush.xpose.msk.msra.mxu3 %vm9171_vm1, %v3463_v11  ;;  %v5521_v11 = vld [vmem:[%s5589_s20 + $0xf0] sm:$0xff]  ;;  %v3578_v32 = vsel %vm9173_vm2, %v3575_v60, %v3577_v28 }
 0x100   : > { %v6703_v52 = vpop.f32.mrf.mxu2  ;;  %v3248_v30 = vsel %vm9173_vm2, %v3246_v29, %v3247_v27  ;;  %v260_v27 = vld [vmem:[%s5589_s20 + $0x188] sm:$0xff] }
 0x101   : > { %9297 = vst [vmem:[#allocation41_spill] sm:$0xff] %v6703_v52  ;;  %v6706_v51 = vpop.f32.mrf.mxu3  ;;  %v3126_v29 = vrot.slane %v260_v27, 1 }
 0x102   : > { %9298 = vst [vmem:[#allocation13_spill] sm:$0xff] %v6706_v51  ;;  %v6708_v47 = vpop.f32.mrf.mxu1  ;;  %5300 = vmatpush.xpose.msk.msra.mxu2 %vm9171_vm1, %v316_v2  ;;  %v3576_v2 = vsel %vm9173_vm2, %v3574_v4, %v3575_v60 }
 0x103   : > { %9299 = vst [vmem:[#allocation20_spill] sm:$0xff] %v6708_v47  ;;  %5304 = vmatpush.xpose.msk.msra.mxu3 %vm9171_vm1, %v3461_v48 }
 0x104   : > { %v6712_v22 = vpop.f32.mrf.mxu0 }
 0x105   : > { %9300 = vst [vmem:[#allocation44_spill] sm:$0xff] %v6712_v22  ;;  %5265 = vmatmul.msk.f32.vlgmr.msrb.gmra.mxu1 %vm9171_vm1, %v5521_v11  ;;  %5270 = vmatmul.msk.f32.gmra.mxu2 %vm9171_vm1, %v5522_v61  ;;  %v3242_v22 = vrot.slane %v260_v27, 2 }
 0x106   : > { %5295 = vmatpush.xpose.msk.msrb.mxu1 %vm9171_vm1, %v3250_v10  ;;  %5274 = vmatmul.msk.f32.gmra.mxu3 %vm9171_vm1, %v9249_v15  ;;  %v259_v15 = vld [vmem:[%s5589_s20 + $0x180] sm:$0xff] }
 0x107   : > { %5277 = vmatmul.msk.f32.vlgmr.msrb.gmra.mxu0 %vm9171_vm1, %v6112_v17  ;;  %v5523_v17 = vld [vmem:[%s5589_s20 + $0xf8] sm:$0xff]  ;;  %v3125_v60 = vrot.slane %v259_v15, 1 }
 0x108   : > { %5307 = vmatpush.xpose.msk.msrb.mxu0 %vm9171_vm1, %v3578_v32  ;;  %v6728_v53 = vpop.f32.mrf.mxu2 }
 0x109   : > { %9301 = vst [vmem:[#allocation46_spill] sm:$0xff] %v6728_v53  ;;  %v6731_v55 = vpop.f32.mrf.mxu3  ;;  %v3127_v61 = vsel %vm408_vm0, %v3125_v60, %v3126_v29 }
 0x10a   : > { %9302 = vst [vmem:[#allocation4_spill] sm:$0xff] %v6731_v55  ;;  %v6733_v48 = vpop.f32.mrf.mxu1  ;;  %5296 = vmatpush.xpose.msk.msrb.mxu1 %vm9171_vm1, %v3248_v30  ;;  %v263_v30 = vld [vmem:[%s5589_s20 + $0x1a0] sm:$0xff] }
 0x10b   : > { %9303 = vst [vmem:[#allocation19_spill] sm:$0xff] %v6733_v48 }
 0x10c   : > { %v6736_v10 = vpop.f32.mrf.mxu0  ;;  %5308 = vmatpush.xpose.msk.msrb.mxu0 %vm9171_vm1, %v3576_v2 }
 0x10d   : > { %9304 = vst [vmem:[#allocation21_spill] sm:$0xff] %v6736_v10  ;;  %5266 = vmatmul.msk.f32.gmra.mxu1 %vm9171_vm1, %v5523_v17  ;;  %5285 = vmatmul.msk.f32.vlgmr.msrb.gmra.mxu2 %vm9171_vm1, %v6087_v5  ;;  %v261_v5 = vld [vmem:[%s5589_s20 + $0x190] sm:$0x3] }
 0x10e   : > { %5289 = vmatmul.msk.f32.vlgmr.msrb.gmra.mxu3 %vm9171_vm1, %v259_v15  ;;  %v3128_v2 = vrot.slane %v261_v5, 1 }
 0x10f   : > { %5278 = vmatmul.msk.f32.gmra.mxu0 %vm9171_vm1, %v6115_v44  ;;  %v262_v44 = vld [vmem:[%s5589_s20 + $0x198] sm:$0xff] }
 0x110   : > { %v6748_v28 = vpop.f32.mrf.mxu2  ;;  %v3453_v17 = vrot.slane %v262_v44, 1 }
 0x111   : > { %9305 = vst [vmem:[#allocation10_spill] sm:$0xff] %v6748_v28  ;;  %v6750_v11 = vpop.f32.mrf.mxu3 }
 0x112   : > { %9306 = vst [vmem:[#allocation22_spill] sm:$0xff] %v6750_v11  ;;  %v6752_v4 = vpop.f32.mrf.mxu1  ;;  %v3454_v11 = vrot.slane %v263_v30, 1 }
 0x113   : > { %9307 = vst [vmem:[#allocation12_spill] sm:$0xff] %v6752_v4  ;;  %v3129_v4 = vsel %vm408_vm0, %v3126_v29, %v3128_v2 }
 0x114   : > { %v6754_v32 = vpop.f32.mrf.mxu0  ;;  %v3455_v48 = vsel %vm408_vm0, %v3453_v17, %v3454_v11 }
 0x115   : > { %5281 = vmatmul.msk.f32.vlgmr.msra.gmra.mxu1 %vm9171_vm1, %v9248_v34  ;;  %5286 = vmatmul.msk.f32.gmra.mxu2 %vm9171_vm1, %v9253_v35  ;;  %v264_v35 = vld [vmem:[%s5589_s20 + $0x1a8] sm:$0x3] }
 0x116   : > { %5290 = vmatmul.msk.f32.gmra.mxu3 %vm9171_vm1, %v260_v27 }
 0x117   : > { %5293 = vmatmul.msk.f32.vlgmr.msra.gmra.mxu0 %vm9171_vm1, %v3127_v61  ;;  %v3241_v61 = vrot.slane %v259_v15, 2 }
 0x118   : > { %v6766_v10 = vpop.f32.mrf.mxu2 }
 0x119   : > { %9308 = vst [vmem:[#allocation29_spill] sm:$0xff] %v6766_v10  ;;  %v6768_v60 = vpop.f32.mrf.mxu3  ;;  %v3570_v10 = vrot.slane %v263_v30, 2  ;;  %v3243_v17 = vsel %vm9173_vm2, %v3241_v61, %v3242_v22 }
 0x11a   : > { %9309 = vst [vmem:[#allocation14_spill] sm:$0xff] %v6768_v60  ;;  %v6770_v28 = vpop.f32.mrf.mxu1  ;;  %v3569_v60 = vrot.slane %v262_v44, 2 }
 0x11b   : > { %9310 = vst [vmem:[#allocation16_spill] sm:$0xff] %v6770_v28  ;;  %v3456_v28 = vrot.slane %v264_v35, 1 }
 0x11c   : > { %v6772_v34 = vpop.f32.mrf.mxu0  ;;  %v3571_v27 = vsel %vm9173_vm2, %v3569_v60, %v3570_v10 }
 0x11d   : > { %5282 = vmatmul.msk.f32.gmra.mxu1 %vm9171_vm1, %v9252_v24  ;;  %5301 = vmatmul.msk.f32.vlgmr.msra.gmra.mxu2 %vm9171_vm1, %v262_v44  ;;  %v3457_v15 = vsel %vm408_vm0, %v3454_v11, %v3456_v28 }
 0x11e   : > { %5305 = vmatmul.msk.f32.vlgmr.msra.gmra.mxu3 %vm9171_vm1, %v3455_v48  ;;  %v3244_v48 = vrot.slane %v261_v5, 2 }
 0x11f   : > { %5294 = vmatmul.msk.f32.gmra.mxu0 %vm9171_vm1, %v3129_v4  ;;  %v3572_v4 = vrot.slane %v264_v35, 2 }
 0x120   : > { %v6782_v55 = vpop.f32.mrf.mxu2  ;;  %v3245_v28 = vsel %vm9173_vm2, %v3242_v22, %v3244_v48 }
 0x121   : > { %v6784_v29 = vpop.f32.mrf.mxu3  ;;  %v3573_v60 = vsel %vm9173_vm2, %v3570_v10, %v3572_v4 }
 0x122   : > { %v1924_v2 = vpop.f32.mrf.mxu1 }
 0x124   : > { %v6787_v24 = vpop.f32.mrf.mxu0 }
 0x125   : > { %5297 = vmatmul.msk.f32.vlgmr.msrb.gmra.mxu1 %vm9171_vm1, %v3243_v17  ;;  %5302 = vmatmul.msk.f32.gmra.mxu2 %vm9171_vm1, %v263_v30 }
 0x126   : > { %5306 = vmatmul.msk.f32.gmra.mxu3 %vm9171_vm1, %v3457_v15 }
 0x127   : > { %5309 = vmatmul.msk.f32.vlgmr.msrb.gmra.mxu0 %vm9171_vm1, %v3571_v27 }
 0x128   : > { %v6795_v44 = vpop.f32.mrf.mxu2 }
 0x129   : > { %v6797_v53 = vpop.f32.mrf.mxu3 }
 0x12a   : > { %v6799_v61 = vpop.f32.mrf.mxu1 }
 0x12c   : > { %v6802_v11 = vpop.f32.mrf.mxu0 }
 0x12d   : > { %5298 = vmatmul.msk.f32.gmra.mxu1 %vm9171_vm1, %v3245_v28 }
 0x12f   : > { %5310 = vmatmul.msk.f32.gmra.mxu0 %vm9171_vm1, %v3573_v60 }
 0x130   : > { %v6807_v5 = vpop.f32.mrf.mxu2 }
 0x131   : > { %v6809_v30 = vpop.f32.mrf.mxu3 }
 0x132   : > { %v6811_v35 = vpop.f32.mrf.mxu1 }
 0x134   : > { %v6813_v17 = vpop.f32.mrf.mxu0 }
 0x138   : > { %v6815_v15 = vpop.f32.mrf.mxu2 }
 0x139   : > { %v6817_v27 = vpop.f32.mrf.mxu3 }
 0x13a   : > { %v6819_v22 = vpop.f32.mrf.mxu1 }
 0x13c   : > { %v6821_v48 = vpop.f32.mrf.mxu0 }
 0x13d   : > { %9311 = vst [vmem:[#allocation28_spill] sm:$0xff] %v6821_v48 }
 0x140   : > { %v6823_v10 = vpop.f32.mrf.mxu2 }
 0x141   : > { %9312 = vst [vmem:[#allocation31_spill] sm:$0xff] %v6823_v10  ;;  %v6825_v4 = vpop.f32.mrf.mxu3 }
 0x142   : > { %9313 = vst [vmem:[#allocation32_spill] sm:$0xff] %v6825_v4  ;;  %v6827_v28 = vpop.f32.mrf.mxu1 }
 0x143   : > { %9314 = vst [vmem:[#allocation35_spill] sm:$0xff] %v6827_v28  ;;  %v1185_v28 = vadd.f32 %v6554_v7, %v6327_v31  ;;  %v1216_v31 = vadd.f32 %v6599_v37, %v6363_v19 }
 0x144   : > { %v6829_v60 = vpop.f32.mrf.mxu0 }
 0x145   : > { %9315 = vst [vmem:[#allocation23_spill] sm:$0xff] %v6829_v60  ;;  %v2504_v60 = vadd.f32 %v6754_v32, %v1185_v28  ;;  %v2506_v32 = vadd.f32 %v1924_v2, %v1216_v31 }
 0x148   : > { %v6831_v6 = vpop.f32.mrf.mxu2 }
 0x149   : > { %9316 = vst [vmem:[#allocation24_spill] sm:$0xff] %v6831_v6  ;;  %v6833_v47 = vpop.f32.mrf.mxu3 }
 0x14a   : > { %9317 = vst [vmem:[#allocation34_spill] sm:$0xff] %v6833_v47  ;;  %v6835_v51 = vpop.f32.mrf.mxu1 }
 0x14b   : > { %9318 = vst [vmem:[#allocation25_spill] sm:$0xff] %v6835_v51 }
 0x14c   : > { %v6837_v0 = vpop.f32.mrf.mxu0 }
 0x14d   : > { %9319 = vst [vmem:[#allocation33_spill] sm:$0xff] %v6837_v0 }
 0x150   : > { %v6839_v3 = vpop.f32.mrf.mxu2 }
 0x151   : > { %9320 = vst [vmem:[#allocation37_spill] sm:$0xff] %v6839_v3  ;;  %v6841_v13 = vpop.f32.mrf.mxu3 }
 0x152   : > { %9321 = vst [vmem:[#allocation36_spill] sm:$0xff] %v6841_v13  ;;  %v6843_v48 = vpop.f32.mrf.mxu1  ;;  %v1247_v13 = vadd.f32 %v6595_v45, %v6355_v62 }
 0x153   : > { %9322 = vst [vmem:[#allocation39_spill] sm:$0xff] %v6843_v48  ;;  %v1278_v48 = vadd.f32 %v6597_v20, %v6361_v8  ;;  %v1309_v20 = vadd.f32 %v6601_v63, %v6369_v33 }
 0x154   : > { %v2697_v10 = vpop.f32.mrf.mxu0  ;;  %v2508_v7 = vadd.f32 %v6782_v55, %v1247_v13 }
 0x155   : > { %v3060_v4 = vadd.f32 %v2697_v10, %v2504_v60  ;;  %v2510_v28 = vadd.f32 %v6784_v29, %v1278_v48 }
 0x157   : > { %v3167_v3 = vadd.f32 %v3060_v4, %v6363_v19 }
 0x158   : > { %v6848_v6 = vpop.f32.mrf.mxu2 }
 0x159   : > { %9323 = vst [vmem:[#allocation40_spill] sm:$0xff] %v6848_v6  ;;  %v6850_v47 = vpop.f32.mrf.mxu3  ;;  %v3282_v60 = vadd.f32 %v3167_v3, %v1924_v2  ;;  %v1250_v3 = vadd.f32 %v6619_v9, %v6391_v42 }
 0x15a   : > { %9324 = vst [vmem:[#allocation42_spill] sm:$0xff] %v6850_v47  ;;  %v6852_v51 = vpop.f32.mrf.mxu1  ;;  %v1188_v47 = vadd.f32 %v6580_v58, %v6329_v57 }
 0x15b   : > { %9325 = vst [vmem:[#allocation45_spill] sm:$0xff] %v6852_v51 }
 0x15c   : > { %v2700_v0 = vpop.f32.mrf.mxu0  ;;  %v2505_v19 = vadd.f32 %v6772_v34, %v1188_v47  ;;  %v1281_v47 = vadd.f32 %v6621_v59, %v6397_v39 }
 0x15e   : > { %v3061_v48 = vadd.f32 %v2700_v0, %v2505_v19  ;;  %v2509_v0 = vadd.f32 %v6795_v44, %v1250_v3 }
 0x160   : > { %v2743_v10 = vpop.f32.mrf.mxu2 }
 0x161   : > { %v3064_v4 = vadd.f32 %v2743_v10, %v2508_v7  ;;  %v2766_v51 = vpop.f32.mrf.mxu3 }
 0x162   : > { %v2720_v6 = vpop.f32.mrf.mxu1  ;;  %v3066_v45 = vadd.f32 %v2766_v51, %v2510_v28 }
 0x163   : > { %v3062_v52 = vadd.f32 %v2720_v6, %v2506_v32  ;;  %v3388_v16 = vadd.f32 %v3282_v60, %v2720_v6  ;;  %v3171_v13 = vadd.f32 %v3064_v4, %v6361_v8  ;;  %v1219_v6 = vadd.f32 %v6623_v46, %v6399_v43 }
 0x164   : > { %v2789_v37 = vpop.f32.mrf.mxu0  ;;  %v3173_v2 = vadd.f32 %v3066_v45, %v6369_v33  ;;  %v2511_v32 = vadd.f32 %v6797_v53, %v1281_v47  ;;  %v3168_v60 = vadd.f32 %v3061_v48, %v6399_v43  ;;  %v1371_v43 = vadd.f32 %v6647_v36, %v6427_v26 }
 0x165   : > { %v3169_v57 = vadd.f32 %v3062_v52, %v6355_v62  ;;  %v3495_v58 = vadd.f32 %v3388_v16, %v6355_v62  ;;  %v3286_v63 = vadd.f32 %v3171_v13, %v6784_v29  ;;  %v2507_v52 = vadd.f32 %v6799_v61, %v1219_v6 }
 0x166   : > { %v3288_v9 = vadd.f32 %v3173_v2, %v6787_v24  ;;  %v2512_v16 = vadd.f32 %v6787_v24, %v1309_v20  ;;  %v3283_v36 = vadd.f32 %v3168_v60, %v6799_v61 }
 0x167   : > { %v3284_v34 = vadd.f32 %v3169_v57, %v6782_v55  ;;  %v6882_v31 = vadd.f32 %v3495_v58, %v6782_v55  ;;  %v3392_v62 = vadd.f32 %v3286_v63, %v2766_v51 }
 0x168   : > { %v3394_v46 = vadd.f32 %v3288_v9, %v2789_v37  ;;  %v2746_v7 = vpop.f32.mrf.mxu2  ;;  %v3068_v19 = vadd.f32 %v2789_v37, %v2512_v16  ;;  %v1402_v37 = vadd.f32 %v6653_v40, %v6431_v38  ;;  %v2516_v40 = vadd.f32 %v6807_v5, %v1371_v43 }
 0x169   : > { %v3682_v59 = vsel %vm9172_vm3, %v6882_v31, -inf  ;;  %v3390_v28 = vadd.f32 %v3284_v34, %v2743_v10  ;;  %v3065_v4 = vadd.f32 %v2746_v7, %v2509_v0  ;;  %v2769_v55 = vpop.f32.mrf.mxu3  ;;  %v3499_v51 = vadd.f32 %v3392_v62, %v6369_v33 }
 0x16a   : > { %v2723_v45 = vpop.f32.mrf.mxu1  ;;  %3683 = vmax.xlane.f32.xlu1 %v3682_v59  ;;  %v3501_v20 = vadd.f32 %v3394_v46, %v6433_v21  ;;  %v3067_v13 = vadd.f32 %v2769_v55, %v2511_v32  ;;  %v3175_v47 = vadd.f32 %v3068_v19, %v6433_v21 }
 0x16b   : > { %v3063_v3 = vadd.f32 %v2723_v45, %v2507_v52  ;;  %v3172_v2 = vadd.f32 %v3065_v4, %v6397_v39  ;;  %v6897_v58 = vadd.f32 %v3499_v51, %v6787_v24  ;;  %v3497_v33 = vadd.f32 %v3390_v28, %v6361_v8 }
 0x16c   : > { %v6894_v57 = vpop.f32.mrf.mxu0  ;;  %v3174_v10 = vadd.f32 %v3067_v13, %v6404_v56  ;;  %v6910_v24 = vadd.f32 %v3501_v20, %v6811_v35  ;;  %v1340_v8 = vadd.f32 %v6655_v41, %v6433_v21  ;;  %v2518_v52 = vadd.f32 %v6809_v30, %v1402_v37 }
 0x16d   : > { %v3170_v6 = vadd.f32 %v3063_v3, %v6391_v42  ;;  %v3287_v48 = vadd.f32 %v3172_v2, %v6797_v53  ;;  %v3694_v63 = vsel %vm9172_vm3, %v6897_v58, -inf  ;;  %v3389_v16 = vadd.f32 %v3283_v36, %v2723_v45 }
 0x16e   : > { %v3289_v9 = vadd.f32 %v3174_v10, %v6802_v11  ;;  %3695 = vmax.xlane.f32.xlu0 %v3694_v63  ;;  %v3700_v61 = vsel %vm9172_vm3, %v6910_v24, -inf  ;;  %v6926_v32 = vadd.f32 %v3497_v33, %v6784_v29  ;;  %v2514_v59 = vadd.f32 %v6811_v35, %v1340_v8 }
 0x16f   : > { %v3285_v34 = vadd.f32 %v3170_v6, %v6795_v44  ;;  %v3393_v62 = vadd.f32 %v3287_v48, %v2769_v55  ;;  %v1312_v55 = vadd.f32 %v6627_v50, %v6404_v56  ;;  %v3290_v19 = vadd.f32 %v3175_v47, %v6811_v35 }
 0x170   : > { %v3395_v0 = vadd.f32 %v3289_v9, %v6894_v57  ;;  %v6921_v46 = vpop.f32.mrf.mxu2  ;;  %v1374_v29 = vadd.f32 %v6676_v1, %v6459_v14  ;;  %v3688_v43 = vsel %vm9172_vm3, %v6926_v32, -inf  ;;  %v1405_v33 = vadd.f32 %v6679_v49, %v6461_v25 }
 0x171   : > { %v3072_v21 = vadd.f32 %v6921_v46, %v2516_v40  ;;  %v2858_v41 = vpop.f32.mrf.mxu3  ;;  %v3500_v60 = vadd.f32 %v3393_v62, %v6404_v56  ;;  %v3391_v4 = vadd.f32 %v3285_v34, %v2746_v7  ;;  %v3496_v7 = vadd.f32 %v3389_v16, %v6391_v42 }
 0x172   : > { %v2812_v28 = vpop.f32.mrf.mxu1  ;;  %3701 = vmax.xlane.f32.xlu1 %v3700_v61  ;;  %v3502_v45 = vadd.f32 %v3395_v0, %v6463_v23  ;;  %v3074_v51 = vadd.f32 %v2858_v41, %v2518_v52  ;;  %v1343_v37 = vadd.f32 %v6681_v18, %v6463_v23  ;;  %v2517_v48 = vadd.f32 %v6815_v15, %v1374_v29  ;;  %v9326_v61 = vld [vmem:[#allocation15_spill] sm:$0xff] }
 0x173   : > { %v3179_v20 = vadd.f32 %v3072_v21, %v6431_v38  ;;  %v3070_v13 = vadd.f32 %v2812_v28, %v2514_v59  ;;  %v6941_v2 = vadd.f32 %v3500_v60, %v6802_v11  ;;  %v3396_v50 = vadd.f32 %v3290_v19, %v2812_v28  ;;  %v9328_v60 = vld [vmem:[#allocation9_spill] sm:$0xff] }
 0x174   : > { %v6938_v3 = vpop.f32.mrf.mxu0  ;;  %v3181_v56 = vadd.f32 %v3074_v51, %v6439_v54  ;;  %v6951_v10 = vadd.f32 %v3502_v45, %v6819_v22  ;;  %v3498_v6 = vadd.f32 %v3391_v4, %v6397_v39  ;;  %v2513_v63 = vadd.f32 %v6802_v11, %v1312_v55  ;;  %v9329_v51 = vld [vmem:[#allocation18_spill] sm:$0xff] }
 0x175   : > { %v3294_v35 = vadd.f32 %v3179_v20, %v6809_v30  ;;  %v3697_v1 = vsel %vm9172_vm3, %v6941_v2, -inf  ;;  %v3177_v47 = vadd.f32 %v3070_v13, %v6427_v26  ;;  %v2519_v36 = vadd.f32 %v6817_v27, %v1405_v33  ;;  %v9330_v13 = vld [vmem:[#allocation11_spill] sm:$0xff] }
 0x176   : > { %v3296_v42 = vadd.f32 %v3181_v56, %v6813_v17  ;;  %3689 = vmax.xlane.f32.xlu0 %v3688_v43  ;;  %3698 = vmax.xlane.f32.xlu2 %v3697_v1  ;;  %v3503_v39 = vadd.f32 %v3396_v50, %v6427_v26  ;;  %v3703_v49 = vsel %vm9172_vm3, %v6951_v10, -inf  ;;  %v6969_v9 = vadd.f32 %v3496_v7, %v6795_v44  ;;  %v9327_v44 = vld [vmem:[#allocation41_spill] sm:$0xff]  ;;  %v9332_v50 = vld [vmem:[#allocation20_spill] sm:$0xff] }
 0x177   : > { %v3400_v8 = vadd.f32 %v3294_v35, %v2858_v41  ;;  %v6974_v62 = vadd.f32 %v3498_v6, %v6797_v53  ;;  %v1433_v26 = vadd.f32 %v6657_v12, %v6439_v54  ;;  %v2515_v16 = vadd.f32 %v6819_v22, %v1343_v37  ;;  %v9331_v7 = vld [vmem:[#allocation13_spill] sm:$0xff]  ;;  %v9333_v35 = vld [vmem:[#allocation28_spill] sm:$0xff] }
 0x178   : > { %v6964_v34 = vpop.f32.mrf.mxu2  ;;  %v3402_v18 = vadd.f32 %v3296_v42, %v6938_v3  ;;  %v1495_v59 = vadd.f32 %v9327_v44, %v9326_v61  ;;  %v3069_v21 = vadd.f32 %v6894_v57, %v2513_v63  ;;  %v3292_v41 = vadd.f32 %v3177_v47, %v6807_v5  ;;  %v9334_v42 = vld [vmem:[#allocation32_spill] sm:$0xff]  ;;  %v9337_v44 = vld [vmem:[#allocation31_spill] sm:$0xff] }
 0x179   : > { %v3073_v40 = vadd.f32 %v6964_v34, %v2517_v48  ;;  %v2861_v11 = vpop.f32.mrf.mxu3  ;;  %v3685_v53 = vsel %vm9172_vm3, %v6969_v9, -inf  ;;  %v6988_v12 = vadd.f32 %v3503_v39, %v6807_v5  ;;  %v3507_v45 = vadd.f32 %v3400_v8, %v6439_v54  ;;  %v9335_v48 = vld [vmem:[#allocation35_spill] sm:$0xff] }
 0x17a   : > { %v2815_v52 = vpop.f32.mrf.mxu1  ;;  %3704 = vmax.xlane.f32.xlu1 %v3703_v49  ;;  %v3075_v0 = vadd.f32 %v2861_v11, %v2519_v36  ;;  %v3509_v19 = vadd.f32 %v3402_v18, %v9329_v51  ;;  %v3691_v20 = vsel %vm9172_vm3, %v6974_v62, -inf  ;;  %v1526_v56 = vadd.f32 %v9331_v7, %v9330_v13 }
 0x17b   : > { %v3180_v28 = vadd.f32 %v3073_v40, %v6461_v25  ;;  %v3071_v55 = vadd.f32 %v2815_v52, %v2515_v16  ;;  %v1464_v43 = vadd.f32 %v9332_v50, %v9329_v51  ;;  %v2520_v54 = vadd.f32 %v6813_v17, %v1433_v26 }
 0x17c   : > { %v3182_v4 = vadd.f32 %v3075_v0, %v9328_v60  ;;  %v2884_v57 = vpop.f32.mrf.mxu0  ;;  %v3176_v5 = vadd.f32 %v3069_v21, %v6463_v23  ;;  %v3398_v33 = vadd.f32 %v3292_v41, %v6921_v46  ;;  %v2526_v37 = vadd.f32 %v9334_v42, %v1526_v56  ;;  %v9342_v56 = vld [vmem:[#allocation23_spill] sm:$0xff] }
 0x17d   : > { %v3295_v29 = vadd.f32 %v3180_v28, %v6817_v27  ;;  %v2522_v63 = vadd.f32 %v9335_v48, %v1464_v43  ;;  %v3178_v47 = vadd.f32 %v3071_v55, %v6459_v14  ;;  %v3706_v39 = vsel %vm9172_vm3, %v6988_v12, -inf }
 0x17e   : > { %v3297_v1 = vadd.f32 %v3182_v4, %v9333_v35  ;;  %3692 = vmax.xlane.f32.xlu2 %v3691_v20  ;;  %3686 = vmax.xlane.f32.xlu0 %v3685_v53  ;;  %v7012_v23 = vadd.f32 %v3509_v19, %v9335_v48  ;;  %v7015_v46 = vadd.f32 %v3507_v45, %v6813_v17  ;;  %v9338_v53 = vld [vmem:[#allocation27_spill] sm:$0xff] }
 0x17f   : > { %v3401_v6 = vadd.f32 %v3295_v29, %v2861_v11  ;;  %v9336_v11 = vld [vmem:[#allocation43_spill] sm:$0xff]  ;;  %v2524_v21 = vadd.f32 %v9337_v44, %v1495_v59  ;;  %v3076_v41 = vadd.f32 %v6938_v3, %v2520_v54  ;;  %v3291_v28 = vadd.f32 %v3176_v5, %v6819_v22  ;;  %v9340_v3 = vld [vmem:[#allocation30_spill] sm:$0xff] }
 0x180   : > { %v2927_v36 = vpop.f32.mrf.mxu2  ;;  %v3403_v8 = vadd.f32 %v3297_v1, %v2884_v57  ;;  %v1436_v26 = vadd.f32 %v9336_v11, %v9328_v60  ;;  %v3505_v4 = vadd.f32 %v3398_v33, %v6431_v38  ;;  %v3293_v55 = vadd.f32 %v3178_v47, %v6815_v15  ;;  %v9341_v38 = vld [vmem:[#allocation46_spill] sm:$0xff] }
 0x181   : > { %v3508_v49 = vadd.f32 %v3401_v6, %v9328_v60  ;;  %v7009_v18 = vpop.f32.mrf.mxu3  ;;  %v9339_v60 = vld [vmem:[#allocation26_spill] sm:$0xff]  ;;  %v3080_v20 = vadd.f32 %v2927_v36, %v2524_v21  ;;  %v3724_v59 = vsel %vm9172_vm3, %v7012_v23, -inf  ;;  %v3718_v22 = vsel %vm9172_vm3, %v7015_v46, -inf  ;;  %v9347_v21 = vld [vmem:[#allocation7_spill] sm:$0xff] }
 0x182   : > { %v2904_v40 = vpop.f32.mrf.mxu1  ;;  %3707 = vmax.xlane.f32.xlu1 %v3706_v39  ;;  %v3082_v16 = vadd.f32 %v7009_v18, %v2526_v37  ;;  %v3510_v29 = vadd.f32 %v3403_v8, %v9339_v60  ;;  %v1498_v7 = vadd.f32 %v9341_v38, %v9340_v3  ;;  %v2521_v43 = vadd.f32 %v9333_v35, %v1436_v26  ;;  %v9343_v39 = vld [vmem:[#allocation17_spill] sm:$0xff]  ;;  %v9346_v26 = vld [vmem:[#allocation24_spill] sm:$0xff] }
 0x183   : > { %v3078_v0 = vadd.f32 %v2904_v40, %v2522_v63  ;;  %v7028_v45 = vadd.f32 %v3508_v49, %v9333_v35  ;;  %v3183_v1 = vadd.f32 %v3076_v41, %v9329_v51  ;;  %v3397_v54 = vadd.f32 %v3291_v28, %v2815_v52  ;;  %v9344_v49 = vld [vmem:[#allocation4_spill] sm:$0xff]  ;;  %v9345_v51 = vld [vmem:[#allocation25_spill] sm:$0xff] }
 0x184   : > { %v3189_v19 = vadd.f32 %v3082_v16, %v9338_v53  ;;  %v2973_v5 = vpop.f32.mrf.mxu0  ;;  %v7041_v6 = vadd.f32 %v3505_v4, %v6809_v30  ;;  %v3399_v47 = vadd.f32 %v3293_v55, %v6964_v34  ;;  %v1529_v8 = vadd.f32 %v9344_v49, %v9343_v39  ;;  %v9348_v4 = vld [vmem:[#allocation34_spill] sm:$0xff]  ;;  %v9352_v49 = vld [vmem:[#allocation12_spill] sm:$0xff] }
 0x185   : > { %v3185_v17 = vadd.f32 %v3078_v0, %v9326_v61  ;;  %v3721_v63 = vsel %vm9172_vm3, %v7028_v45, -inf  ;;  %v3187_v35 = vadd.f32 %v3080_v20, %v9330_v13  ;;  %v7053_v30 = vadd.f32 %v3510_v29, %v9345_v51 }
 0x186   : > { %v3304_v50 = vadd.f32 %v3189_v19, %v9342_v56  ;;  %3725 = vmax.xlane.f32.xlu2 %v3724_v59  ;;  %3719 = vmax.xlane.f32.xlu0 %v3718_v22  ;;  %v2525_v16 = vadd.f32 %v9346_v26, %v1498_v7  ;;  %v3077_v0 = vadd.f32 %v2884_v57, %v2521_v43  ;;  %v3712_v20 = vsel %vm9172_vm3, %v7041_v6, -inf  ;;  %v9349_v7 = vld [vmem:[#allocation39_spill] sm:$0xff] }
 0x187   : > { %v3300_v33 = vadd.f32 %v3185_v17, %v9337_v44  ;;  %v2527_v34 = vadd.f32 %v9348_v4, %v1529_v8  ;;  %v3504_v55 = vadd.f32 %v3397_v54, %v6459_v14  ;;  %v3298_v19 = vadd.f32 %v3183_v1, %v9335_v48  ;;  %v9350_v14 = vld [vmem:[#allocation44_spill] sm:$0xff]  ;;  %v9351_v1 = vld [vmem:[#allocation19_spill] sm:$0xff] }
 0x188   : > { %v3410_v37 = vadd.f32 %v3304_v50, %v2973_v5  ;;  %v7050_v11 = vpop.f32.mrf.mxu2  ;;  %v3506_v29 = vadd.f32 %v3399_v47, %v6461_v25  ;;  %v3302_v22 = vadd.f32 %v3187_v35, %v9334_v42  ;;  %v3727_v38 = vsel %vm9172_vm3, %v7053_v30, -inf }
 0x189   : > { %v2953_v28 = vpop.f32.mrf.mxu3  ;;  %v3081_v17 = vadd.f32 %v7050_v11, %v2525_v16  ;;  %v3406_v59 = vadd.f32 %v3300_v33, %v2927_v36  ;;  %v1557_v48 = vadd.f32 %v9350_v14, %v9338_v53  ;;  %v3184_v43 = vadd.f32 %v3077_v0, %v9339_v60  ;;  %v9353_v16 = vld [vmem:[#allocation2_spill] sm:$0xff] }
 0x18a   : > { %v2907_v52 = vpop.f32.mrf.mxu1  ;;  %3722 = vmax.xlane.f32.xlu1 %v3721_v63  ;;  %v3517_v41 = vadd.f32 %v3410_v37, %v9347_v21  ;;  %v3083_v57 = vadd.f32 %v2953_v28, %v2527_v34  ;;  %v1467_v25 = vadd.f32 %v9351_v1, %v9339_v60  ;;  %v3404_v36 = vadd.f32 %v3298_v19, %v2904_v40  ;;  %v9354_v19 = vld [vmem:[#allocation3_spill] sm:$0xff]  ;;  %v9357_v1 = vld [vmem:[#allocation21_spill] sm:$0xff] }
 0x18b   : > { %v7076_v54 = vadd.f32 %v3504_v55, %v6815_v15  ;;  %v2528_v33 = vadd.f32 %v9342_v56, %v1557_v48  ;;  %v3188_v37 = vadd.f32 %v3081_v17, %v9343_v39  ;;  %v3513_v47 = vadd.f32 %v3406_v59, %v9330_v13  ;;  %v9355_v13 = vld [vmem:[#allocation10_spill] sm:$0xff] }
 0x18c   : > { %v7068_v50 = vadd.f32 %v3517_v41, %v9349_v7  ;;  %v1588_v8 = vadd.f32 %v9352_v49, %v9347_v21  ;;  %v3408_v35 = vadd.f32 %v3302_v22, %v7009_v18  ;;  %v3190_v60 = vadd.f32 %v3083_v57, %v9353_v16  ;;  %v2976_v55 = vpop.f32.mrf.mxu0 }
 0x18d   : > { %v7088_v15 = vadd.f32 %v3506_v29, %v6817_v27  ;;  %v2523_v0 = vadd.f32 %v9345_v51, %v1467_v25  ;;  %v3084_v41 = vadd.f32 %v2973_v5, %v2528_v33  ;;  %v3299_v34 = vadd.f32 %v3184_v43, %v9345_v51 }
 0x18e   : > { %3713 = vmax.xlane.f32.xlu2 %v3712_v20  ;;  %3728 = vmax.xlane.f32.xlu0 %v3727_v38  ;;  %v3748_v63 = vsel %vm9172_vm3, %v7068_v50, -inf  ;;  %v1619_v17 = vadd.f32 %v9355_v13, %v9354_v19  ;;  %v2530_v20 = vadd.f32 %v9349_v7, %v1588_v8  ;;  %v3511_v18 = vadd.f32 %v3404_v36, %v9326_v61  ;;  %v9356_v38 = vld [vmem:[#allocation33_spill] sm:$0xff]  ;;  %v9359_v36 = vld [vmem:[#allocation22_spill] sm:$0xff] }
 0x18f   : > { %v3709_v59 = vsel %vm9172_vm3, %v7076_v54, -inf  ;;  %v3303_v22 = vadd.f32 %v3188_v37, %v9348_v4  ;;  %v3079_v27 = vadd.f32 %v2907_v52, %v2523_v0  ;;  %v3405_v29 = vadd.f32 %v3299_v34, %v2907_v52  ;;  %v9358_v52 = vld [vmem:[#allocation6_spill] sm:$0xff] }
 0x190   : > { %v3019_v57 = vpop.f32.mrf.mxu2  ;;  %v7100_v5 = vadd.f32 %v3513_v47, %v9334_v42  ;;  %v3515_v51 = vadd.f32 %v3408_v35, %v9338_v53  ;;  %v3305_v14 = vadd.f32 %v3190_v60, %v9356_v38  ;;  %v3715_v43 = vsel %vm9172_vm3, %v7088_v15, -inf  ;;  %v9360_v42 = vld [vmem:[#allocation37_spill] sm:$0xff]  ;;  %v9361_v13 = vld [vmem:[#allocation38_spill] sm:$0xff] }
 0x191   : > { %v3191_v61 = vadd.f32 %v3084_v41, %v9347_v21  ;;  %v1560_v25 = vadd.f32 %v9357_v1, %v9353_v16  ;;  %v1650_v33 = vadd.f32 %v9359_v36, %v9358_v52  ;;  %v2532_v37 = vadd.f32 %v9360_v42, %v1619_v17  ;;  %v3054_v49 = vpop.f32.mrf.mxu3 }
 0x192   : > { %v2996_v40 = vpop.f32.mrf.mxu1  ;;  %3749 = vmax.xlane.f32.xlu1 %v3748_v63  ;;  %v3409_v63 = vadd.f32 %v3303_v22, %v2953_v28  ;;  %v3186_v53 = vadd.f32 %v3079_v27, %v9340_v3  ;;  %v3512_v47 = vadd.f32 %v3405_v29, %v9340_v3  ;;  %v3736_v8 = vsel %vm9172_vm3, %v7100_v5, -inf  ;;  %v9362_v3 = vld [vmem:[#allocation29_spill] sm:$0xff] }
 0x193   : > { %v3086_v48 = vadd.f32 %v2996_v40, %v2530_v20  ;;  %v3411_v21 = vadd.f32 %v3305_v14, %v2976_v55  ;;  %v7118_v0 = vadd.f32 %v3515_v51, %v9342_v56  ;;  %v7121_v41 = vadd.f32 %v3511_v18, %v9337_v44  ;;  %v9364_v44 = vld [vmem:[#allocation8_spill] sm:$0xff] }
 0x194   : > { %v3088_v28 = vadd.f32 %v3019_v57, %v2532_v37  ;;  %v3306_v34 = vadd.f32 %v3191_v61, %v9349_v7  ;;  %v1622_v17 = vadd.f32 %v9362_v3, %v9361_v13  ;;  %v2529_v20 = vadd.f32 %v9356_v38, %v1560_v25  ;;  %v3161_v56 = vpop.f32.mrf.mxu0 }
 0x195   : > { %v3193_v35 = vadd.f32 %v3086_v48, %v9354_v19  ;;  %v3516_v27 = vadd.f32 %v3409_v63, %v9353_v16  ;;  %v3301_v29 = vadd.f32 %v3186_v53, %v9346_v26  ;;  %v7131_v51 = vadd.f32 %v3512_v47, %v9346_v26  ;;  %v9366_v53 = vld [vmem:[#allocation16_spill] sm:$0xff] }
 0x196   : > { %3710 = vmax.xlane.f32.xlu2 %v3709_v59  ;;  %3716 = vmax.xlane.f32.xlu0 %v3715_v43  ;;  %v9363_v59 = vld [vmem:[#allocation36_spill] sm:$0xff]  ;;  %v3412_v14 = vadd.f32 %v3306_v34, %v2996_v40  ;;  %v3518_v18 = vadd.f32 %v3411_v21, %v9364_v44  ;;  %v3742_v48 = vsel %vm9172_vm3, %v7118_v0, -inf  ;;  %v3730_v43 = vsel %vm9172_vm3, %v7121_v41, -inf }
 0x197   : > { %v2534_v22 = vadd.f32 %v9363_v59, %v1650_v33  ;;  %v3308_v7 = vadd.f32 %v3193_v35, %v9360_v42  ;;  %v3195_v61 = vadd.f32 %v3088_v28, %v9358_v52  ;;  %v9365_v40 = vld [vmem:[#allocation40_spill] sm:$0xff]  ;;  %v3085_v26 = vadd.f32 %v2976_v55, %v2529_v20 }
 0x198   : > { %v7140_v16 = vpop.f32.mrf.mxu2  ;;  %v2533_v1 = vadd.f32 %v9365_v40, %v1622_v17  ;;  %v3519_v36 = vadd.f32 %v3412_v14, %v9354_v19  ;;  %v3733_v33 = vsel %vm9172_vm3, %v7131_v51, -inf  ;;  %v7147_v37 = vadd.f32 %v3516_v27, %v9356_v38 }
 0x199   : > { %v3090_v25 = vadd.f32 %v3054_v49, %v2534_v22  ;;  %v3407_v63 = vadd.f32 %v3301_v29, %v7050_v11  ;;  %v1591_v47 = vadd.f32 %v9366_v53, %v9364_v44  ;;  %v3414_v35 = vadd.f32 %v3308_v7, %v3019_v57  ;;  %v3057_v28 = vpop.f32.mrf.mxu3  ;;  %v9369_v7 = vld [vmem:[#allocation14_spill] sm:$0xff] }
 0x19a   : > { %v2999_v60 = vpop.f32.mrf.mxu1  ;;  %3737 = vmax.xlane.f32.xlu1 %v3736_v8  ;;  %v9367_v8 = vld [vmem:[#allocation45_spill] sm:$0xff]  ;;  %v3310_v55 = vadd.f32 %v3195_v61, %v9363_v59  ;;  %v3089_v19 = vadd.f32 %v7140_v16, %v2533_v1  ;;  %v3192_v38 = vadd.f32 %v3085_v26, %v9364_v44  ;;  %v3745_v11 = vsel %vm9172_vm3, %v7147_v37, -inf }
 0x19b   : > { %v7153_v21 = vadd.f32 %v3518_v18, %v9367_v8  ;;  %v2531_v3 = vadd.f32 %v9367_v8, %v1591_v47  ;;  %v3197_v17 = vadd.f32 %v3161_v56, %v3090_v25  ;;  %v7162_v20 = vadd.f32 %v3519_v36, %v9360_v42  ;;  %v9368_v18 = vld [vmem:[#allocation5_spill] sm:$0xff] }
 0x19c   : > { %v3514_v22 = vadd.f32 %v3407_v63, %v9343_v39  ;;  %v3521_v14 = vadd.f32 %v3414_v35, %v9358_v52  ;;  %v3416_v44 = vadd.f32 %v3310_v55, %v3054_v49  ;;  %v3164_v61 = vpop.f32.mrf.mxu0  ;;  %v3307_v42 = vadd.f32 %v3192_v38, %v9367_v8  ;;  %v9370_v39 = vld [vmem:[#allocation42_spill] sm:$0xff] }
 0x19d   : > { %v3087_v57 = vadd.f32 %v2999_v60, %v2531_v3  ;;  %v3751_v29 = vsel %vm9172_vm3, %v7153_v21, -inf  ;;  %v3754_v25 = vsel %vm9172_vm3, %v7162_v20, -inf }
 0x19e   : > { %3743 = vmax.xlane.f32.xlu2 %v3742_v48  ;;  %3731 = vmax.xlane.f32.xlu0 %v3730_v43  ;;  %v1653_v48 = vadd.f32 %v9369_v7, %v9368_v18  ;;  %v3196_v43 = vadd.f32 %v3089_v19, %v9368_v18  ;;  %v7176_v36 = vadd.f32 %v3514_v22, %v9348_v4 }
 0x19f   : > { %v3194_v52 = vadd.f32 %v3087_v57, %v9361_v13  ;;  %v7180_v63 = vadd.f32 %v3521_v14, %v9363_v59  ;;  %v3523_v53 = vadd.f32 %v3416_v44, %v3161_v56 }
 0x1a0   : > { %v3382_v1 = vpop.f32.mrf.mxu2  ;;  %v2535_v26 = vadd.f32 %v9370_v39, %v1653_v48  ;;  %v3311_v8 = vadd.f32 %v3196_v43, %v9370_v39  ;;  %v3739_v19 = vsel %vm9172_vm3, %v7176_v36, -inf }
 0x1a1   : > { %v3489_v35 = vpop.f32.mrf.mxu3  ;;  %v3309_v4 = vadd.f32 %v3194_v52, %v9365_v40  ;;  %v3760_v59 = vsel %vm9172_vm3, %v7180_v63, -inf }
 0x1a2   : > { %3734 = vmax.xlane.f32.xlu1 %v3733_v33  ;;  %v3276_v34 = vpop.f32.mrf.mxu1  ;;  %v3413_v33 = vadd.f32 %v3307_v42, %v2999_v60  ;;  %v3091_v47 = vadd.f32 %v3057_v28, %v2535_v26 }
 0x1a3   : > { %v3312_v27 = vadd.f32 %v3276_v34, %v3197_v17  ;;  %v7183_v55 = vadd.f32 %v3523_v53, %v3276_v34  ;;  %v3417_v17 = vadd.f32 %v3311_v8, %v3057_v28 }
 0x1a4   : > { %v3520_v3 = vadd.f32 %v3413_v33, %v9361_v13  ;;  %v3198_v56 = vadd.f32 %v3164_v61, %v3091_v47 }
 0x1a5   : > { %v3418_v49 = vadd.f32 %v3382_v1, %v3312_v27  ;;  %v3766_v34 = vsel %vm9172_vm3, %v7183_v55, -inf  ;;  %v3524_v14 = vadd.f32 %v3417_v17, %v3164_v61 }
 0x1a6   : > { %3752 = vmax.xlane.f32.xlu2 %v3751_v29  ;;  %3746 = vmax.xlane.f32.xlu0 %v3745_v11  ;;  %v3604_v11 = vpop.f32.mrf.mxu0  ;;  %v7196_v13 = vadd.f32 %v3520_v3, %v9365_v40  ;;  %v3415_v29 = vadd.f32 %v3309_v4, %v7140_v16 }
 0x1a7   : > { %v3525_v60 = vadd.f32 %v3489_v35, %v3418_v49 }
 0x1a8   : > { %v3385_v27 = vpop.f32.mrf.mxu2  ;;  %v3757_v43 = vsel %vm9172_vm3, %v7196_v13, -inf  ;;  %v3522_v1 = vadd.f32 %v3415_v29, %v9368_v18 }
 0x1a9   : > { %v7193_v57 = vadd.f32 %v3604_v11, %v3525_v60  ;;  %v3492_v48 = vpop.f32.mrf.mxu3 }
 0x1aa   : > { %3755 = vmax.xlane.f32.xlu1 %v3754_v25  ;;  %v3279_v38 = vpop.f32.mrf.mxu1  ;;  %v7209_v61 = vadd.f32 %v3522_v1, %v9370_v39 }
 0x1ab   : > { %v3313_v22 = vadd.f32 %v3279_v38, %v3198_v56  ;;  %v7199_v7 = vadd.f32 %v3524_v14, %v3279_v38  ;;  %v3772_v44 = vsel %vm9172_vm3, %v7193_v57, -inf }
 0x1ac   : > { %v3763_v25 = vsel %vm9172_vm3, %v7209_v61, -inf }
 0x1ad   : > { %v3419_v28 = vadd.f32 %v3385_v27, %v3313_v22  ;;  %v3769_v40 = vsel %vm9172_vm3, %v7199_v7, -inf }
 0x1ae   : > { %3740 = vmax.xlane.f32.xlu2 %v3739_v19  ;;  %3761 = vmax.xlane.f32.xlu0 %v3760_v59  ;;  %v3607_v16 = vpop.f32.mrf.mxu0 }
 0x1af   : > { %v3526_v42 = vadd.f32 %v3492_v48, %v3419_v28 }
 0x1b1   : > { %v7211_v26 = vadd.f32 %v3607_v16, %v3526_v42 }
 0x1b2   : > { %3767 = vmax.xlane.f32.xlu1 %v3766_v34 }
 0x1b3   : > { %v3775_v18 = vsel %vm9172_vm3, %v7211_v26, -inf }
 0x1b6   : > { %3773 = vmax.xlane.f32.xlu2 %v3772_v44  ;;  %3758 = vmax.xlane.f32.xlu0 %v3757_v43 }
 0x1ba   : > { %3770 = vmax.xlane.f32.xlu1 %v3769_v40 }
 0x1be   : > { %3764 = vmax.xlane.f32.xlu0 %v3763_v25 }
 0x1c2   : > { %3776 = vmax.xlane.f32.xlu1 %v3775_v18 }
 0x1dd   : > { %v3684_v52 = vpop.xlane.xlu1 %3683 }
 0x1de   : > { %v3778_v33 = vsub.f32 %v6882_v31, %v3684_v52 }
 0x1e0   : > { %v3810_v49 = vmul.f32 1.442695, %v3778_v33 }
 0x1e1   : > { %v3696_v53 = vpop.xlane.xlu0 %3695 }
 0x1e2   : > { %5357 = vpow2.f32 %v3810_v49  ;;  %v3782_v47 = vsub.f32 %v6897_v58, %v3696_v53 }
 0x1e4   : > { %v3818_v39 = vmul.f32 1.442695, %v3782_v47 }
 0x1e5   : > { %v3702_v8 = vpop.xlane.xlu1 %3701 }
 0x1e6   : > { %v3784_v35 = vsub.f32 %v6910_v24, %v3702_v8  ;;  %5359 = vpow2.f32 %v3818_v39 }
 0x1e8   : > { %v7220_v19 = vpop.eup %5357  ;;  %v3822_v4 = vmul.f32 1.442695, %v3784_v35 }
 0x1e9   : > { %v3874_v3 = vsel %vm9172_vm3, %v7220_v19, 0.0  ;;  %v3690_v60 = vpop.xlane.xlu0 %3689  ;;  %v3699_v38 = vpop.xlane.xlu2 %3698 }
 0x1ea   : > { %3875 = vadd.xlane.f32.xlu2 %v3874_v3  ;;  %v3780_v31 = vsub.f32 %v6926_v32, %v3690_v60  ;;  %5361 = vpow2.f32 %v3822_v4  ;;  %v3783_v44 = vsub.f32 %v6941_v2, %v3699_v38 }
 0x1ec   : > { %v7225_v59 = vpop.eup %5359  ;;  %v3814_v58 = vmul.f32 1.442695, %v3780_v31 }
 0x1ed   : > { %v3705_v17 = vpop.xlane.xlu1 %3704  ;;  %v3886_v24 = vsel %vm9172_vm3, %v7225_v59, 0.0 }
 0x1ee   : > { %v3785_v56 = vsub.f32 %v6951_v10, %v3705_v17  ;;  %5363 = vpow2.f32 %v3814_v58  ;;  %3887 = vadd.xlane.f32.xlu0 %v3886_v24 }
 0x1f0   : > { %v3824_v11 = vmul.f32 1.442695, %v3785_v56  ;;  %v7230_v27 = vpop.eup %5361 }
 0x1f1   : > { %v3693_v22 = vpop.xlane.xlu2 %3692  ;;  %v3687_v34 = vpop.xlane.xlu0 %3686  ;;  %v3892_v42 = vsel %vm9172_vm3, %v7230_v27, 0.0 }
 0x1f2   : > { %v3781_v29 = vsub.f32 %v6974_v62, %v3693_v22  ;;  %v3779_v32 = vsub.f32 %v6969_v9, %v3687_v34  ;;  %5365 = vpow2.f32 %v3824_v11  ;;  %v3820_v62 = vmul.f32 1.442695, %v3783_v44 }
 0x1f4   : > { %v7234_v14 = vpop.eup %5363  ;;  %v3816_v28 = vmul.f32 1.442695, %v3781_v29  ;;  %v3812_v48 = vmul.f32 1.442695, %v3779_v32 }
 0x1f5   : > { %v3708_v10 = vpop.xlane.xlu1 %3707  ;;  %v3880_v1 = vsel %vm9172_vm3, %v7234_v14, 0.0 }
 0x1f6   : > { %v3786_v43 = vsub.f32 %v6988_v12, %v3708_v10  ;;  %5367 = vpow2.f32 %v3816_v28  ;;  %3881 = vadd.xlane.f32.xlu2 %v3880_v1  ;;  %3893 = vadd.xlane.f32.xlu0 %v3892_v42 }
 0x1f7   : > { %5369 = vpow2.f32 %v3812_v48 }
 0x1f8   : > { %v3826_v9 = vmul.f32 1.442695, %v3786_v43  ;;  %v7242_v25 = vpop.eup %5365 }
 0x1f9   : > { %v3726_v40 = vpop.xlane.xlu2 %3725  ;;  %v3720_v16 = vpop.xlane.xlu0 %3719  ;;  %v3895_v39 = vsel %vm9172_vm3, %v7242_v25, 0.0 }
 0x1fa   : > { %v3792_v2 = vsub.f32 %v7012_v23, %v3726_v40  ;;  %v3790_v12 = vsub.f32 %v7015_v46, %v3720_v16  ;;  %5371 = vpow2.f32 %v3826_v9 }
 0x1fb   : > { %5373 = vpow2.f32 %v3820_v62 }
 0x1fc   : > { %v7246_v18 = vpop.eup %5367  ;;  %v3838_v52 = vmul.f32 1.442695, %v3792_v2  ;;  %v3834_v46 = vmul.f32 1.442695, %v3790_v12 }
 0x1fd   : > { %v3723_v33 = vpop.xlane.xlu1 %3722  ;;  %v7248_v49 = vpop.eup %5369  ;;  %v3883_v47 = vsel %vm9172_vm3, %v7246_v18, 0.0 }
 0x1fe   : > { %v3791_v53 = vsub.f32 %v7028_v45, %v3723_v33  ;;  %5375 = vpow2.f32 %v3838_v52  ;;  %3884 = vadd.xlane.f32.xlu1 %v3883_v47  ;;  %v3877_v23 = vsel %vm9172_vm3, %v7248_v49, 0.0  ;;  %3896 = vadd.xlane.f32.xlu0 %v3895_v39 }
 0x1ff   : > { %3878 = vadd.xlane.f32.xlu2 %v3877_v23  ;;  %5377 = vpow2.f32 %v3834_v46 }
 0x200   : > { %v3836_v8 = vmul.f32 1.442695, %v3791_v53  ;;  %v7257_v3 = vpop.eup %5371 }
 0x201   : > { %v3714_v35 = vpop.xlane.xlu2 %3713  ;;  %v3729_v4 = vpop.xlane.xlu0 %3728  ;;  %v3898_v11 = vsel %vm9172_vm3, %v7257_v3, 0.0 }
 0x202   : > { %v3788_v45 = vsub.f32 %v7041_v6, %v3714_v35  ;;  %v7260_v60 = vpop.eup %5373  ;;  %5379 = vpow2.f32 %v3836_v8  ;;  %v3793_v17 = vsub.f32 %v7053_v30, %v3729_v4 }
 0x203   : > { %v3889_v6 = vsel %vm9172_vm3, %v7260_v60, 0.0 }
 0x204   : > { %v7262_v38 = vpop.eup %5375  ;;  %v3830_v31 = vmul.f32 1.442695, %v3788_v45  ;;  %v3840_v29 = vmul.f32 1.442695, %v3793_v17 }
 0x205   : > { %v3750_v58 = vpop.xlane.xlu1 %3749  ;;  %v3916_v24 = vsel %vm9172_vm3, %v7262_v38, 0.0  ;;  %v7272_v34 = vpop.eup %5377 }
 0x206   : > { %v3800_v56 = vsub.f32 %v7068_v50, %v3750_v58  ;;  %5381 = vpow2.f32 %v3830_v31  ;;  %3917 = vadd.xlane.f32.xlu1 %v3916_v24  ;;  %3899 = vadd.xlane.f32.xlu0 %v3898_v11 }
 0x207   : > { %3890 = vadd.xlane.f32.xlu2 %v3889_v6 }
 0x208   : > { %v3854_v22 = vmul.f32 1.442695, %v3800_v56  ;;  %v7274_v50 = vpop.eup %5379 }
 0x209   : > { %v3711_v30 = vpop.xlane.xlu2 %3710  ;;  %v3717_v32 = vpop.xlane.xlu0 %3716  ;;  %v3913_v9 = vsel %vm9172_vm3, %v7274_v50, 0.0 }
 0x20a   : > { %v3787_v28 = vsub.f32 %v7076_v54, %v3711_v30  ;;  %v3789_v48 = vsub.f32 %v7088_v15, %v3717_v32  ;;  %5383 = vpow2.f32 %v3854_v22  ;;  %v3910_v54 = vsel %vm9172_vm3, %v7272_v34, 0.0 }
 0x20b   : > { %5385 = vpow2.f32 %v3840_v29 }
 0x20c   : > { %v7278_v10 = vpop.eup %5381  ;;  %v3828_v44 = vmul.f32 1.442695, %v3787_v28  ;;  %v3832_v15 = vmul.f32 1.442695, %v3789_v48 }
 0x20d   : > { %v3738_v43 = vpop.xlane.xlu1 %3737  ;;  %v3904_v42 = vsel %vm9172_vm3, %v7278_v10, 0.0 }
 0x20e   : > { %v3796_v1 = vsub.f32 %v7100_v5, %v3738_v43  ;;  %5387 = vpow2.f32 %v3828_v44  ;;  %3905 = vadd.xlane.f32.xlu1 %v3904_v42  ;;  %3914 = vadd.xlane.f32.xlu0 %v3913_v9 }
 0x20f   : > { %3911 = vadd.xlane.f32.xlu2 %v3910_v54  ;;  %5389 = vpow2.f32 %v3832_v15 }
 0x210   : > { %v3846_v62 = vmul.f32 1.442695, %v3796_v1  ;;  %v7287_v2 = vpop.eup %5383 }
 0x211   : > { %v3744_v40 = vpop.xlane.xlu2 %3743  ;;  %v3732_v16 = vpop.xlane.xlu0 %3731  ;;  %v3940_v46 = vsel %vm9172_vm3, %v7287_v2, 0.0 }
 0x212   : > { %v3798_v5 = vsub.f32 %v7118_v0, %v3744_v40  ;;  %v7290_v12 = vpop.eup %5385  ;;  %5391 = vpow2.f32 %v3846_v62  ;;  %v3794_v47 = vsub.f32 %v7121_v41, %v3732_v16 }
 0x213   : > { %v3919_v0 = vsel %vm9172_vm3, %v7290_v12, 0.0 }
 0x214   : > { %v7292_v52 = vpop.eup %5387  ;;  %v3850_v33 = vmul.f32 1.442695, %v3798_v5  ;;  %v3842_v4 = vmul.f32 1.442695, %v3794_v47 }
 0x215   : > { %v3735_v53 = vpop.xlane.xlu1 %3734  ;;  %v3901_v23 = vsel %vm9172_vm3, %v7292_v52, 0.0  ;;  %v7302_v35 = vpop.eup %5389 }
 0x216   : > { %v3795_v39 = vsub.f32 %v7131_v51, %v3735_v53  ;;  %5393 = vpow2.f32 %v3850_v33  ;;  %3902 = vadd.xlane.f32.xlu1 %v3901_v23  ;;  %3941 = vadd.xlane.f32.xlu0 %v3940_v46  ;;  %9371 = vst [vmem:[#allocation47_spill] sm:$0xff] %v7302_v35  ;;  %v3907_v22 = vsel %vm9172_vm3, %v7302_v35, 0.0 }
 0x217   : > { %3920 = vadd.xlane.f32.xlu2 %v3919_v0 }
 0x218   : > { %v3844_v8 = vmul.f32 1.442695, %v3795_v39  ;;  %v7304_v51 = vpop.eup %5391 }
 0x219   : > { %v3753_v41 = vpop.xlane.xlu2 %3752  ;;  %v3747_v45 = vpop.xlane.xlu0 %3746  ;;  %v3928_v6 = vsel %vm9172_vm3, %v7304_v51, 0.0 }
 0x21a   : > { %v3801_v31 = vsub.f32 %v7153_v21, %v3753_v41  ;;  %5395 = vpow2.f32 %v3844_v8  ;;  %v3799_v56 = vsub.f32 %v7147_v37, %v3747_v45 }
 0x21b   : > { %5397 = vpow2.f32 %v3842_v4 }
 0x21c   : > { %v7307_v58 = vpop.eup %5393  ;;  %v3856_v17 = vmul.f32 1.442695, %v3801_v31  ;;  %v3852_v21 = vmul.f32 1.442695, %v3799_v56 }
 0x21d   : > { %v3756_v24 = vpop.xlane.xlu1 %3755  ;;  %v3934_v11 = vsel %vm9172_vm3, %v7307_v58, 0.0 }
 0x21e   : > { %5399 = vpow2.f32 %v3856_v17  ;;  %3935 = vadd.xlane.f32.xlu1 %v3934_v11  ;;  %3929 = vadd.xlane.f32.xlu0 %v3928_v6  ;;  %v3802_v44 = vsub.f32 %v7162_v20, %v3756_v24 }
 0x21f   : > { %3908 = vadd.xlane.f32.xlu2 %v3907_v22  ;;  %5401 = vpow2.f32 %v3852_v21 }
 0x220   : > { %v7316_v32 = vpop.eup %5395  ;;  %v3858_v20 = vmul.f32 1.442695, %v3802_v44 }
 0x221   : > { %v3741_v29 = vpop.xlane.xlu2 %3740  ;;  %v3762_v30 = vpop.xlane.xlu0 %3761  ;;  %9372 = vst [vmem:[#allocation48_spill] sm:$0xff] %v7316_v32  ;;  %v3925_v15 = vsel %vm9172_vm3, %v7316_v32, 0.0 }
 0x222   : > { %v3797_v37 = vsub.f32 %v7176_v36, %v3741_v29  ;;  %v7319_v28 = vpop.eup %5397  ;;  %v3804_v42 = vsub.f32 %v7180_v63, %v3762_v30  ;;  %v320_v29 = vld [vmem:[%s7361_s23 + $0x8] sm:$0xff]  ;;  %v321_v30 = vld [vmem:[%s7361_s23 + $0x10] sm:$0x3] }
 0x223   : > { %9373 = vst [vmem:[#allocation49_spill] sm:$0xff] %v7319_v28  ;;  %v3922_v36 = vsel %vm9172_vm3, %v7319_v28, 0.0 }
 0x224   : > { %v7321_v48 = vpop.eup %5399  ;;  %v3848_v43 = vmul.f32 1.442695, %v3797_v37  ;;  %v3862_v40 = vmul.f32 1.442695, %v3804_v42  ;;  %v1706_v42 = vrot.slane %v321_v30, 1 }
 0x225   : > { %9374 = vst [vmem:[#allocation15_spill] sm:$0xff] %v7321_v48  ;;  %v3768_v1 = vpop.xlane.xlu1 %3767  ;;  %v3943_v54 = vsel %vm9172_vm3, %v7321_v48, 0.0  ;;  %v7332_v16 = vpop.eup %5401 }
 0x226   : > { %v3806_v9 = vsub.f32 %v7183_v55, %v3768_v1  ;;  %5403 = vpow2.f32 %v3848_v43  ;;  %3944 = vadd.xlane.f32.xlu1 %v3943_v54  ;;  %3926 = vadd.xlane.f32.xlu0 %v3925_v15  ;;  %9375 = vst [vmem:[#allocation41_spill] sm:$0xff] %v7332_v16  ;;  %v3937_v23 = vsel %vm9172_vm3, %v7332_v16, 0.0  ;;  %v1704_v1 = vrot.slane %v320_v29, 1  ;;  %v319_v54 = vld [vmem:[%s7361_s23] sm:$0xff] }
 0x227   : > { %3923 = vadd.xlane.f32.xlu2 %v3922_v36 }
 0x228   : > { %v3866_v62 = vmul.f32 1.442695, %v3806_v9  ;;  %v1707_v36 = vsel %vm408_vm0, %v1704_v1, %v1706_v42 }
 0x229   : > { %v3759_v63 = vpop.xlane.xlu0 %3758  ;;  %v3774_v55 = vpop.xlane.xlu2 %3773 }
 0x22a   : > { %5405 = vpow2.f32 %v3866_v62  ;;  %v3808_v53 = vsub.f32 %v7193_v57, %v3774_v55  ;;  %v3803_v0 = vsub.f32 %v7196_v13, %v3759_v63  ;;  %v2537_v62 = vrot.slane %v320_v29, 2  ;;  %v7386_v55 = vld [vmem:[%s7361_s23 + $0x38] sm:$0xff] }
 0x22b   : > { %5407 = vpow2.f32 %v3858_v20  ;;  %v2539_v20 = vrot.slane %v321_v30, 2 }
 0x22c   : > { %v7334_v5 = vpop.eup %5403  ;;  %5409 = vpow2.f32 %v3862_v40  ;;  %v3870_v41 = vmul.f32 1.442695, %v3808_v53  ;;  %v3860_v17 = vmul.f32 1.442695, %v3803_v0  ;;  %v1703_v40 = vrot.slane %v319_v54, 1 }
 0x22d   : > { %9376 = vst [vmem:[#allocation9_spill] sm:$0xff] %v7334_v5  ;;  %v3771_v33 = vpop.xlane.xlu1 %3770  ;;  %v3931_v39 = vsel %vm9172_vm3, %v7334_v5, 0.0  ;;  %v1816_v53 = vadd.f32 %v1707_v36, %v320_v29 }
 0x22e   : > { %v3807_v47 = vsub.f32 %v7199_v7, %v3771_v33  ;;  %3932 = vadd.xlane.f32.xlu1 %v3931_v39  ;;  %v327_v33 = vld [vmem:[%s7361_s23 + $0x40] sm:$0x3]  ;;  %v1705_v0 = vsel %vm408_vm0, %v1703_v40, %v1704_v1 }
 0x22f   : > { %3938 = vadd.xlane.f32.xlu2 %v3937_v23  ;;  %v1716_v39 = vrot.slane %v327_v33, 1  ;;  %v2540_v23 = vsel %vm9173_vm2, %v2537_v62, %v2539_v20  ;;  %v2549_v29 = vrot.slane %v327_v33, 2 }
 0x230   : > { %v7342_v46 = vpop.eup %5405  ;;  %v3868_v8 = vmul.f32 1.442695, %v3807_v47  ;;  %v1714_v47 = vrot.slane %v7386_v55, 1 }
 0x231   : > { %9377 = vst [vmem:[#allocation18_spill] sm:$0xff] %v7342_v46  ;;  %v3958_v4 = vsel %vm9172_vm3, %v7342_v46, 0.0  ;;  %v3765_v57 = vpop.xlane.xlu0 %3764  ;;  %v7347_v7 = vpop.eup %5407 }
 0x232   : > { %3959 = vadd.xlane.f32.xlu0 %v3958_v4  ;;  %9378 = vst [vmem:[#allocation11_spill] sm:$0xff] %v7347_v7  ;;  %v3805_v45 = vsub.f32 %v7209_v61, %v3765_v57  ;;  %v7350_v31 = vpop.eup %5409  ;;  %5411 = vpow2.f32 %v3868_v8  ;;  %v3946_v11 = vsel %vm9172_vm3, %v7347_v7, 0.0  ;;  %v323_v4 = vld [vmem:[%s7361_s23 + $0x20] sm:$0xff]  ;;  %v2649_v57 = vadd.f32 %v2540_v23, %v1816_v53  ;;  %v7418_v23 = vld [vmem:[%s7361_s23 + $0x50] sm:$0xff] }
 0x233   : > { %9379 = vst [vmem:[#allocation13_spill] sm:$0xff] %v7350_v31  ;;  %5413 = vpow2.f32 %v3870_v41  ;;  %v3952_v6 = vsel %vm9172_vm3, %v7350_v31, 0.0  ;;  %v324_v41 = vld [vmem:[%s7361_s23 + $0x28] sm:$0x3]  ;;  %v2542_v42 = vrot.slane %v323_v4, 2 }
 0x234   : > { %v3864_v56 = vmul.f32 1.442695, %v3805_v45  ;;  %v7397_v45 = vld [vmem:[%s7361_s23 + $0x30] sm:$0xff]  ;;  %v3093_v30 = vadd.f32 %v2649_v57, %v323_v4 }
 0x235   : > { %v3777_v24 = vpop.xlane.xlu1 %3776 }
 0x236   : > { %v3809_v13 = vsub.f32 %v7211_v26, %v3777_v24  ;;  %5415 = vpow2.f32 %v3864_v56  ;;  %3947 = vadd.xlane.f32.xlu1 %v3946_v11  ;;  %v2536_v56 = vrot.slane %v319_v54, 2  ;;  %v1709_v24 = vrot.slane %v323_v4, 1 }
 0x237   : > { %5417 = vpow2.f32 %v3860_v17  ;;  %3953 = vadd.xlane.f32.xlu2 %v3952_v6  ;;  %v1815_v17 = vadd.f32 %v1705_v0, %v319_v54  ;;  %v7400_v11 = vsel %vm408_vm0, %v1714_v47, %v1716_v39  ;;  %v2547_v6 = vrot.slane %v7386_v55, 2 }
 0x238   : > { %v3872_v22 = vmul.f32 1.442695, %v3809_v13  ;;  %v7363_v61 = vpop.eup %5411  ;;  %v1711_v13 = vrot.slane %v324_v41, 1  ;;  %v2538_v33 = vsel %vm9173_vm2, %v2536_v56, %v2537_v62 }
 0x239   : > { %9380 = vst [vmem:[#allocation20_spill] sm:$0xff] %v7363_v61  ;;  %v7365_v26 = vpop.eup %5413  ;;  %v3961_v43 = vsel %vm9172_vm3, %v7363_v61, 0.0  ;;  %v7409_v36 = vsel %vm9173_vm2, %v2547_v6, %v2549_v29  ;;  %v2648_v57 = vadd.f32 %v2538_v33, %v1815_v17  ;;  %v7433_v17 = vld [vmem:[%s7361_s23 + $0x48] sm:$0xff] }
 0x23a   : > { %5419 = vpow2.f32 %v3872_v22  ;;  %9381 = vst [vmem:[#allocation28_spill] sm:$0xff] %v7365_v26  ;;  %v3964_v9 = vsel %vm9172_vm3, %v7365_v26, 0.0  ;;  %v1820_v22 = vadd.f32 %v7400_v11, %v7386_v55  ;;  %v1712_v1 = vsel %vm408_vm0, %v1709_v24, %v1711_v13 }
 0x23b   : > { %v3210_v20 = vadd.f32 %v3093_v30, %v1712_v1  ;;  %v330_v30 = vld [vmem:[%s7361_s23 + $0x58] sm:$0x3] }
 0x23c   : > { %v7367_v21 = vpop.eup %5415  ;;  %v2653_v39 = vadd.f32 %v7409_v36, %v1820_v22  ;;  %v1721_v33 = vrot.slane %v330_v30, 1 }
 0x23d   : > { %9382 = vst [vmem:[#allocation32_spill] sm:$0xff] %v7367_v21  ;;  %v7371_v37 = vpop.eup %5417  ;;  %v3955_v44 = vsel %vm9172_vm3, %v7367_v21, 0.0 }
 0x23e   : > { %9383 = vst [vmem:[#allocation35_spill] sm:$0xff] %v7371_v37  ;;  %3956 = vadd.xlane.f32.xlu0 %v3955_v44  ;;  %3962 = vadd.xlane.f32.xlu1 %v3961_v43  ;;  %v3949_v63 = vsel %vm9172_vm3, %v7371_v37, 0.0  ;;  %v322_v44 = vld [vmem:[%s7361_s23 + $0x18] sm:$0xff]  ;;  %v1713_v43 = vrot.slane %v7397_v45, 1  ;;  %v3097_v22 = vadd.f32 %v2653_v39, %v7418_v23 }
 0x23f   : > { %3965 = vadd.xlane.f32.xlu2 %v3964_v9  ;;  %v2544_v9 = vrot.slane %v324_v41, 2  ;;  %v1708_v54 = vrot.slane %v322_v44, 1  ;;  %v2546_v41 = vrot.slane %v7397_v45, 2  ;;  %v3092_v56 = vadd.f32 %v2648_v57, %v322_v44 }
 0x240   : > { %v7380_v15 = vpop.eup %5419  ;;  %v7412_v40 = vsel %vm408_vm0, %v1713_v43, %v1714_v47  ;;  %v1818_v43 = vadd.f32 %v1712_v1, %v323_v4  ;;  %v2552_v4 = vrot.slane %v7418_v23, 2  ;;  %v2554_v1 = vrot.slane %v330_v30, 2 }
 0x241   : > { %9384 = vst [vmem:[#allocation43_spill] sm:$0xff] %v7380_v15  ;;  %v3967_v8 = vsel %vm9172_vm3, %v7380_v15, 0.0  ;;  %v2545_v53 = vsel %vm9173_vm2, %v2542_v42, %v2544_v9  ;;  %v1710_v13 = vsel %vm408_vm0, %v1708_v54, %v1709_v24  ;;  %v1819_v47 = vadd.f32 %v7412_v40, %v7397_v45 }
 0x242   : > { %v3322_v0 = vadd.f32 %v3210_v20, %v2545_v53  ;;  %v3209_v24 = vadd.f32 %v3092_v56, %v1710_v13  ;;  %v1719_v54 = vrot.slane %v7418_v23, 1  ;;  %v1817_v39 = vadd.f32 %v1710_v13, %v322_v44 }
 0x244   : > { %v3421_v62 = vadd.f32 %v3322_v0, %v7386_v55 }
 0x246   : > { %3968 = vadd.xlane.f32.xlu0 %v3967_v8  ;;  %v2541_v8 = vrot.slane %v322_v44, 2  ;;  %v3538_v9 = vadd.f32 %v3421_v62, %v7400_v11  ;;  %v333_v44 = vld [vmem:[%s7361_s23 + $0x70] sm:$0x3] }
 0x247   : > { %3950 = vadd.xlane.f32.xlu2 %v3949_v63  ;;  %v7426_v63 = vsel %vm9173_vm2, %v2546_v41, %v2547_v6  ;;  %v2651_v6 = vadd.f32 %v2545_v53, %v1818_v43  ;;  %v7445_v43 = vld [vmem:[%s7361_s23 + $0x68] sm:$0xff] }
 0x248   : > { %v2543_v29 = vsel %vm9173_vm2, %v2541_v8, %v2542_v42  ;;  %v2652_v20 = vadd.f32 %v7426_v63, %v1819_v47  ;;  %v3650_v0 = vadd.f32 %v3538_v9, %v7409_v36  ;;  %v1722_v42 = vsel %vm408_vm0, %v1719_v54, %v1721_v33 }
 0x249   : > { %v3321_v41 = vadd.f32 %v3209_v24, %v2543_v29  ;;  %v1718_v8 = vrot.slane %v7433_v17, 1  ;;  %v3095_v57 = vadd.f32 %v2651_v6, %v7386_v55  ;;  %v2650_v47 = vadd.f32 %v2543_v29, %v1817_v39 }
 0x24a   : > { %4470 = vmatpush.msra.mxu1 %v3650_v0  ;;  %v3214_v56 = vadd.f32 %v3097_v22, %v1722_v42  ;;  %v3096_v53 = vadd.f32 %v2652_v20, %v7433_v17  ;;  %v1822_v13 = vadd.f32 %v1722_v42, %v7418_v23  ;;  %v2555_v9 = vsel %vm9173_vm2, %v2552_v4, %v2554_v1  ;;  %v7455_v0 = vld [vmem:[%s7361_s23 + $0x60] sm:$0xff] }
 0x24b   : > { %v3420_v62 = vadd.f32 %v3321_v41, %v7397_v45  ;;  %v1724_v24 = vrot.slane %v7445_v43, 1  ;;  %v1720_v55 = vsel %vm408_vm0, %v1718_v8, %v1719_v54  ;;  %v2551_v29 = vrot.slane %v7433_v17, 2 }
 0x24c   : > { %v1726_v33 = vrot.slane %v333_v44, 1  ;;  %v2655_v6 = vadd.f32 %v2555_v9, %v1822_v13  ;;  %v3326_v22 = vadd.f32 %v3214_v56, %v2555_v9  ;;  %v1821_v20 = vadd.f32 %v1720_v55, %v7433_v17 }
 0x24d   : > { %v3537_v30 = vadd.f32 %v3420_v62, %v7412_v40  ;;  %v3212_v39 = vadd.f32 %v3095_v57, %v7400_v11  ;;  %v3094_v41 = vadd.f32 %v2650_v47, %v7397_v45  ;;  %v2557_v62 = vrot.slane %v7445_v43, 2 }
 0x24e   : > { %v7463_v54 = vsel %vm408_vm0, %v1724_v24, %v1726_v33  ;;  %v2559_v8 = vrot.slane %v333_v44, 2  ;;  %v3099_v13 = vadd.f32 %v2655_v6, %v7445_v43  ;;  %v3425_v56 = vadd.f32 %v3326_v22, %v7445_v43  ;;  %v7477_v22 = vld [vmem:[%s7361_s23 + $0x80] sm:$0xff] }
 0x24f   : > { %v3649_v1 = vadd.f32 %v3537_v30, %v7426_v63  ;;  %v1723_v15 = vrot.slane %v7455_v0, 1  ;;  %v2553_v11 = vsel %vm9173_vm2, %v2551_v29, %v2552_v4  ;;  %v3324_v44 = vadd.f32 %v3212_v39, %v7409_v36 }
 0x250   : > { %v7470_v45 = vsel %vm9173_vm2, %v2557_v62, %v2559_v8  ;;  %v3216_v57 = vadd.f32 %v3099_v13, %v7463_v54  ;;  %v3542_v47 = vadd.f32 %v3425_v56, %v7463_v54  ;;  %v2654_v30 = vadd.f32 %v2553_v11, %v1821_v20  ;;  %v336_v8 = vld [vmem:[%s7361_s23 + $0x88] sm:$0x3] }
 0x251   : > { %4471 = vmatpush.msra.mxu1 %v3649_v1  ;;  %v3211_v33 = vadd.f32 %v3094_v41, %v7412_v40  ;;  %v3213_v6 = vadd.f32 %v3096_v53, %v1720_v55  ;;  %v2556_v4 = vrot.slane %v7455_v0, 2  ;;  %v7484_v13 = vsel %vm408_vm0, %v1723_v15, %v1724_v24 }
 0x252   : > { %v3328_v1 = vadd.f32 %v3216_v57, %v7470_v45  ;;  %v3654_v61 = vadd.f32 %v3542_v47, %v7470_v45  ;;  %v3098_v20 = vadd.f32 %v2654_v30, %v7455_v0  ;;  %v1729_v36 = vrot.slane %v7477_v22, 1 }
 0x253   : > { %v3325_v29 = vadd.f32 %v3213_v6, %v2553_v11  ;;  %v1731_v40 = vrot.slane %v336_v8, 1  ;;  %v3323_v39 = vadd.f32 %v3211_v33, %v7426_v63  ;;  %v3423_v56 = vadd.f32 %v3324_v44, %v7418_v23 }
 0x254   : > { %4528 = vmatpush.msrb.mxu3 %v3654_v61  ;;  %v3427_v57 = vadd.f32 %v3328_v1, %v7477_v22  ;;  %v7493_v61 = vsel %vm9173_vm2, %v2556_v4, %v2557_v62  ;;  %v3215_v30 = vadd.f32 %v3098_v20, %v7484_v13  ;;  %v2562_v63 = vrot.slane %v7477_v22, 2 }
 0x255   : > { %v3424_v41 = vadd.f32 %v3325_v29, %v7455_v0  ;;  %v3540_v24 = vadd.f32 %v3423_v56, %v1722_v42  ;;  %v7497_v47 = vsel %vm408_vm0, %v1729_v36, %v1731_v40  ;;  %v2564_v33 = vrot.slane %v336_v8, 2  ;;  %v7508_v42 = vld [vmem:[%s7361_s23 + $0x78] sm:$0xff] }
 0x256   : > { %v3544_v6 = vadd.f32 %v3427_v57, %v7497_v47  ;;  %v3422_v1 = vadd.f32 %v3323_v39, %v7433_v17  ;;  %v1728_v17 = vrot.slane %v7508_v42, 1 }
 0x257   : > { %v3541_v15 = vadd.f32 %v3424_v41, %v7484_v13  ;;  %v3652_v44 = vadd.f32 %v3540_v24, %v2555_v9  ;;  %v7505_v4 = vsel %vm9173_vm2, %v2562_v63, %v2564_v33  ;;  %v3327_v9 = vadd.f32 %v3215_v30, %v7493_v61 }
 0x258   : > { %v3656_v20 = vadd.f32 %v3544_v6, %v7505_v4  ;;  %v3539_v8 = vadd.f32 %v3422_v1, %v1720_v55  ;;  %v2561_v33 = vrot.slane %v7508_v42, 2 }
 0x259   : > { %v3653_v23 = vadd.f32 %v3541_v15, %v7493_v61  ;;  %4499 = vmatpush.msrb.mxu2 %v3652_v44 }
 0x25a   : > { %4557 = vmatpush.msra.mxu0 %v3656_v20  ;;  %v3651_v41 = vadd.f32 %v3539_v8, %v2553_v11  ;;  %v7520_v11 = vsel %vm408_vm0, %v1728_v17, %v1729_v36 }
 0x25b   : > { %4529 = vmatpush.msrb.mxu3 %v3653_v23  ;;  %v3426_v23 = vadd.f32 %v3327_v9, %v7508_v42 }
 0x25c   : > { %4500 = vmatpush.msrb.mxu2 %v3651_v41  ;;  %v7525_v41 = vsel %vm9173_vm2, %v2561_v33, %v2562_v63 }
 0x25d   : > { %v3876_v53 = vpop.xlane.xlu2 %3875 }
 0x25e   : > { %5421 = vrcp.f32 %v3876_v53  ;;  %v3979_v56 = vand.u32 2147483647, %v3876_v53  ;;  %v3981_v57 = vand.u32 2147483648, %v3876_v53  ;;  %vm3975_vm5 = vweird.f32 %v3876_v53 }
 0x260   : > { %vm3980_vm6 = vcmp.eq.f32.partialorder %v3979_v56, 8.507059e+37  ;;  %v3982_v1 = vor.u32 1.1754944e-38, %v3981_v57 }
 0x261   : > { %v3888_v62 = vpop.xlane.xlu0 %3887 }
 0x262   : > { %5423 = vrcp.f32 %v3888_v62  ;;  %v4039_v8 = vand.u32 2147483647, %v3888_v62  ;;  %v4041_v9 = vand.u32 2147483648, %v3888_v62  ;;  %vm4035_vm9 = vweird.f32 %v3888_v62 }
 0x264   : > { %v5422_v29 = vpop.eup %5421  ;;  %v4042_v33 = vor.u32 1.1754944e-38, %v4041_v9  ;;  %vm4040_vm11 = vcmp.eq.f32.partialorder %v4039_v8, 8.507059e+37 }
 0x265   : > { %v3971_v40 = vmul.f32 %v5422_v29, %v3876_v53  ;;  %vm3976_vm4 = vweird.f32 %v5422_v29  ;;  %v1826_v53 = vadd.f32 %v7497_v47, %v7477_v22 }
 0x266   : > { %vm3977_vm7 = vmor %vm3975_vm5, %vm3976_vm4 }
 0x267   : > { %v3972_v39 = vsub.f32 1.0, %v3971_v40 }
 0x268   : > { %v5424_v15 = vpop.eup %5423 }
 0x269   : > { %v3973_v24 = vmul.f32 %v5422_v29, %v3972_v39  ;;  %v4031_v44 = vmul.f32 %v5424_v15, %v3888_v62  ;;  %v7515_v55 = vpop.xlane.xlu2 %3881  ;;  %v7517_v6 = vpop.xlane.xlu0 %3893  ;;  %v3543_v39 = vadd.f32 %v3426_v23, %v7520_v11  ;;  %vm4036_vm8 = vweird.f32 %v5424_v15 }
 0x26a   : > { %5425 = vrcp.f32 %v7515_v55  ;;  %vm4037_vm10 = vmor %vm4035_vm9, %vm4036_vm8  ;;  %v4009_v8 = vand.u32 2147483647, %v7515_v55  ;;  %vm4005_vm14 = vweird.f32 %v7515_v55  ;;  %vm4065_vm4 = vweird.f32 %v7517_v6 }
 0x26b   : > { %v3974_v30 = vadd.f32 %v5422_v29, %v3973_v24  ;;  %v4032_v20 = vsub.f32 1.0, %v4031_v44  ;;  %5427 = vrcp.f32 %v7517_v6  ;;  %v7532_v24 = vadd.f32 %v7505_v4, %v1826_v53 }
 0x26c   : > { %v3655_v23 = vadd.f32 %v3543_v39, %v7525_v41  ;;  %v4011_v39 = vand.u32 2147483648, %v7515_v55  ;;  %vm4010_vm5 = vcmp.eq.f32.partialorder %v4009_v8, 8.507059e+37 }
 0x26d   : > { %v3978_v40 = vsel %vm3977_vm7, %v5422_v29, %v3974_v30  ;;  %v4033_v17 = vmul.f32 %v5424_v15, %v4032_v20  ;;  %v1825_v29 = vadd.f32 %v7520_v11, %v7508_v42 }
 0x26e   : > { %v3983_v36 = vsel %vm3980_vm6, %v3982_v1, %v3978_v40  ;;  %4558 = vmatpush.msra.mxu0 %v3655_v23 }
 0x26f   : > { %v3984_v56 = vmul.f32 %v7220_v19, %v3983_v36  ;;  %v4034_v57 = vadd.f32 %v5424_v15, %v4033_v17 }
 0x270   : > { %v5426_v63 = vpop.eup %5425 }
 0x271   : > { %5311 = vmatmul.msk.f32.vlgmr.msra.gmra.mxu1 %vm9172_vm3, %v3984_v56  ;;  %v5428_v44 = vpop.eup %5427  ;;  %v4038_v30 = vsel %vm4037_vm10, %v5424_v15, %v4034_v57  ;;  %v4001_v19 = vmul.f32 %v5426_v63, %v7515_v55  ;;  %v7539_v1 = vpop.xlane.xlu0 %3896  ;;  %v1824_v15 = vadd.f32 %v7463_v54, %v7445_v43  ;;  %vm4006_vm12 = vweird.f32 %v5426_v63 }
 0x272   : > { %v4043_v62 = vsel %vm4040_vm11, %v4042_v33, %v4038_v30  ;;  %v4061_v20 = vmul.f32 %v5428_v44, %v7517_v6  ;;  %v7542_v40 = vpop.xlane.xlu2 %3878  ;;  %v7544_v36 = vpop.xlane.xlu1 %3884  ;;  %v4071_v57 = vand.u32 2147483648, %v7517_v6  ;;  %vm4066_vm13 = vweird.f32 %v5428_v44  ;;  %vm4007_vm15 = vmor %vm4005_vm14, %vm4006_vm12 }
 0x273   : > { %v4044_v9 = vmul.f32 %v7225_v59, %v4043_v62  ;;  %v4002_v17 = vsub.f32 1.0, %v4001_v19  ;;  %5429 = vrcp.f32 %v7542_v40  ;;  %v4069_v33 = vand.u32 2147483647, %v7517_v6  ;;  %vm4067_vm6 = vmor %vm4065_vm4, %vm4066_vm13 }
 0x274   : > { %v4062_v53 = vsub.f32 1.0, %v4061_v20  ;;  %5431 = vrcp.f32 %v7539_v1  ;;  %v4012_v54 = vor.u32 1.1754944e-38, %v4011_v39  ;;  %v7560_v30 = vadd.f32 %v7525_v41, %v1825_v29 }
 0x275   : > { %v4003_v56 = vmul.f32 %v5426_v63, %v4002_v17  ;;  %5433 = vrcp.f32 %v7544_v36  ;;  %5315 = vmatmul.msk.f32.vlgmr.msrb.gmra.mxu3 %vm9172_vm3, %v4044_v9  ;;  %v4072_v20 = vor.u32 1.1754944e-38, %v4071_v57  ;;  %v2657_v9 = vadd.f32 %v7470_v45, %v1824_v15 }
 0x276   : > { %v4063_v59 = vmul.f32 %v5428_v44, %v4062_v53  ;;  %vm4070_vm7 = vcmp.eq.f32.partialorder %v4069_v33, 8.507059e+37  ;;  %v1823_v39 = vadd.f32 %v7484_v13, %v7455_v0  ;;  %vm3990_vm9 = vweird.f32 %v7542_v40 }
 0x277   : > { %v4004_v43 = vadd.f32 %v5426_v63, %v4003_v56  ;;  %v3101_v13 = vadd.f32 %v2657_v9, %v7477_v22  ;;  %vm4020_vm13 = vweird.f32 %v7544_v36 }
 0x278   : > { %v4064_v23 = vadd.f32 %v5428_v44, %v4063_v59 }
 0x279   : > { %v7562_v19 = vpop.eup %5429  ;;  %v4008_v62 = vsel %vm4007_vm15, %v5426_v63, %v4004_v43  ;;  %v3218_v22 = vadd.f32 %v3101_v13, %v7497_v47  ;;  %vm4080_vm15 = vweird.f32 %v7539_v1 }
 0x27a   : > { %v7565_v17 = vpop.eup %5431  ;;  %v4013_v53 = vsel %vm4010_vm5, %v4012_v54, %v4008_v62  ;;  %v4068_v55 = vsel %vm4067_vm6, %v5428_v44, %v4064_v23  ;;  %v7569_v6 = vpop.xlane.xlu2 %3890  ;;  %v3986_v8 = vmul.f32 %v7562_v19, %v7542_v40  ;;  %v7597_v23 = vld [vmem:[%s7361_s23 + $0x98] sm:$0xff]  ;;  %v7601_v62 = vld [vmem:[%s7361_s23 + $0xa0] sm:$0x3]  ;;  %vm3991_vm8 = vweird.f32 %v7562_v19 }
 0x27b   : > { %v7571_v29 = vpop.eup %5433  ;;  %v4014_v56 = vmul.f32 %v7234_v14, %v4013_v53  ;;  %v4073_v63 = vsel %vm4070_vm7, %v4072_v20, %v4068_v55  ;;  %v4076_v0 = vmul.f32 %v7565_v17, %v7539_v1  ;;  %v2656_v14 = vadd.f32 %v7493_v61, %v1823_v39  ;;  %v7584_v44 = vpop.xlane.xlu0 %3899  ;;  %v7606_v53 = vld [vmem:[%s7361_s23 + $0xb0] sm:$0xff]  ;;  %vm7632_vm11 = vmor %vm3990_vm9, %vm3991_vm8 }
 0x27c   : > { %v4074_v45 = vmul.f32 %v7230_v27, %v4073_v63  ;;  %v4016_v15 = vmul.f32 %v7571_v29, %v7544_v36  ;;  %v3987_v27 = vsub.f32 1.0, %v3986_v8  ;;  %v7587_v57 = vpop.xlane.xlu1 %3917  ;;  %5435 = vrcp.f32 %v7584_v44 }
 0x27d   : > { %5313 = vmatmul.msk.f32.vlgmr.msrb.gmra.mxu2 %vm9172_vm3, %v4014_v56  ;;  %v4077_v33 = vsub.f32 1.0, %v4076_v0  ;;  %v3100_v43 = vadd.f32 %v2656_v14, %v7508_v42  ;;  %5437 = vrcp.f32 %v7587_v57  ;;  %v3996_v20 = vand.u32 2147483648, %v7542_v40 }
 0x27e   : > { %5317 = vmatmul.msk.f32.vlgmr.msra.gmra.mxu0 %vm9172_vm3, %v4074_v45  ;;  %v4017_v59 = vsub.f32 1.0, %v4016_v15  ;;  %v3988_v61 = vmul.f32 %v7562_v19, %v3987_v27  ;;  %v7610_v47 = vadd.f32 %v3218_v22, %v7505_v4  ;;  %v3994_v15 = vand.u32 2147483647, %v7542_v40 }
 0x27f   : > { %v4078_v42 = vmul.f32 %v7565_v17, %v4077_v33  ;;  %v3217_v55 = vadd.f32 %v3100_v43, %v7520_v11  ;;  %v4086_v4 = vand.u32 2147483648, %v7539_v1  ;;  %v3997_v0 = vor.u32 1.1754944e-38, %v3996_v20 }
 0x280   : > { %v4018_v9 = vmul.f32 %v7571_v29, %v4017_v59  ;;  %v3989_v56 = vadd.f32 %v7562_v19, %v3988_v61  ;;  %vm4021_vm10 = vweird.f32 %v7571_v29  ;;  %v4026_v14 = vand.u32 2147483648, %v7544_v36 }
 0x281   : > { %v4079_v40 = vadd.f32 %v7565_v17, %v4078_v42  ;;  %vm4081_vm12 = vweird.f32 %v7565_v17  ;;  %v4024_v22 = vand.u32 2147483647, %v7544_v36  ;;  %vm3995_vm14 = vcmp.eq.f32.partialorder %v3994_v15, 8.507059e+37  ;;  %vm7652_vm4 = vmor %vm4020_vm13, %vm4021_vm10 }
 0x282   : > { %v7593_v54 = vpop.xlane.xlu2 %3911  ;;  %v7613_v39 = vpop.eup %5435  ;;  %v4019_v13 = vadd.f32 %v7571_v29, %v4018_v9  ;;  %v3993_v20 = vsel %vm7632_vm11, %v7562_v19, %v3989_v56  ;;  %v4084_v9 = vand.u32 2147483647, %v7539_v1  ;;  %vm7659_vm5 = vmor %vm4080_vm15, %vm4081_vm12  ;;  %v7665_v19 = vadd.f32 %v7532_v24, %v7597_v23 }
 0x283   : > { %5439 = vrcp.f32 %v7593_v54  ;;  %v7619_v45 = vpop.eup %5437  ;;  %v7628_v27 = vpop.xlane.xlu0 %3914  ;;  %v4091_v43 = vmul.f32 %v7613_v39, %v7584_v44  ;;  %v3998_v56 = vsel %vm3995_vm14, %v3997_v0, %v3993_v20  ;;  %v4087_v33 = vor.u32 1.1754944e-38, %v4086_v4 }
 0x284   : > { %5441 = vrcp.f32 %v7569_v6  ;;  %v4181_v61 = vmul.f32 %v7619_v45, %v7587_v57  ;;  %v7657_v36 = vpop.xlane.xlu1 %3905  ;;  %v4023_v15 = vsel %vm7652_vm4, %v7571_v29, %v4019_v13  ;;  %v4027_v63 = vor.u32 1.1754944e-38, %v4026_v14 }
 0x285   : > { %5443 = vrcp.f32 %v7628_v27  ;;  %v4092_v8 = vsub.f32 1.0, %v4091_v43  ;;  %v4083_v37 = vsel %vm7659_vm5, %v7565_v17, %v4079_v40  ;;  %vm4025_vm6 = vcmp.eq.f32.partialorder %v4024_v22, 8.507059e+37 }
 0x286   : > { %v4182_v21 = vsub.f32 1.0, %v4181_v61  ;;  %5445 = vrcp.f32 %v7657_v36  ;;  %v3999_v24 = vmul.f32 %v7248_v49, %v3998_v56  ;;  %vm4085_vm7 = vcmp.eq.f32.partialorder %v4084_v9, 8.507059e+37 }
 0x287   : > { %v4056_v0 = vand.u32 2147483648, %v7569_v6  ;;  %v4099_v29 = vand.u32 2147483647, %v7584_v44  ;;  %v4028_v4 = vsel %vm4025_vm6, %v4027_v63, %v4023_v15  ;;  %v7682_v13 = vadd.f32 %v3217_v55, %v7525_v41 }
 0x288   : > { %5312 = vmatmul.msk.f32.gmra.mxu1 %vm9172_vm3, %v3999_v24  ;;  %v4029_v17 = vmul.f32 %v7246_v18, %v4028_v4  ;;  %v4088_v11 = vsel %vm4085_vm7, %v4087_v33, %v4083_v37  ;;  %v4093_v43 = vmul.f32 %v7613_v39, %v4092_v8  ;;  %v4101_v22 = vand.u32 2147483648, %v7584_v44 }
 0x289   : > { %v7630_v59 = vpop.eup %5439  ;;  %v4089_v63 = vmul.f32 %v7242_v25, %v4088_v11  ;;  %vm4095_vm8 = vweird.f32 %v7584_v44  ;;  %v4183_v55 = vmul.f32 %v7619_v45, %v4182_v21  ;;  %v4189_v18 = vand.u32 2147483647, %v7587_v57  ;;  %v7711_v21 = vld [vmem:[%s7361_s23 + $0x90] sm:$0xff] }
 0x28a   : > { %v4151_v1 = vmul.f32 %v7630_v59, %v7593_v54  ;;  %v7677_v26 = vpop.eup %5441  ;;  %5314 = vmatmul.msk.f32.gmra.mxu2 %vm9172_vm3, %v4029_v17  ;;  %v7698_v37 = vor.u32 1.1754944e-38, %v4056_v0  ;;  %vm7700_vm9 = vcmp.eq.f32.partialorder %v4099_v29, 8.507059e+37  ;;  %v4191_v8 = vand.u32 2147483648, %v7587_v57 }
 0x28b   : > { %v7686_v40 = vpop.eup %5443  ;;  %v4046_v41 = vmul.f32 %v7677_v26, %v7569_v6  ;;  %v4159_v25 = vand.u32 2147483647, %v7593_v54  ;;  %5318 = vmatmul.msk.f32.gmra.mxu0 %vm9172_vm3, %v4089_v63  ;;  %vm4185_vm10 = vweird.f32 %v7587_v57  ;;  %v4161_v42 = vand.u32 2147483648, %v7593_v54  ;;  %v342_v63 = vld [vmem:[%s7361_s23 + $0xb8] sm:$0x3] }
 0x28c   : > { %v4152_v14 = vsub.f32 1.0, %v4151_v1  ;;  %v7707_v20 = vpop.eup %5445  ;;  %v4166_v1 = vmul.f32 %v7686_v40, %v7628_v27  ;;  %v4094_v56 = vadd.f32 %v7613_v39, %v4093_v43  ;;  %vm4096_vm11 = vweird.f32 %v7613_v39  ;;  %v7880_v5 = vpop.xlane.xlu1 %3902 }
 0x28d   : > { %v4102_v15 = vor.u32 1.1754944e-38, %v4101_v22  ;;  %v7721_v33 = vadd.f32 %v7560_v30, %v7711_v21  ;;  %v4047_v24 = vsub.f32 1.0, %v4046_v41  ;;  %v4184_v0 = vadd.f32 %v7619_v45, %v4183_v55  ;;  %vm7738_vm4 = vmor %vm4095_vm8, %vm4096_vm11 }
 0x28e   : > { %v4153_v9 = vmul.f32 %v7630_v59, %v4152_v14  ;;  %vm4186_vm12 = vweird.f32 %v7619_v45  ;;  %vm7725_vm13 = vcmp.eq.f32.partialorder %v4189_v18, 8.507059e+37  ;;  %v4192_v4 = vor.u32 1.1754944e-38, %v4191_v8 }
 0x28f   : > { %vm4155_vm14 = vweird.f32 %v7593_v54  ;;  %vm7730_vm15 = vcmp.eq.f32.partialorder %v4159_v25, 8.507059e+37  ;;  %v4121_v30 = vmul.f32 %v7707_v20, %v7657_v36  ;;  %vm4156_vm5 = vweird.f32 %v7630_v59  ;;  %vm7750_vm6 = vmor %vm4185_vm10, %vm4186_vm12 }
 0x290   : > { %v4154_v11 = vadd.f32 %v7630_v59, %v4153_v9  ;;  %v4162_v43 = vor.u32 1.1754944e-38, %v4161_v42  ;;  %v4167_v22 = vsub.f32 1.0, %v4166_v1  ;;  %v4098_v41 = vsel %vm7738_vm4, %v7613_v39, %v4094_v56  ;;  %v7762_v42 = vpop.xlane.xlu0 %3941  ;;  %vm7768_vm7 = vmor %vm4155_vm14, %vm4156_vm5 }
 0x291   : > { %v9158_v18 = vrot.slane %v7597_v23, 2  ;;  %v2569_v8 = vrot.slane %v7601_v62, 2  ;;  %v4048_v25 = vmul.f32 %v7677_v26, %v4047_v24  ;;  %v4188_v9 = vsel %vm7750_vm6, %v7619_v45, %v4184_v0 }
 0x292   : > { %v4176_v39 = vand.u32 2147483648, %v7628_v27  ;;  %v3429_v57 = vadd.f32 %v7610_v47, %v7597_v23  ;;  %v4122_v56 = vsub.f32 1.0, %v4121_v30  ;;  %v4131_v24 = vand.u32 2147483648, %v7657_v36 }
 0x293   : > { %v9403_v17 = vrot.slane %v7601_v62, 1  ;;  %v9404_v45 = vrot.slane %v7597_v23, 1  ;;  %v1741_v55 = vrot.slane %v342_v63, 1  ;;  %v4103_v47 = vsel %vm7700_vm9, %v4102_v15, %v4098_v41  ;;  %v345_v41 = vld [vmem:[%s7361_s23 + $0xd0] sm:$0x3] }
 0x294   : > { %v4158_v54 = vsel %vm7768_vm7, %v7630_v59, %v4154_v11  ;;  %v4168_v30 = vmul.f32 %v7686_v40, %v4167_v22  ;;  %v4193_v49 = vsel %vm7725_vm13, %v4192_v4, %v4188_v9  ;;  %5447 = vrcp.f32 %v7762_v42  ;;  %v7805_v22 = vld [vmem:[%s7361_s23 + $0xc8] sm:$0xff] }
 0x295   : > { %v1737_v0 = vsel %vm408_vm0, %v9404_v45, %v9403_v17  ;;  %v7790_v62 = vsel %vm9173_vm2, %v9158_v18, %v2569_v8  ;;  %v9405_v61 = vrot.slane %v7606_v53, 1  ;;  %v7798_v59 = vadd.f32 %v7677_v26, %v4048_v25  ;;  %v7816_v25 = vpop.xlane.xlu2 %3920  ;;  %v7838_v45 = vld [vmem:[%s7361_s23 + $0xa8] sm:$0xff] }
 0x296   : > { %v3546_v44 = vadd.f32 %v3429_v57, %v1737_v0  ;;  %v7800_v11 = vor.u32 1.1754944e-38, %v4176_v39  ;;  %v7809_v8 = vmul.f32 %v7257_v3, %v4103_v47  ;;  %v4163_v9 = vsel %vm7730_vm15, %v4162_v43, %v4158_v54 }
 0x297   : > { %v7795_v15 = vsel %vm408_vm0, %v9405_v61, %v1741_v55  ;;  %v4123_v57 = vmul.f32 %v7707_v20, %v4122_v56  ;;  %v7814_v1 = vor.u32 1.1754944e-38, %v4131_v24  ;;  %v7819_v39 = vmul.f32 %v7262_v38, %v4193_v49 }
 0x298   : > { %v3658_v4 = vadd.f32 %v3546_v44, %v7790_v62  ;;  %vm4126_vm8 = vweird.f32 %v7707_v20  ;;  %v1830_v3 = vadd.f32 %v7795_v15, %v7606_v53  ;;  %v9159_v44 = vrot.slane %v7606_v53, 2 }
 0x299   : > { %vm4051_vm9 = vweird.f32 %v7677_v26  ;;  %v7827_v14 = vadd.f32 %v7686_v40, %v4168_v30  ;;  %vm4125_vm10 = vweird.f32 %v7657_v36  ;;  %v9162_v43 = vrot.slane %v7805_v22, 1 }
 0x29a   : > { %4586 = vmatpush.msrb.mxu1 %v3658_v4  ;;  %v1746_v38 = vrot.slane %v345_v41, 1  ;;  %v2574_v49 = vrot.slane %v342_v63, 2  ;;  %v7832_v56 = vmul.f32 %v7272_v34, %v4163_v9  ;;  %5449 = vrcp.f32 %v7816_v25  ;;  %v7840_v55 = vpop.eup %5447  ;;  %v7855_v4 = vld [vmem:[%s7361_s23 + $0xe0] sm:$0xff]  ;;  %v348_v9 = vld [vmem:[%s7361_s23 + $0xe8] sm:$0x3]  ;;  %vm7913_vm13 = vmor %vm4125_vm10, %vm4126_vm8 }
 0x29b   : > { %v4206_v17 = vand.u32 2147483648, %v7816_v25  ;;  %vm4050_vm11 = vweird.f32 %v7569_v6  ;;  %v7844_v47 = vadd.f32 %v7707_v20, %v4123_v57  ;;  %v2579_v54 = vrot.slane %v345_v41, 2 }
 0x29c   : > { %v7849_v34 = vsel %vm9173_vm2, %v9159_v44, %v2574_v49  ;;  %v1828_v61 = vadd.f32 %v1737_v0, %v7597_v23  ;;  %v1733_v57 = vrot.slane %v7711_v21, 1  ;;  %v9406_v29 = vand.u32 2147483647, %v7569_v6  ;;  %vm4052_vm14 = vmor %vm4050_vm11, %vm4051_vm9 }
 0x29d   : > { %v2663_v24 = vadd.f32 %v7849_v34, %v1830_v3  ;;  %v4311_v49 = vand.u32 2147483648, %v7762_v42  ;;  %v7870_v41 = vsel %vm408_vm0, %v9162_v43, %v1746_v38  ;;  %v1738_v30 = vrot.slane %v7838_v45, 1 }
 0x29e   : > { %vm7862_vm12 = vcmp.eq.f32.partialorder %v9406_v29, 8.507059e+37  ;;  %v2566_v44 = vrot.slane %v7711_v21, 2  ;;  %v4301_v3 = vmul.f32 %v7840_v55, %v7762_v42  ;;  %v3220_v63 = vadd.f32 %v7665_v19, %v1737_v0 }
 0x29f   : > { %v3107_v29 = vadd.f32 %v2663_v24, %v7805_v22  ;;  %v3428_v16 = vadd.f32 %v7682_v13, %v7711_v21  ;;  %v1751_v43 = vrot.slane %v348_v9, 1  ;;  %v9409_v32 = vrot.slane %v7805_v22, 2 }
 0x2a0   : > { %v9410_v31 = vrot.slane %v7597_v23, 1  ;;  %v7891_v0 = vpop.eup %5449  ;;  %v2661_v24 = vadd.f32 %v7790_v62, %v1828_v61  ;;  %v9411_v48 = vrot.slane %v7606_v53, 1  ;;  %v7900_v35 = vor.u32 1.1754944e-38, %v4206_v17 }
 0x2a1   : > { %v7886_v7 = vsel %vm9173_vm2, %v9409_v32, %v2579_v54  ;;  %v3224_v13 = vadd.f32 %v3107_v29, %v7870_v41  ;;  %v9170_v32 = vrot.slane %v7855_v4, 2  ;;  %v2584_v54 = vrot.slane %v348_v9, 2 }
 0x2a2   : > { %v1735_v19 = vsel %vm408_vm0, %v1733_v57, %v9410_v31  ;;  %v7898_v38 = vsel %vm408_vm0, %v1738_v30, %v9411_v48  ;;  %v9412_v28 = vrot.slane %v7597_v23, 2  ;;  %v7907_v57 = vld [vmem:[%s7361_s23 + $0xc0] sm:$0xff]  ;;  %5451 = vrcp.f32 %v7880_v5 }
 0x2a3   : > { %v3545_v46 = vadd.f32 %v3428_v16, %v1735_v19  ;;  %v3332_v48 = vadd.f32 %v3220_v63, %v7790_v62  ;;  %v3336_v17 = vadd.f32 %v3224_v13, %v7886_v7  ;;  %v4302_v23 = vsub.f32 1.0, %v4301_v3 }
 0x2a4   : > { %v2568_v31 = vsel %vm9173_vm2, %v2566_v44, %v9412_v28  ;;  %v4128_v28 = vsel %vm7913_vm13, %v7707_v20, %v7844_v47  ;;  %v9415_v44 = vrot.slane %v7855_v4, 1  ;;  %v1829_v9 = vadd.f32 %v7898_v38, %v7838_v45  ;;  %v8137_v20 = vld [vmem:[%s7361_s23 + $0xf8] sm:$0xff] }
 0x2a5   : > { %v3657_v30 = vadd.f32 %v3545_v46, %v2568_v31  ;;  %v3105_v46 = vadd.f32 %v2661_v24, %v7606_v53  ;;  %v3435_v62 = vadd.f32 %v3336_v17, %v7855_v4  ;;  %v1743_v63 = vrot.slane %v7907_v57, 1 }
 0x2a6   : > { %v7927_v61 = vsel %vm408_vm0, %v9415_v44, %v1751_v43  ;;  %v2571_v3 = vrot.slane %v7838_v45, 2  ;;  %v7942_v43 = vsel %vm9173_vm2, %v9170_v32, %v2584_v54  ;;  %v1827_v29 = vadd.f32 %v1735_v19, %v7711_v21  ;;  %v7970_v44 = vld [vmem:[%s7361_s23 + $0xd8] sm:$0xff] }
 0x2a7   : > { %4587 = vmatpush.msrb.mxu1 %v3657_v30  ;;  %v2576_v6 = vrot.slane %v7907_v57, 2  ;;  %v4053_v24 = vsel %vm4052_vm14, %v7677_v26, %v7798_v59  ;;  %v9416_v13 = vand.u32 2147483647, %v7657_v36  ;;  %v3552_v30 = vadd.f32 %v3435_v62, %v7927_v61 }
 0x2a8   : > { %5319 = vmatmul.msk.f32.vlgmr.msrb.gmra.mxu1 %vm9172_vm3, %v7809_v8  ;;  %v9419_v54 = vrot.slane %v7606_v53, 2  ;;  %v4058_v26 = vsel %vm7862_vm12, %v7698_v37, %v4053_v24  ;;  %v3431_v59 = vadd.f32 %v3332_v48, %v7606_v53  ;;  %v7966_v8 = vor.u32 1.1754944e-38, %v4311_v49  ;;  %v7974_v32 = vpop.eup %5451  ;;  %v7985_v48 = vpop.xlane.xlu2 %3908 }
 0x2a9   : > { %vm7952_vm15 = vcmp.eq.f32.partialorder %v9416_v13, 8.507059e+37  ;;  %v4114_v36 = vand.u32 2147483647, %v7880_v5  ;;  %v4059_v62 = vmul.f32 %v7260_v60, %v4058_v26  ;;  %vm4305_vm4 = vweird.f32 %v7762_v42  ;;  %v8005_v26 = vpop.xlane.xlu0 %3929 }
 0x2aa   : > { %v7960_v21 = vsel %vm9173_vm2, %v2571_v3, %v9419_v54  ;;  %v3664_v3 = vadd.f32 %v3552_v30, %v7942_v43  ;;  %v3219_v37 = vadd.f32 %v7721_v33, %v1735_v19  ;;  %v9420_v53 = vrot.slane %v7805_v22, 1 }
 0x2ab   : > { %v2662_v13 = vadd.f32 %v7960_v21, %v1829_v9  ;;  %v3548_v49 = vadd.f32 %v3431_v59, %v7795_v15  ;;  %v4303_v9 = vmul.f32 %v7840_v55, %v4302_v23  ;;  %v2660_v60 = vadd.f32 %v2568_v31, %v1827_v29  ;;  %5316 = vmatmul.msk.f32.gmra.mxu3 %vm9172_vm3, %v4059_v62  ;;  %v8011_v62 = vpop.xlane.xlu1 %3935 }
 0x2ac   : > { %v7982_v18 = vsel %vm408_vm0, %v1743_v63, %v9420_v53  ;;  %v3222_v30 = vadd.f32 %v3105_v46, %v7795_v15  ;;  %v1832_v33 = vadd.f32 %v7870_v41, %v7805_v22  ;;  %4673 = vmatpush.msrb.mxu0 %v3664_v3  ;;  %v1748_v19 = vrot.slane %v7970_v44, 1 }
 0x2ad   : > { %v3106_v24 = vadd.f32 %v2662_v13, %v7907_v57  ;;  %v9421_v63 = vrot.slane %v7805_v22, 2  ;;  %v3660_v23 = vadd.f32 %v3548_v49, %v7849_v34  ;;  %v4196_v29 = vmul.f32 %v7891_v0, %v7816_v25 }
 0x2ae   : > { %vm4306_vm5 = vweird.f32 %v7840_v55  ;;  %v3334_v46 = vadd.f32 %v3222_v30, %v7849_v34  ;;  %v4106_v59 = vmul.f32 %v7974_v32, %v7880_v5  ;;  %v3331_v13 = vadd.f32 %v3219_v37, %v2568_v31 }
 0x2af   : > { %v7997_v54 = vsel %vm9173_vm2, %v2576_v6, %v9421_v63  ;;  %v3223_v15 = vadd.f32 %v3106_v24, %v7982_v18  ;;  %v2581_v6 = vrot.slane %v7970_v44, 2  ;;  %4615 = vmatpush.msra.mxu2 %v3660_v23  ;;  %5453 = vrcp.f32 %v7985_v48  ;;  %vm8054_vm8 = vmor %vm4305_vm4, %vm4306_vm5 }
 0x2b0   : > { %v4304_v3 = vadd.f32 %v7840_v55, %v4303_v9  ;;  %v9422_v53 = vand.u32 2147483647, %v7762_v42  ;;  %v3104_v34 = vadd.f32 %v2660_v60, %v7838_v45  ;;  %v3433_v31 = vadd.f32 %v3334_v46, %v7805_v22 }
 0x2b1   : > { %v3335_v24 = vadd.f32 %v3223_v15, %v7997_v54  ;;  %v2665_v37 = vadd.f32 %v7886_v7, %v1832_v33  ;;  %v9425_v30 = vrot.slane %v7855_v4, 1  ;;  %v1831_v9 = vadd.f32 %v7982_v18, %v7907_v57 }
 0x2b2   : > { %vm8016_vm6 = vcmp.eq.f32.partialorder %v9422_v53, 8.507059e+37  ;;  %5455 = vrcp.f32 %v8005_v26  ;;  %v4133_v22 = vsel %vm7952_vm15, %v7814_v1, %v4128_v28  ;;  %v3550_v33 = vadd.f32 %v3433_v31, %v7870_v41 }
 0x2b3   : > { %v8027_v63 = vsel %vm408_vm0, %v1748_v19, %v9425_v30  ;;  %v3434_v60 = vadd.f32 %v3335_v24, %v7970_v44  ;;  %5457 = vrcp.f32 %v8011_v62  ;;  %v4197_v19 = vsub.f32 1.0, %v4196_v29 }
 0x2b4   : > { %v4107_v23 = vsub.f32 1.0, %v4106_v59  ;;  %v9426_v15 = vrot.slane %v7855_v4, 2  ;;  %v3430_v16 = vadd.f32 %v3331_v13, %v7838_v45  ;;  %vm4171_vm7 = vweird.f32 %v7686_v40  ;;  %v8072_v13 = vpop.xlane.xlu2 %3923 }
 0x2b5   : > { %v4116_v1 = vand.u32 2147483648, %v7880_v5  ;;  %v3551_v47 = vadd.f32 %v3434_v60, %v8027_v63  ;;  %v3662_v41 = vadd.f32 %v3550_v33, %v7886_v7  ;;  %v3221_v28 = vadd.f32 %v3104_v34, %v7898_v38  ;;  %v8062_v17 = vpop.eup %5453 }
 0x2b6   : > { %v8046_v46 = vsel %vm9173_vm2, %v2581_v6, %v9426_v15  ;;  %v4308_v45 = vsel %vm8054_vm8, %v7840_v55, %v4304_v3  ;;  %vm4110_vm9 = vweird.f32 %v7880_v5  ;;  %v1834_v42 = vadd.f32 %v7927_v61, %v7855_v4 }
 0x2b7   : > { %v3109_v29 = vadd.f32 %v2665_v37, %v7855_v4  ;;  %v2664_v59 = vadd.f32 %v7997_v54, %v1831_v9  ;;  %vm4170_vm10 = vweird.f32 %v7628_v27  ;;  %v1833_v7 = vadd.f32 %v8027_v63, %v7970_v44  ;;  %4644 = vmatpush.msra.mxu3 %v3662_v41  ;;  %v8214_v9 = vld [vmem:[%s7361_s23 + $0x110] sm:$0xff] }
 0x2b8   : > { %v3663_v6 = vadd.f32 %v3551_v47, %v8046_v46  ;;  %v3547_v55 = vadd.f32 %v3430_v16, %v7898_v38  ;;  %v3333_v3 = vadd.f32 %v3221_v28, %v7960_v21  ;;  %v8080_v53 = vpop.eup %5455  ;;  %v4134_v4 = vmul.f32 %v7278_v10, %v4133_v22  ;;  %v357_v16 = vld [vmem:[%s7361_s23 + $0x130] sm:$0x3] }
 0x2b9   : > { %v4198_v34 = vmul.f32 %v7891_v0, %v4197_v19  ;;  %v4108_v24 = vmul.f32 %v7974_v32, %v4107_v23  ;;  %vm8087_vm11 = vcmp.eq.f32.partialorder %v4114_v36, 8.507059e+37  ;;  %v8091_v37 = vpop.eup %5457  ;;  %vm4201_vm12 = vweird.f32 %v7891_v0 }
 0x2ba   : > { %4674 = vmatpush.msrb.mxu0 %v3663_v6  ;;  %v4136_v38 = vmul.f32 %v8062_v17, %v7985_v48  ;;  %v3659_v10 = vadd.f32 %v3547_v55, %v7960_v21  ;;  %v3432_v30 = vadd.f32 %v3333_v3, %v7907_v57  ;;  %5459 = vrcp.f32 %v8072_v13  ;;  %v8116_v21 = vld [vmem:[%s7361_s23 + $0xf0] sm:$0xff] }
 0x2bb   : > { %v9431_v36 = vand.u32 2147483647, %v7628_v27  ;;  %v4313_v22 = vsel %vm8016_vm6, %v7966_v8, %v4308_v45  ;;  %v4117_v60 = vor.u32 1.1754944e-38, %v4116_v1  ;;  %v2667_v33 = vadd.f32 %v7942_v43, %v1834_v42  ;;  %5325 = vmatmul.msk.f32.vlgmr.msrb.gmra.mxu0 %vm9172_vm3, %v7819_v39  ;;  %vm8165_vm6 = vmor %vm4170_vm10, %vm4171_vm7 }
 0x2bc   : > { %v3108_v19 = vadd.f32 %v2664_v59, %v7970_v44  ;;  %vm4200_vm14 = vweird.f32 %v7816_v25  ;;  %vm4111_vm15 = vweird.f32 %v7974_v32  ;;  %v3226_v57 = vadd.f32 %v3109_v29, %v7927_v61  ;;  %4616 = vmatpush.msra.mxu2 %v3659_v10 }
 0x2bd   : > { %vm8101_vm13 = vcmp.eq.f32.partialorder %v9431_v36, 8.507059e+37  ;;  %v2666_v49 = vadd.f32 %v8046_v46, %v1833_v7  ;;  %v3549_v8 = vadd.f32 %v3432_v30, %v7982_v18  ;;  %v4199_v23 = vadd.f32 %v7891_v0, %v4198_v34  ;;  %5321 = vmatmul.msk.f32.vlgmr.msra.gmra.mxu2 %vm9172_vm3, %v4134_v4  ;;  %vm4112_vm5 = vmor %vm4110_vm9, %vm4111_vm15  ;;  %v351_v30 = vld [vmem:[%s7361_s23 + $0x100] sm:$0x3]  ;;  %v8194_v36 = vpop.xlane.xlu0 %3926 }
 0x2be   : > { %v4109_v44 = vadd.f32 %v7974_v32, %v4108_v24  ;;  %v4241_v39 = vmul.f32 %v8080_v53, %v8005_v26  ;;  %v4271_v15 = vmul.f32 %v8091_v37, %v8011_v62  ;;  %v9434_v61 = vand.u32 2147483647, %v7816_v25  ;;  %vm8204_vm8 = vmor %vm4200_vm14, %vm4201_vm12  ;;  %v8220_v25 = vpop.xlane.xlu1 %3944 }
 0x2bf   : > { %v8134_v18 = vmul.f32 %v7287_v2, %v4313_v22  ;;  %v4137_v1 = vsub.f32 1.0, %v4136_v38  ;;  %v4146_v47 = vand.u32 2147483648, %v7985_v48  ;;  %v3661_v41 = vadd.f32 %v3549_v8, %v7997_v54 }
 0x2c0   : > { %vm8129_vm4 = vcmp.eq.f32.partialorder %v9434_v61, 8.507059e+37  ;;  %v8142_v28 = vadd.f32 %v2667_v33, %v8137_v20  ;;  %v1753_v45 = vrot.slane %v8116_v21, 1  ;;  %v3225_v42 = vadd.f32 %v3108_v19, %v8027_v63  ;;  %v8147_v59 = vpop.eup %5459  ;;  %v354_v19 = vld [vmem:[%s7361_s23 + $0x118] sm:$0x3] }
 0x2c1   : > { %v4251_v29 = vand.u32 2147483648, %v8005_v26  ;;  %v8154_v2 = vadd.f32 %v3226_v57, %v7942_v43  ;;  %v8157_v54 = vadd.f32 %v2666_v49, %v8116_v21  ;;  %v4144_v7 = vand.u32 2147483647, %v7985_v48  ;;  %4645 = vmatpush.msra.mxu3 %v3661_v41 }
 0x2c2   : > { %v4281_v6 = vand.u32 2147483648, %v8011_v62  ;;  %v4242_v5 = vsub.f32 1.0, %v4241_v39  ;;  %v4249_v43 = vand.u32 2147483647, %v8005_v26  ;;  %v4272_v55 = vsub.f32 1.0, %v4271_v15  ;;  %5323 = vmatmul.msk.f32.vlgmr.msra.gmra.mxu3 %vm9172_vm3, %v7832_v56 }
 0x2c3   : > { %v4113_v3 = vsel %vm4112_vm5, %v7974_v32, %v4109_v44  ;;  %v4138_v4 = vmul.f32 %v8062_v17, %v4137_v1  ;;  %v8174_v34 = vor.u32 1.1754944e-38, %v4146_v47  ;;  %v4173_v24 = vsel %vm8165_vm6, %v7686_v40, %v7827_v14 }
 0x2c4   : > { %v4118_v27 = vsel %vm8087_vm11, %v4117_v60, %v4113_v3  ;;  %v8183_v38 = vadd.f32 %v3225_v42, %v8046_v46  ;;  %v8185_v10 = vor.u32 1.1754944e-38, %v4251_v29  ;;  %v4279_v56 = vand.u32 2147483647, %v8011_v62 }
 0x2c5   : > { %v4211_v32 = vmul.f32 %v8147_v59, %v8072_v13  ;;  %vm4246_vm7 = vweird.f32 %v8080_v53  ;;  %v8192_v31 = vor.u32 1.1754944e-38, %v4281_v6  ;;  %v4119_v40 = vmul.f32 %v7292_v52, %v4118_v27 }
 0x2c6   : > { %v4178_v14 = vsel %vm8101_vm13, %v7800_v11, %v4173_v24  ;;  %v4243_v22 = vmul.f32 %v8080_v53, %v4242_v5  ;;  %vm4245_vm9 = vweird.f32 %v8005_v26  ;;  %v4273_v60 = vmul.f32 %v8091_v37, %v4272_v55 }
 0x2c7   : > { %vm4276_vm10 = vweird.f32 %v8091_v37  ;;  %v4219_v52 = vand.u32 2147483647, %v8072_v13  ;;  %v8217_v11 = vadd.f32 %v8062_v17, %v4138_v4  ;;  %vm4275_vm11 = vweird.f32 %v8011_v62  ;;  %5320 = vmatmul.msk.f32.gmra.mxu1 %vm9172_vm3, %v4119_v40  ;;  %vm8288_vm15 = vmor %vm4245_vm9, %vm4246_vm7 }
 0x2c8   : > { %v4203_v33 = vsel %vm8204_vm8, %v7891_v0, %v4199_v23  ;;  %v1754_v57 = vrot.slane %v8137_v20, 1  ;;  %v1756_v49 = vrot.slane %v351_v30, 1  ;;  %v4212_v8 = vsub.f32 1.0, %v4211_v32 }
 0x2c9   : > { %5461 = vrcp.f32 %v8194_v36  ;;  %v4179_v44 = vmul.f32 %v7274_v50, %v4178_v14  ;;  %v4208_v39 = vsel %vm8129_vm4, %v7900_v35, %v4203_v33  ;;  %v4221_v15 = vand.u32 2147483648, %v8072_v13  ;;  %vm8302_vm4 = vmor %vm4275_vm11, %vm4276_vm10 }
 0x2ca   : > { %v4209_v61 = vmul.f32 %v7290_v12, %v4208_v39  ;;  %v8238_v0 = vsel %vm408_vm0, %v1754_v57, %v1756_v49  ;;  %v1759_v23 = vrot.slane %v8214_v9, 1  ;;  %v4244_v1 = vadd.f32 %v8080_v53, %v4243_v22  ;;  %v8250_v12 = vld [vmem:[%s7361_s23 + $0x128] sm:$0xff] }
 0x2cb   : > { %vm8242_vm12 = vcmp.eq.f32.partialorder %v4249_v43, 8.507059e+37  ;;  %v4274_v50 = vadd.f32 %v8091_v37, %v4273_v60  ;;  %5463 = vrcp.f32 %v8220_v25  ;;  %5324 = vmatmul.msk.f32.gmra.mxu3 %vm9172_vm3, %v4179_v44  ;;  %v1761_v35 = vrot.slane %v354_v19, 1 }
 0x2cc   : > { %5326 = vmatmul.msk.f32.gmra.mxu0 %vm9172_vm3, %v4209_v61  ;;  %v1836_v41 = vadd.f32 %v8238_v0, %v8137_v20  ;;  %v2587_v42 = vrot.slane %v8137_v20, 2  ;;  %v2589_v29 = vrot.slane %v351_v30, 2  ;;  %v2592_v6 = vrot.slane %v8214_v9, 2 }
 0x2cd   : > { %vm8258_vm13 = vcmp.eq.f32.partialorder %v4279_v56, 8.507059e+37  ;;  %v4213_v5 = vmul.f32 %v8147_v59, %v4212_v8  ;;  %vm4215_vm14 = vweird.f32 %v8072_v13  ;;  %v1762_v43 = vsel %vm408_vm0, %v1759_v23, %v1761_v35 }
 0x2ce   : > { %v2594_v55 = vrot.slane %v354_v19, 2  ;;  %v3228_v3 = vadd.f32 %v8142_v28, %v8238_v0  ;;  %v1838_v4 = vadd.f32 %v1762_v43, %v8214_v9  ;;  %v8273_v27 = vsel %vm9173_vm2, %v2587_v42, %v2589_v29  ;;  %v8326_v29 = vld [vmem:[%s7361_s23 + $0x140] sm:$0xff] }
 0x2cf   : > { %v1764_v24 = vrot.slane %v8250_v12, 1  ;;  %v1766_v56 = vrot.slane %v357_v16, 1  ;;  %v8276_v32 = vpop.eup %5461  ;;  %v2669_v40 = vadd.f32 %v8273_v27, %v1836_v41  ;;  %v2597_v14 = vrot.slane %v8250_v12, 2 }
 0x2d0   : > { %v2595_v30 = vsel %vm9173_vm2, %v2592_v6, %v2594_v55  ;;  %v3340_v28 = vadd.f32 %v3228_v3, %v8273_v27  ;;  %v4222_v22 = vor.u32 1.1754944e-38, %v4221_v15  ;;  %v4234_v60 = vand.u32 2147483647, %v8194_v36 }
 0x2d1   : > { %v2671_v33 = vadd.f32 %v2595_v30, %v1838_v4  ;;  %v2599_v19 = vrot.slane %v357_v16, 2  ;;  %v8293_v49 = vpop.eup %5463  ;;  %v4248_v8 = vsel %vm8288_vm15, %v8080_v53, %v4244_v1  ;;  %vm8306_vm5 = vcmp.eq.f32.partialorder %v4219_v52, 8.507059e+37  ;;  %v8322_v1 = vpop.xlane.xlu2 %3938 }
 0x2d2   : > { %v3113_v39 = vadd.f32 %v2669_v40, %v8214_v9  ;;  %v3439_v15 = vadd.f32 %v3340_v28, %v8214_v9  ;;  %v1767_v53 = vsel %vm408_vm0, %v1764_v24, %v1766_v56  ;;  %v4278_v62 = vsel %vm8302_vm4, %v8091_v37, %v4274_v50  ;;  %v360_v37 = vld [vmem:[%s7361_s23 + $0x148] sm:$0x3] }
 0x2d3   : > { %vm4216_vm6 = vweird.f32 %v8147_v59  ;;  %v4226_v52 = vmul.f32 %v8276_v32, %v8194_v36  ;;  %v3115_v61 = vadd.f32 %v2671_v33, %v8250_v12  ;;  %v4214_v35 = vadd.f32 %v8147_v59, %v4213_v5  ;;  %v8338_v5 = vpop.xlane.xlu1 %3932 }
 0x2d4   : > { %v3230_v16 = vadd.f32 %v3113_v39, %v1762_v43  ;;  %v3556_v41 = vadd.f32 %v3439_v15, %v1762_v43  ;;  %v2600_v55 = vsel %vm9173_vm2, %v2597_v14, %v2599_v19  ;;  %v4253_v50 = vsel %vm8242_vm12, %v8185_v10, %v4248_v8  ;;  %vm8349_vm7 = vmor %vm4215_vm14, %vm4216_vm6 }
 0x2d5   : > { %v4236_v3 = vand.u32 2147483648, %v8194_v36  ;;  %v4316_v4 = vmul.f32 %v8293_v49, %v8220_v25  ;;  %v3232_v56 = vadd.f32 %v3115_v61, %v1767_v53  ;;  %v4326_v43 = vand.u32 2147483648, %v8220_v25 }
 0x2d6   : > { %v3342_v40 = vadd.f32 %v3230_v16, %v2595_v30  ;;  %v3668_v28 = vadd.f32 %v3556_v41, %v2595_v30  ;;  %5465 = vrcp.f32 %v8322_v1  ;;  %v4283_v46 = vsel %vm8258_vm13, %v8192_v31, %v4278_v62 }
 0x2d7   : > { %v3344_v47 = vadd.f32 %v3232_v56, %v2600_v55  ;;  %v1769_v33 = vrot.slane %v8326_v29, 1  ;;  %v1771_v19 = vrot.slane %v360_v37, 1  ;;  %v4218_v30 = vsel %vm8349_vm7, %v8147_v59, %v4214_v35 }
 0x2d8   : > { %v4227_v8 = vsub.f32 1.0, %v4226_v52  ;;  %4731 = vmatpush.msrb.mxu2 %v3668_v28  ;;  %v3441_v31 = vadd.f32 %v3342_v40, %v8250_v12  ;;  %5467 = vrcp.f32 %v8338_v5  ;;  %v8359_v13 = vor.u32 1.1754944e-38, %v4236_v3  ;;  %v8368_v52 = vld [vmem:[%s7361_s23 + $0x108] sm:$0xff]  ;;  %v9453_v28 = vld [vmem:[#allocation49_spill] sm:$0xff] }
 0x2d9   : > { %v4317_v63 = vsub.f32 1.0, %v4316_v4  ;;  %v2602_v26 = vrot.slane %v8326_v29, 2  ;;  %v2604_v39 = vrot.slane %v360_v37, 2  ;;  %v4324_v15 = vand.u32 2147483647, %v8220_v25 }
 0x2da   : > { %v1840_v62 = vadd.f32 %v1767_v53, %v8250_v12  ;;  %v3558_v61 = vadd.f32 %v3441_v31, %v1767_v53  ;;  %v1772_v59 = vsel %vm408_vm0, %v1769_v33, %v1771_v19  ;;  %vm4141_vm8 = vweird.f32 %v8062_v17 }
 0x2db   : > { %v8372_v35 = vmul.f32 %v7304_v51, %v4253_v50  ;;  %v8375_v16 = vmul.f32 %v7307_v58, %v4283_v46  ;;  %v4223_v41 = vsel %vm8306_vm5, %v4222_v22, %v4218_v30  ;;  %v3443_v53 = vadd.f32 %v3344_v47, %v8326_v29  ;;  %v8393_v22 = vld [vmem:[%s7361_s23 + $0x120] sm:$0xff] }
 0x2dc   : > { %v8380_v37 = vpop.eup %5465  ;;  %v4228_v3 = vmul.f32 %v8276_v32, %v4227_v8  ;;  %v8383_v4 = vor.u32 1.1754944e-38, %v4326_v43  ;;  %v3670_v56 = vadd.f32 %v3558_v61, %v2600_v55  ;;  %v8388_v51 = vsel %vm9173_vm2, %v2602_v26, %v2604_v39 }
 0x2dd   : > { %vm4140_vm9 = vweird.f32 %v7985_v48  ;;  %v4318_v58 = vmul.f32 %v8293_v49, %v4317_v63  ;;  %v3560_v44 = vadd.f32 %v3443_v53, %v1772_v59  ;;  %v8400_v50 = vsel %vm408_vm0, %v1753_v45, %v1754_v57  ;;  %v8444_v53 = vpop.xlane.xlu0 %3959 }
 0x2de   : > { %v1758_v43 = vrot.slane %v8368_v52, 1  ;;  %v8403_v40 = vpop.eup %5467  ;;  %v8406_v46 = vmul.f32 %v9453_v28, %v4223_v41  ;;  %v2673_v10 = vadd.f32 %v2600_v55, %v1840_v62  ;;  %4760 = vmatpush.msrb.mxu3 %v3670_v56  ;;  %v4296_v47 = vand.u32 2147483648, %v8322_v1  ;;  %vm8474_vm12 = vmor %vm4140_vm9, %vm4141_vm8 }
 0x2df   : > { %v1835_v19 = vadd.f32 %v8400_v50, %v8116_v21  ;;  %v4286_v30 = vmul.f32 %v8380_v37, %v8322_v1  ;;  %v3672_v45 = vadd.f32 %v3560_v44, %v8388_v51  ;;  %v2586_v8 = vrot.slane %v8116_v21, 2 }
 0x2e0   : > { %v8417_v57 = vsel %vm408_vm0, %v1758_v43, %v1759_v23  ;;  %vm8422_vm10 = vcmp.eq.f32.partialorder %v4144_v7, 8.507059e+37  ;;  %v8427_v31 = vadd.f32 %v8276_v32, %v4228_v3  ;;  %v1763_v63 = vrot.slane %v8393_v22, 1 }
 0x2e1   : > { %v1837_v39 = vadd.f32 %v8417_v57, %v8368_v52  ;;  %v2591_v23 = vrot.slane %v8368_v52, 2  ;;  %v8434_v62 = vadd.f32 %v8293_v49, %v4318_v58  ;;  %v4294_v61 = vand.u32 2147483647, %v8322_v1  ;;  %4789 = vmatpush.msra.mxu0 %v3672_v45  ;;  %v358_v45 = vld [vmem:[%s7361_s23 + $0x138] sm:$0xff] }
 0x2e2   : > { %v4256_v7 = vmul.f32 %v8403_v40, %v8338_v5  ;;  %v8442_v41 = vsel %vm9173_vm2, %v2586_v8, %v2587_v42  ;;  %v3117_v3 = vadd.f32 %v2673_v10, %v8326_v29  ;;  %v2596_v58 = vrot.slane %v8393_v22, 2 }
 0x2e3   : > { %v8450_v56 = vsel %vm9173_vm2, %v2591_v23, %v2592_v6  ;;  %v2668_v44 = vadd.f32 %v8442_v41, %v1835_v19  ;;  %v4287_v43 = vsub.f32 1.0, %v4286_v30  ;;  %v8454_v28 = vor.u32 1.1754944e-38, %v4296_v47 }
 0x2e4   : > { %v2670_v42 = vadd.f32 %v8450_v56, %v1837_v39  ;;  %v3437_v8 = vadd.f32 %v8154_v2, %v8137_v20  ;;  %vm4321_vm11 = vweird.f32 %v8293_v49  ;;  %v1842_v9 = vadd.f32 %v1772_v59, %v8326_v29 }
 0x2e5   : > { %v1765_v6 = vsel %vm408_vm0, %v1763_v63, %v1764_v24  ;;  %v3112_v10 = vadd.f32 %v2668_v44, %v8368_v52  ;;  %5469 = vrcp.f32 %v8444_v53  ;;  %v4257_v47 = vsub.f32 1.0, %v4256_v7 }
 0x2e6   : > { %v4264_v19 = vand.u32 2147483647, %v8338_v5  ;;  %v3114_v30 = vadd.f32 %v2670_v42, %v8393_v22  ;;  %v3554_v39 = vadd.f32 %v3437_v8, %v8238_v0  ;;  %vm4320_vm13 = vweird.f32 %v8220_v25  ;;  %v8489_v42 = vpop.xlane.xlu2 %3953 }
 0x2e7   : > { %v3234_v2 = vadd.f32 %v3117_v3, %v1772_v59  ;;  %v2598_v24 = vsel %vm9173_vm2, %v2596_v58, %v2597_v14  ;;  %v3229_v63 = vadd.f32 %v3112_v10, %v8417_v57  ;;  %v1768_v23 = vrot.slane %v358_v45, 1  ;;  %vm8545_vm15 = vmor %vm4320_vm13, %vm4321_vm11 }
 0x2e8   : > { %v1839_v0 = vadd.f32 %v1765_v6, %v8393_v22  ;;  %v3231_v7 = vadd.f32 %v3114_v30, %v1765_v6  ;;  %v3666_v44 = vadd.f32 %v3554_v39, %v8273_v27  ;;  %v4143_v48 = vsel %vm8474_vm12, %v8062_v17, %v8217_v11 }
 0x2e9   : > { %v4288_v59 = vmul.f32 %v8380_v37, %v4287_v43  ;;  %v2675_v12 = vadd.f32 %v8388_v51, %v1842_v9  ;;  %v3341_v14 = vadd.f32 %v3229_v63, %v8450_v56  ;;  %v2601_v3 = vrot.slane %v358_v45, 2  ;;  %v8506_v43 = vpop.xlane.xlu1 %3947 }
 0x2ea   : > { %vm8496_vm14 = vcmp.eq.f32.partialorder %v4324_v15, 8.507059e+37  ;;  %v4258_v27 = vmul.f32 %v8403_v40, %v4257_v47  ;;  %v3343_v8 = vadd.f32 %v3231_v7, %v2598_v24  ;;  %4702 = vmatpush.msra.mxu1 %v3666_v44  ;;  %v4148_v17 = vsel %vm8422_vm10, %v8174_v34, %v4143_v48  ;;  %v9460_v47 = vld [vmem:[#allocation47_spill] sm:$0xff] }
 0x2eb   : > { %v3227_v11 = vadd.f32 %v8157_v54, %v8400_v50  ;;  %v8508_v9 = vpop.eup %5469  ;;  %v3440_v15 = vadd.f32 %v3341_v14, %v8393_v22  ;;  %v1770_v10 = vsel %vm408_vm0, %v1768_v23, %v1769_v33  ;;  %v4149_v30 = vmul.f32 %v9460_v47, %v4148_v17  ;;  %v8528_v33 = vld [vmem:[%s7361_s23 + $0x158] sm:$0xff] }
 0x2ec   : > { %5471 = vrcp.f32 %v8489_v42  ;;  %v4266_v34 = vand.u32 2147483648, %v8338_v5  ;;  %v2672_v55 = vadd.f32 %v2598_v24, %v1839_v0  ;;  %v3442_v39 = vadd.f32 %v3343_v8, %v358_v45 }
 0x2ed   : > { %v3339_v54 = vadd.f32 %v3227_v11, %v8442_v41  ;;  %v3557_v20 = vadd.f32 %v3440_v15, %v1765_v6  ;;  %v8521_v63 = vsel %vm9173_vm2, %v2601_v3, %v2602_v26  ;;  %v4391_v22 = vmul.f32 %v8508_v9, %v8444_v53  ;;  %5322 = vmatmul.msk.f32.gmra.mxu2 %vm9172_vm3, %v4149_v30  ;;  %v363_v3 = vld [vmem:[%s7361_s23 + $0x160] sm:$0x3] }
 0x2ee   : > { %5473 = vrcp.f32 %v8506_v43  ;;  %v8531_v23 = vadd.f32 %v3234_v2, %v8388_v51  ;;  %v1841_v0 = vadd.f32 %v1770_v10, %v358_v45  ;;  %v3559_v6 = vadd.f32 %v3442_v39, %v1770_v10  ;;  %v9463_v39 = vld [vmem:[#allocation15_spill] sm:$0xff] }
 0x2ef   : > { %v3438_v29 = vadd.f32 %v3339_v54, %v8368_v52  ;;  %v8535_v26 = vadd.f32 %v8380_v37, %v4288_v59  ;;  %v8538_v7 = vadd.f32 %v8403_v40, %v4258_v27  ;;  %v3119_v44 = vadd.f32 %v2675_v12, %v8528_v33 }
 0x2f0   : > { %v3669_v48 = vadd.f32 %v3557_v20, %v2598_v24  ;;  %v3116_v2 = vadd.f32 %v2672_v55, %v358_v45  ;;  %v3671_v52 = vadd.f32 %v3559_v6, %v8521_v63  ;;  %v4401_v59 = vand.u32 2147483648, %v8444_v53 }
 0x2f1   : > { %v3555_v14 = vadd.f32 %v3438_v29, %v8417_v57  ;;  %v4392_v24 = vsub.f32 1.0, %v4391_v22  ;;  %v3436_v25 = vadd.f32 %v8183_v38, %v8116_v21  ;;  %v4323_v45 = vsel %vm8545_vm15, %v8293_v49, %v8434_v62 }
 0x2f2   : > { %v8553_v27 = vpop.eup %5471  ;;  %4761 = vmatpush.msrb.mxu3 %v3669_v48  ;;  %v1774_v12 = vrot.slane %v8528_v33, 1  ;;  %v8562_v8 = vor.u32 1.1754944e-38, %v4266_v34  ;;  %v8565_v57 = vadd.f32 %v8521_v63, %v1841_v0  ;;  %4790 = vmatpush.msra.mxu0 %v3671_v52  ;;  %v4399_v49 = vand.u32 2147483647, %v8444_v53  ;;  %v366_v34 = vld [vmem:[%s7361_s23 + $0x178] sm:$0x3] }
 0x2f3   : > { %5331 = vmatmul.msk.f32.vlgmr.msrb.gmra.mxu3 %vm9172_vm3, %v8375_v16  ;;  %v3667_v17 = vadd.f32 %v3555_v14, %v8450_v56  ;;  %v4361_v21 = vmul.f32 %v8553_v27, %v8489_v42  ;;  %5333 = vmatmul.msk.f32.vlgmr.msra.gmra.mxu0 %vm9172_vm3, %v8134_v18  ;;  %v3553_v62 = vadd.f32 %v3436_v25, %v8400_v50  ;;  %v8582_v16 = vld [vmem:[%s7361_s23 + $0x170] sm:$0xff]  ;;  %v1776_v15 = vrot.slane %v363_v3, 1 }
 0x2f4   : > { %v8572_v38 = vpop.eup %5473  ;;  %v4328_v11 = vsel %vm8496_vm14, %v8383_v4, %v4323_v45  ;;  %v8584_v56 = vadd.f32 %v3116_v2, %v1770_v10  ;;  %vm4395_vm4 = vweird.f32 %v8444_v53  ;;  %v8587_v47 = vor.u32 1.1754944e-38, %v4401_v59  ;;  %v369_v45 = vld [vmem:[%s7361_s23 + $0x190] sm:$0x3] }
 0x2f5   : > { %4732 = vmatpush.msrb.mxu2 %v3667_v17  ;;  %v4362_v30 = vsub.f32 1.0, %v4361_v21  ;;  %v4331_v18 = vmul.f32 %v8572_v38, %v8506_v43  ;;  %v4393_v50 = vmul.f32 %v8508_v9, %v4392_v24  ;;  %vm4396_vm5 = vweird.f32 %v8508_v9 }
 0x2f6   : > { %vm4365_vm6 = vweird.f32 %v8489_v42  ;;  %v3665_v4 = vadd.f32 %v3553_v62, %v8442_v41  ;;  %5329 = vmatmul.msk.f32.vlgmr.msrb.gmra.mxu2 %vm9172_vm3, %v8372_v35  ;;  %v8601_v58 = vsel %vm408_vm0, %v1774_v12, %v1776_v15  ;;  %v4329_v54 = vmul.f32 %v9463_v39, %v4328_v11  ;;  %v8648_v62 = vpop.xlane.xlu2 %3965  ;;  %vm8667_vm15 = vmor %vm4395_vm4, %vm4396_vm5  ;;  %v8674_v39 = vpop.xlane.xlu0 %3956 }
 0x2f7   : > { %v4363_v10 = vmul.f32 %v8553_v27, %v4362_v30  ;;  %v4332_v55 = vsub.f32 1.0, %v4331_v18  ;;  %v1779_v20 = vrot.slane %v8582_v16, 1  ;;  %v1781_v22 = vrot.slane %v366_v34, 1 }
 0x2f8   : > { %4703 = vmatpush.msra.mxu1 %v3665_v4  ;;  %v1844_v41 = vadd.f32 %v8601_v58, %v8528_v33  ;;  %v2607_v35 = vrot.slane %v8528_v33, 2  ;;  %v2609_v0 = vrot.slane %v363_v3, 2  ;;  %vm4231_vm7 = vweird.f32 %v8276_v32  ;;  %v8631_v3 = vld [vmem:[%s7361_s23 + $0x188] sm:$0xff] }
 0x2f9   : > { %v4369_v6 = vand.u32 2147483647, %v8489_v42  ;;  %v4371_v29 = vand.u32 2147483648, %v8489_v42  ;;  %5327 = vmatmul.msk.f32.vlgmr.msra.gmra.mxu1 %vm9172_vm3, %v8406_v46  ;;  %v2612_v48 = vrot.slane %v8582_v16, 2  ;;  %v2614_v51 = vrot.slane %v366_v34, 2  ;;  %v9494_v42 = vld [vmem:[#allocation41_spill] sm:$0xff] }
 0x2fa   : > { %vm4291_vm8 = vweird.f32 %v8380_v37  ;;  %vm8616_vm9 = vcmp.eq.f32.partialorder %v4399_v49, 8.507059e+37  ;;  %v4333_v52 = vmul.f32 %v8572_v38, %v4332_v55  ;;  %v1782_v59 = vsel %vm408_vm0, %v1779_v20, %v1781_v22 }
 0x2fb   : > { %v8627_v46 = vsel %vm9173_vm2, %v2607_v35, %v2609_v0  ;;  %v3236_v14 = vadd.f32 %v3119_v44, %v8601_v58  ;;  %vm4230_vm10 = vweird.f32 %v8194_v36  ;;  %v4394_v24 = vadd.f32 %v8508_v9, %v4393_v50  ;;  %5334 = vmatmul.msk.f32.gmra.mxu0 %vm9172_vm3, %v4329_v54  ;;  %v364_v36 = vld [vmem:[%s7361_s23 + $0x168] sm:$0xff] }
 0x2fc   : > { %vm4366_vm12 = vweird.f32 %v8553_v27  ;;  %vm4335_vm13 = vweird.f32 %v8506_v43  ;;  %v1846_v25 = vadd.f32 %v1782_v59, %v8582_v16  ;;  %vm4290_vm14 = vweird.f32 %v8322_v1 }
 0x2fd   : > { %v4364_v17 = vadd.f32 %v8553_v27, %v4363_v10  ;;  %v2615_v44 = vsel %vm9173_vm2, %v2612_v48, %v2614_v51  ;;  %v2677_v21 = vadd.f32 %v8627_v46, %v1844_v41  ;;  %v3348_v49 = vadd.f32 %v3236_v14, %v8627_v46  ;;  %vm8680_vm2 = vmor %vm4365_vm6, %vm4366_vm12 }
 0x2fe   : > { %vm8651_vm1 = vcmp.eq.f32.partialorder %v4369_v6, 8.507059e+37  ;;  %vm4336_vm11 = vweird.f32 %v8572_v38  ;;  %v2679_v15 = vadd.f32 %v2615_v44, %v1846_v25  ;;  %v3203_v30 = vrot.slane %v8631_v3, 1 }
 0x2ff   : > { %vm8659_vm3 = vcmp.eq.f32.partialorder %v4234_v60, 8.507059e+37  ;;  %v4334_v50 = vadd.f32 %v8572_v38, %v4333_v52  ;;  %v3121_v4 = vadd.f32 %v2677_v21, %v8582_v16  ;;  %v3447_v10 = vadd.f32 %v3348_v49, %v8582_v16  ;;  %vm8710_vm6 = vmor %vm4335_vm13, %vm4336_vm11 }
 0x300   : > { %v3205_v55 = vrot.slane %v369_v45, 1  ;;  %v4339_v53 = vand.u32 2147483647, %v8506_v43  ;;  %v4341_v54 = vand.u32 2147483648, %v8506_v43  ;;  %v3123_v22 = vadd.f32 %v2679_v15, %v8631_v3 }
 0x301   : > { %5475 = vrcp.f32 %v8648_v62  ;;  %vm8690_vm4 = vcmp.eq.f32.partialorder %v4294_v61, 8.507059e+37  ;;  %vm8696_vm5 = vcmp.eq.f32.partialorder %v4264_v19, 8.507059e+37  ;;  %v4398_v0 = vsel %vm8667_vm15, %v8508_v9, %v4394_v24  ;;  %v8716_v9 = vpop.xlane.xlu1 %3962  ;;  %v8725_v24 = vld [vmem:[%s7361_s23 + $0x150] sm:$0xff] }
 0x302   : > { %v4368_v6 = vsel %vm8680_vm2, %v8553_v27, %v4364_v17  ;;  %v3238_v51 = vadd.f32 %v3121_v4, %v1782_v59  ;;  %v3564_v61 = vadd.f32 %v3447_v10, %v1782_v59  ;;  %v4372_v52 = vor.u32 1.1754944e-38, %v4371_v29  ;;  %vm8736_vm2 = vmor %vm4230_vm10, %vm4231_vm7 }
 0x303   : > { %v3315_v14 = vrot.slane %v8631_v3, 2  ;;  %v3317_v25 = vrot.slane %v369_v45, 2  ;;  %5477 = vrcp.f32 %v8674_v39  ;;  %v4338_v27 = vsel %vm8710_vm6, %v8572_v38, %v4334_v50  ;;  %v9490_v50 = vld [vmem:[#allocation13_spill] sm:$0xff] }
 0x304   : > { %v3350_v29 = vadd.f32 %v3238_v51, %v2615_v44  ;;  %v3676_v59 = vadd.f32 %v3564_v61, %v2615_v44  ;;  %v3206_v43 = vsel %vm408_vm0, %v3203_v30, %v3205_v55  ;;  %v4403_v45 = vsel %vm8616_vm9, %v8587_v47, %v4398_v0  ;;  %v8801_v61 = vld [vmem:[%s7361_s23 + $0x1a0] sm:$0xff] }
 0x305   : > { %v4373_v17 = vsel %vm8651_vm1, %v4372_v52, %v4368_v6  ;;  %v4342_v21 = vor.u32 1.1754944e-38, %v4341_v54  ;;  %v3240_v49 = vadd.f32 %v3206_v43, %v3123_v22  ;;  %v8742_v44 = vadd.f32 %v8565_v57, %v8725_v24  ;;  %vm8752_vm1 = vmor %vm4290_vm14, %vm4291_vm8  ;;  %v9491_v54 = vld [vmem:[#allocation11_spill] sm:$0xff] }
 0x306   : > { %vm4340_vm11 = vcmp.eq.f32.partialorder %v4339_v53, 8.507059e+37  ;;  %4847 = vmatpush.msra.mxu2 %v3676_v59  ;;  %v3449_v47 = vadd.f32 %v3350_v29, %v8631_v3  ;;  %5479 = vrcp.f32 %v8716_v9  ;;  %v8758_v57 = vadd.f32 %v8584_v56, %v8521_v63  ;;  %v9489_v63 = vld [vmem:[#allocation18_spill] sm:$0xff] }
 0x307   : > { %v8746_v2 = vpop.eup %5475  ;;  %v4343_v11 = vsel %vm4340_vm11, %v4342_v21, %v4338_v27  ;;  %vm9484_vm7 = vcmask 1045504   ;;  %v4233_v34 = vsel %vm8736_vm2, %v8276_v32, %v8427_v31  ;;  %vm9485_vm8 = vweird.f32 %v8403_v40  ;;  %v9493_v27 = vld [vmem:[#allocation9_spill] sm:$0xff] }
 0x308   : > { %v3318_v15 = vsel %vm9484_vm7, %v3315_v14, %v3317_v25  ;;  %vm9486_vm9 = vweird.f32 %v8338_v5  ;;  %v8776_v56 = vmul.f32 %v9489_v63, %v4403_v45  ;;  %v8779_v4 = vmul.f32 %v9490_v50, %v4373_v17  ;;  %v4560_v50 = vpop.f32.mrf.mxu0  ;;  %vm9501_vm6 = vmmov %vm9484_vm7 }
 0x309   : > { %vm8771_vm10 = vmor %vm9486_vm9, %vm9485_vm8  ;;  %v3566_v10 = vadd.f32 %v3449_v47, %v3206_v43  ;;  %v4421_v55 = vmul.f32 %v8746_v2, %v8648_v62  ;;  %v8783_v32 = vpop.eup %5477  ;;  %v3352_v31 = vadd.f32 %v3318_v15, %v3240_v49  ;;  %v4238_v5 = vsel %vm8659_vm3, %v8359_v13, %v4233_v34  ;;  %v9492_v13 = vld [vmem:[#allocation48_spill] sm:$0xff] }
 0x30a   : > { %v4263_v60 = vsel %vm8771_vm10, %v8403_v40, %v8538_v7  ;;  %v4293_v53 = vsel %vm8752_vm1, %v8380_v37, %v8535_v26  ;;  %v8797_v22 = vmul.f32 %v9491_v54, %v4343_v11  ;;  %v4431_v51 = vand.u32 2147483648, %v8648_v62  ;;  %v372_v7 = vld [vmem:[%s7361_s23 + $0x1a8] sm:$0x3]  ;;  %v4473_v11 = vpop.f32.mrf.mxu1  ;;  %vm9506_vm9 = vmmov %vm9501_vm6 }
 0x30b   : > { %v3678_v0 = vadd.f32 %v3566_v10, %v3318_v15  ;;  %v4422_v6 = vsub.f32 1.0, %v4421_v55  ;;  %vm4425_vm3 = vweird.f32 %v8648_v62  ;;  %v4239_v18 = vmul.f32 %v9492_v13, %v4238_v5  ;;  %v4531_v15 = vpop.f32.mrf.mxu3  ;;  %v4502_v10 = vpop.f32.mrf.mxu2 }
 0x30c   : > { %v4268_v40 = vsel %vm8696_vm5, %v8562_v8, %v4263_v60  ;;  %v4298_v37 = vsel %vm8690_vm4, %v8454_v28, %v4293_v53  ;;  %v3445_v26 = vadd.f32 %v8531_v23, %v8528_v33  ;;  %v8815_v52 = vpop.eup %5479  ;;  %v4429_v19 = vand.u32 2147483647, %v8648_v62  ;;  %v8903_v33 = vpop.xlane.xlu0 %3968 }
 0x30d   : > { %4876 = vmatpush.msra.mxu3 %v3678_v0  ;;  %v4376_v25 = vmul.f32 %v8783_v32, %v8674_v39  ;;  %v4269_v29 = vmul.f32 %v9493_v27, %v4268_v40  ;;  %v4299_v8 = vmul.f32 %v9494_v42, %v4298_v37  ;;  %v4423_v59 = vmul.f32 %v8746_v2, %v4422_v6  ;;  %v367_v37 = vld [vmem:[%s7361_s23 + $0x180] sm:$0xff] }
 0x30e   : > { %v4406_v28 = vmul.f32 %v8815_v52, %v8716_v9  ;;  %vm9495_vm12 = vcmask 130048   ;;  %v3562_v23 = vadd.f32 %v3445_v26, %v8601_v58  ;;  %v3451_v41 = vadd.f32 %v3352_v31, %v8801_v61  ;;  %v8872_v26 = vpop.xlane.xlu2 %3950 }
 0x30f   : > { %5328 = vmatmul.msk.f32.gmra.mxu1 %vm9495_vm12, %v4239_v18  ;;  %v8833_v43 = vor.u32 1.1754944e-38, %v4431_v51  ;;  %v4384_v45 = vand.u32 2147483647, %v8674_v39  ;;  %vm9496_vm13 = vmmov %vm9495_vm12  ;;  %v3531_v17 = vrot.slane %v8801_v61, 1  ;;  %v3533_v21 = vrot.slane %v372_v7, 1 }
 0x310   : > { %5330 = vmatmul.msk.f32.gmra.mxu2 %vm9496_vm13, %v4269_v29  ;;  %vm9497_vm14 = vmmov %vm9495_vm12  ;;  %v4386_v58 = vand.u32 2147483648, %v8674_v39  ;;  %v3674_v49 = vadd.f32 %v3562_v23, %v8627_v46  ;;  %v3643_v38 = vrot.slane %v8801_v61, 2  ;;  %v3645_v47 = vrot.slane %v372_v7, 2 }
 0x311   : > { %5332 = vmatmul.msk.f32.gmra.mxu3 %vm9497_vm14, %v4299_v8  ;;  %vm4426_vm15 = vweird.f32 %v8746_v2  ;;  %vm8844_vm4 = vcmp.eq.f32.partialorder %v4429_v19, 8.507059e+37  ;;  %v4407_v1 = vsub.f32 1.0, %v4406_v28  ;;  %v3534_v63 = vsel %vm408_vm0, %v3531_v17, %v3533_v21 }
 0x312   : > { %v1773_v46 = vrot.slane %v8725_v24, 1  ;;  %vm9500_vm5 = vcmask 31744   ;;  %v4424_v55 = vadd.f32 %v8746_v2, %v4423_v59  ;;  %v4377_v31 = vsub.f32 1.0, %v4376_v25  ;;  %4818 = vmatpush.msrb.mxu1 %v3674_v49  ;;  %vm8880_vm7 = vmor %vm4425_vm3, %vm4426_vm15  ;;  %v370_v49 = vld [vmem:[%s7361_s23 + $0x198] sm:$0xff] }
 0x313   : > { %4914 = vst.msk [vmem:[%s8831_s27] sm:$0xff] %vm9500_vm5, %v4473_v11  ;;  %v3568_v5 = vadd.f32 %v3534_v63, %v3451_v41  ;;  %v3646_v60 = vsel %vm9501_vm6, %v3643_v38, %v3645_v47  ;;  %vm4410_vm2 = vweird.f32 %v8716_v9  ;;  %v4414_v53 = vand.u32 2147483647, %v8716_v9  ;;  %vm9502_vm11 = vmmov %vm9500_vm5  ;;  %v4476_v41 = vpop.f32.mrf.mxu1 }
 0x314   : > { %v8863_v54 = vsel %vm408_vm0, %v1773_v46, %v1774_v12  ;;  %v1778_v0 = vrot.slane %v364_v36, 1  ;;  %v2606_v6 = vrot.slane %v8725_v24, 2  ;;  %4918 = vst.msk [vmem:[%s8831_s27 + $0x20] sm:$0xff] %vm9502_vm11, %v4531_v15  ;;  %v4416_v51 = vand.u32 2147483648, %v8716_v9  ;;  %vm9503_vm1 = vmmov %vm9500_vm5 }
 0x315   : > { %v3680_v13 = vadd.f32 %v3646_v60, %v3568_v5  ;;  %v1843_v18 = vadd.f32 %v8863_v54, %v8725_v24  ;;  %v2611_v40 = vrot.slane %v364_v36, 2  ;;  %4920 = vst.msk [vmem:[%s8831_s27 + $0x30] sm:$0xff] %vm9503_vm1, %v4560_v50  ;;  %vm4380_vm8 = vweird.f32 %v8674_v39  ;;  %vm9507_vm10 = vmmov %vm9503_vm1  ;;  %v9516_v5 = vld [vmem:[#allocation28_spill] sm:$0xff] }
 0x316   : > { %v4408_v7 = vmul.f32 %v8815_v52, %v4407_v1  ;;  %v1780_v19 = vsel %vm408_vm0, %v1778_v0, %v1779_v20  ;;  %v8892_v25 = vsel %vm9506_vm9, %v2606_v6, %v2607_v35  ;;  %v3235_v62 = vadd.f32 %v8742_v44, %v8863_v54  ;;  %4916 = vst.msk [vmem:[%s8831_s27 + $0x10] sm:$0xff] %vm9507_vm10, %v4502_v10  ;;  %vm9508_vm3 = vmmov %vm9501_vm6  ;;  %v4505_v1 = vpop.f32.mrf.mxu2 }
 0x317   : > { %v4428_v27 = vsel %vm8880_vm7, %v8746_v2, %v4424_v55  ;;  %v4378_v29 = vmul.f32 %v8783_v32, %v4377_v31  ;;  %4905 = vmatpush.msrb.mxu0 %v3680_v13  ;;  %v1845_v42 = vadd.f32 %v1780_v19, %v364_v36  ;;  %v2676_v20 = vadd.f32 %v8892_v25, %v1843_v18  ;;  %vm9511_vm14 = vmmov %vm9503_vm1 }
 0x318   : > { %v2613_v35 = vsel %vm9508_vm3, %v2611_v40, %v2612_v48  ;;  %v3347_v44 = vadd.f32 %v3235_v62, %v8892_v25  ;;  %v3202_v8 = vrot.slane %v367_v37, 1  ;;  %5481 = vrcp.f32 %v8872_v26  ;;  %4915 = vst.msk [vmem:[%s8831_s27 + $0x8] sm:$0xff] %vm9511_vm14, %v4476_v41  ;;  %vm9512_vm15 = vmmov %vm9503_vm1  ;;  %v9528_v41 = vld [vmem:[#allocation20_spill] sm:$0xff] }
 0x319   : > { %vm8910_vm12 = vcmp.eq.f32.partialorder %v4384_v45, 8.507059e+37  ;;  %v4387_v59 = vor.u32 1.1754944e-38, %v4386_v58  ;;  %vm4411_vm13 = vweird.f32 %v8815_v52  ;;  %v2678_v28 = vadd.f32 %v2613_v35, %v1845_v42  ;;  %v4563_v45 = vpop.f32.mrf.mxu0  ;;  %vm9513_vm6 = vmmov %vm9503_vm1 }
 0x31a   : > { %v3120_v23 = vadd.f32 %v2676_v20, %v364_v36  ;;  %v8916_v16 = vadd.f32 %v8815_v52, %v4408_v7  ;;  %v3446_v48 = vadd.f32 %v3347_v44, %v364_v36  ;;  %v3314_v21 = vrot.slane %v367_v37, 2  ;;  %4921 = vst.msk [vmem:[%s8831_s27 + $0x38] sm:$0xff] %vm9512_vm15, %v4563_v45 }
 0x31b   : > { %5483 = vrcp.f32 %v8903_v33  ;;  %v4433_v58 = vsel %vm8844_vm4, %v8833_v43, %v4428_v27  ;;  %v8925_v47 = vor.u32 1.1754944e-38, %v4416_v51  ;;  %v3122_v15 = vadd.f32 %v2678_v28, %v367_v37  ;;  %4917 = vst.msk [vmem:[%s8831_s27 + $0x18] sm:$0xff] %vm9513_vm6, %v4505_v1  ;;  %vm8940_vm4 = vmor %vm4410_vm2, %vm4411_vm13 }
 0x31c   : > { %v3237_v11 = vadd.f32 %v3120_v23, %v1780_v19  ;;  %v4379_v36 = vadd.f32 %v8783_v32, %v4378_v29  ;;  %vm4381_vm5 = vweird.f32 %v8783_v32  ;;  %v3563_v63 = vadd.f32 %v3446_v48, %v1780_v19  ;;  %vm9517_vm2 = vmmov %vm9508_vm3  ;;  %v9530_v48 = vld [vmem:[#allocation43_spill] sm:$0xff] }
 0x31d   : > { %v3204_v46 = vsel %vm408_vm0, %v3202_v8, %v3203_v30  ;;  %v3444_v10 = vadd.f32 %v8758_v57, %v8725_v24  ;;  %v3530_v55 = vrot.slane %v370_v49, 1  ;;  %v4434_v60 = vmul.f32 %v9516_v5, %v4433_v58  ;;  %vm8956_vm11 = vmor %vm4380_vm8, %vm4381_vm5  ;;  %v9523_v8 = vld [vmem:[#allocation32_spill] sm:$0xff] }
 0x31e   : > { %v3349_v34 = vadd.f32 %v3237_v11, %v2613_v35  ;;  %v3239_v50 = vadd.f32 %v3204_v46, %v3122_v15  ;;  %v5482_v31 = vpop.eup %5481  ;;  %v4413_v30 = vsel %vm8940_vm4, %v8815_v52, %v8916_v16  ;;  %v3675_v0 = vadd.f32 %v3563_v63, %v2613_v35  ;;  %vm9521_vm8 = vmmov %vm9517_vm2 }
 0x31f   : > { %v3316_v6 = vsel %vm9517_vm2, %v3314_v21, %v3315_v14  ;;  %v4346_v13 = vmul.f32 %v5482_v31, %v8872_v26  ;;  %v3642_v18 = vrot.slane %v370_v49, 2  ;;  %v4354_v52 = vand.u32 2147483647, %v8872_v26 }
 0x320   : > { %v3351_v24 = vadd.f32 %v3316_v6, %v3239_v50  ;;  %v3448_v57 = vadd.f32 %v3349_v34, %v367_v37  ;;  %4848 = vmatpush.msra.mxu2 %v3675_v0  ;;  %v4356_v12 = vand.u32 2147483648, %v8872_v26  ;;  %v3561_v3 = vadd.f32 %v3444_v10, %v8863_v54 }
 0x321   : > { %v5484_v40 = vpop.eup %5483  ;;  %v4383_v39 = vsel %vm8956_vm11, %v8783_v32, %v4379_v36  ;;  %v4347_v7 = vsub.f32 1.0, %v4346_v13  ;;  %vm9520_vm1 = vcmask 130048   ;;  %v3532_v37 = vsel %vm408_vm0, %v3530_v55, %v3531_v17 }
 0x322   : > { %v3565_v14 = vadd.f32 %v3448_v57, %v3204_v46  ;;  %v4436_v19 = vmul.f32 %v5484_v40, %v8903_v33  ;;  %5337 = vmatmul.msk.f32.vlgmr.msra.gmra.mxu2 %vm9520_vm1, %v8779_v4  ;;  %vm4351_vm7 = vweird.f32 %v5482_v31  ;;  %v3673_v62 = vadd.f32 %v3561_v3, %v8892_v25  ;;  %vm9522_vm10 = vmmov %vm9520_vm1 }
 0x323   : > { %v3450_v27 = vadd.f32 %v3351_v24, %v370_v49  ;;  %v4388_v54 = vsel %vm8910_vm12, %v4387_v59, %v4383_v39  ;;  %v4348_v32 = vmul.f32 %v5482_v31, %v4347_v7  ;;  %v3644_v20 = vsel %vm9521_vm8, %v3642_v18, %v3643_v38  ;;  %vm9524_vm14 = vmmov %vm9520_vm1 }
 0x324   : > { %v3677_v29 = vadd.f32 %v3565_v14, %v3316_v6  ;;  %v4437_v42 = vsub.f32 1.0, %v4436_v19  ;;  %vm4350_vm9 = vweird.f32 %v8872_v26  ;;  %v4444_v4 = vand.u32 2147483647, %v8903_v33  ;;  %4819 = vmatpush.msrb.mxu1 %v3673_v62  ;;  %vm9525_vm4 = vmmov %vm9520_vm1 }
 0x325   : > { %v4446_v17 = vand.u32 2147483648, %v8903_v33  ;;  %v3567_v35 = vadd.f32 %v3532_v37, %v3450_v27  ;;  %v4349_v25 = vadd.f32 %v5482_v31, %v4348_v32  ;;  %vm4441_vm0 = vweird.f32 %v5484_v40  ;;  %5335 = vmatmul.msk.f32.vlgmr.msrb.gmra.mxu1 %vm9522_vm10, %v8797_v22  ;;  %vm4352_vm12 = vmor %vm4350_vm9, %vm4351_vm7  ;;  %v4589_v49 = vpop.f32.mrf.mxu1 }
 0x326   : > { %4877 = vmatpush.msra.mxu3 %v3677_v29  ;;  %v4438_v44 = vmul.f32 %v5484_v40, %v4437_v42  ;;  %v4389_v2 = vmul.f32 %v9523_v8, %v4388_v54  ;;  %vm4415_vm3 = vcmp.eq.f32.partialorder %v4414_v53, 8.507059e+37  ;;  %vm4355_vm13 = vcmp.eq.f32.partialorder %v4354_v52, 8.507059e+37  ;;  %vm9526_vm2 = vmmov %vm9520_vm1 }
 0x327   : > { %v4357_v61 = vor.u32 1.1754944e-38, %v4356_v12  ;;  %5339 = vmatmul.msk.f32.vlgmr.msra.gmra.mxu3 %vm9524_vm14, %v8776_v56  ;;  %v3679_v38 = vadd.f32 %v3644_v20, %v3567_v35  ;;  %v4353_v26 = vsel %vm4352_vm12, %v5482_v31, %v4349_v25  ;;  %vm4440_vm15 = vweird.f32 %v8903_v33  ;;  %v9527_v56 = vld [vmem:[#allocation35_spill] sm:$0xff]  ;;  %vm9529_vm11 = vmmov %vm9520_vm1 }
 0x328   : > { %v4439_v59 = vadd.f32 %v5484_v40, %v4438_v44  ;;  %v4418_v28 = vsel %vm4415_vm3, %v8925_v47, %v4413_v30  ;;  %vm4442_vm5 = vmor %vm4440_vm15, %vm4441_vm0  ;;  %v4447_v22 = vor.u32 1.1754944e-38, %v4446_v17  ;;  %vm4445_vm6 = vcmp.eq.f32.partialorder %v4444_v4, 8.507059e+37 }
 0x329   : > { %4906 = vmatpush.msrb.mxu0 %v3679_v38  ;;  %v4358_v9 = vsel %vm4355_vm13, %v4357_v61, %v4353_v26  ;;  %v4419_v33 = vmul.f32 %v9528_v41, %v4418_v28  ;;  %vm9531_vm7 = vmmov %vm9520_vm1  ;;  %vm9532_vm8 = vcmask 31744  }
 0x32a   : > { %v4443_v53 = vsel %vm4442_vm5, %v5484_v40, %v4439_v59  ;;  %5338 = vmatmul.msk.f32.gmra.mxu2 %vm9525_vm4, %v4389_v2  ;;  %5341 = vmatmul.msk.f32.vlgmr.msrb.gmra.mxu0 %vm9526_vm2, %v4434_v60  ;;  %v4359_v23 = vmul.f32 %v9527_v56, %v4358_v9  ;;  %4922 = vst.msk [vmem:[%s8831_s27 + $0x40] sm:$0xff] %vm9532_vm8, %v4589_v49  ;;  %vm9533_vm9 = vmmov %vm9532_vm8 }
 0x32b   : > { %v4448_v16 = vsel %vm4445_vm6, %v4447_v22, %v4443_v53  ;;  %vm9534_vm0 = vmmov %vm9532_vm8 }
 0x32c   : > { %v4449_v21 = vmul.f32 %v9530_v48, %v4448_v16  ;;  %vm9535_vm10 = vmmov %vm9534_vm0 }
 0x32d   : > { %5336 = vmatmul.msk.f32.gmra.mxu1 %vm9529_vm11, %v4359_v23  ;;  %vm9536_vm3 = vmmov %vm9534_vm0 }
 0x32e   : > { %v4534_v45 = vpop.f32.mrf.mxu3  ;;  %vm9537_vm12 = vmmov %vm9534_vm0 }
 0x32f   : > { %5340 = vmatmul.msk.f32.gmra.mxu3 %vm9520_vm1, %v4419_v33  ;;  %4919 = vst.msk [vmem:[%s8831_s27 + $0x28] sm:$0xff] %vm9533_vm9, %v4534_v45  ;;  %vm9538_vm13 = vmmov %vm9534_vm0 }
 0x330   : > { %vm9539_vm14 = vmmov %vm9534_vm0 }
 0x331   : > { %vm9540_vm15 = vmmov %vm9534_vm0 }
 0x332   : > { %5342 = vmatmul.msk.f32.gmra.mxu0 %vm9531_vm7, %v4449_v21  ;;  %vm9541_vm5 = vmmov %vm9534_vm0 }
 0x333   : > { %vm9542_vm6 = vmmov %vm9534_vm0 }
 0x334   : > { %vm9543_vm4 = vmmov %vm9534_vm0 }
 0x335   : > { %vm9544_vm2 = vmmov %vm9534_vm0 }
 0x336   : > { %vm9545_vm11 = vmmov %vm9534_vm0 }
 0x337   : > { %vm9546_vm1 = vmmov %vm9534_vm0 }
 0x338   : > { %v4676_v58 = vpop.f32.mrf.mxu0  ;;  %vm9547_vm7 = vmmov %vm9534_vm0 }
 0x339   : > { %4928 = vst.msk [vmem:[%s8831_s27 + $0x70] sm:$0xff] %vm9534_vm0, %v4676_v58  ;;  %vm9548_vm8 = vmmov %vm9534_vm0 }
 0x33a   : > { %vm9549_vm9 = vmmov %vm9534_vm0 }
 0x340   : > { %v4618_v47 = vpop.f32.mrf.mxu2 }
 0x341   : > { %4924 = vst.msk [vmem:[%s8831_s27 + $0x50] sm:$0xff] %vm9535_vm10, %v4618_v47  ;;  %vm9550_vm10 = vmmov %vm9534_vm0 }
 0x344   : > { %v4592_v11 = vpop.f32.mrf.mxu1 }
 0x345   : > { %v4647_v15 = vpop.f32.mrf.mxu3  ;;  %4923 = vst.msk [vmem:[%s8831_s27 + $0x48] sm:$0xff] %vm9536_vm3, %v4592_v11  ;;  %vm9551_vm3 = vmmov %vm9534_vm0 }
 0x346   : > { %4926 = vst.msk [vmem:[%s8831_s27 + $0x60] sm:$0xff] %vm9537_vm12, %v4647_v15  ;;  %vm9552_vm12 = vmmov %vm9534_vm0 }
 0x349   : > { %v4679_v1 = vpop.f32.mrf.mxu0 }
 0x34a   : > { %4929 = vst.msk [vmem:[%s8831_s27 + $0x78] sm:$0xff] %vm9538_vm13, %v4679_v1  ;;  %vm9553_vm13 = vmmov %vm9534_vm0 }
 0x34e   : > { %v4650_v36 = vpop.f32.mrf.mxu3 }
 0x34f   : > { %4927 = vst.msk [vmem:[%s8831_s27 + $0x68] sm:$0xff] %vm9539_vm14, %v4650_v36  ;;  %vm9554_vm14 = vmmov %vm9534_vm0 }
 0x370   : > { %v4792_v63 = vpop.f32.mrf.mxu0  ;;  %v4621_v46 = vpop.f32.mrf.mxu2 }
 0x371   : > { %4936 = vst.msk [vmem:[%s8831_s27 + $0xb0] sm:$0xff] %vm9540_vm15, %v4792_v63  ;;  %vm9555_vm15 = vmmov %vm9534_vm0 }
 0x372   : > { %4925 = vst.msk [vmem:[%s8831_s27 + $0x58] sm:$0xff] %vm9541_vm5, %v4621_v46 }
 0x376   : > { %v4763_v43 = vpop.f32.mrf.mxu3  ;;  %v4705_v34 = vpop.f32.mrf.mxu1 }
 0x377   : > { %4934 = vst.msk [vmem:[%s8831_s27 + $0xa0] sm:$0xff] %vm9542_vm6, %v4763_v43 }
 0x378   : > { %4930 = vst.msk [vmem:[%s8831_s27 + $0x80] sm:$0xff] %vm9543_vm4, %v4705_v34  ;;  %v4795_v50 = vpop.f32.mrf.mxu0 }
 0x379   : > { %v4734_v10 = vpop.f32.mrf.mxu2  ;;  %4937 = vst.msk [vmem:[%s8831_s27 + $0xb8] sm:$0xff] %vm9544_vm2, %v4795_v50 }
 0x37a   : > { %4932 = vst.msk [vmem:[%s8831_s27 + $0x90] sm:$0xff] %vm9545_vm11, %v4734_v10 }
 0x38c   : > { %v4708_v55 = vpop.f32.mrf.mxu1 }
 0x38d   : > { %4931 = vst.msk [vmem:[%s8831_s27 + $0x88] sm:$0xff] %vm9546_vm1, %v4708_v55 }
 0x393   : > { %v4737_v31 = vpop.f32.mrf.mxu2 }
 0x394   : > { %v4766_v5 = vpop.f32.mrf.mxu3  ;;  %4933 = vst.msk [vmem:[%s8831_s27 + $0x98] sm:$0xff] %vm9547_vm7, %v4737_v31 }
 0x395   : > { %4935 = vst.msk [vmem:[%s8831_s27 + $0xa8] sm:$0xff] %vm9548_vm8, %v4766_v5 }
 0x3a2   : > { %v4821_v60 = vpop.f32.mrf.mxu1 }
 0x3a3   : > { %4938 = vst.msk [vmem:[%s8831_s27 + $0xc0] sm:$0xff] %vm9549_vm9, %v4821_v60 }
 0x3a5   : > { %v4850_v30 = vpop.f32.mrf.mxu2 }
 0x3a6   : > { %4940 = vst.msk [vmem:[%s8831_s27 + $0xd0] sm:$0xff] %vm9534_vm0, %v4850_v30 }
 0x3a7   : > { %v4908_v0 = vpop.f32.mrf.mxu0 }
 0x3a8   : > { %4944 = vst.msk [vmem:[%s8831_s27 + $0xf0] sm:$0xff] %vm9550_vm10, %v4908_v0 }
 0x3aa   : > { %v4879_v6 = vpop.f32.mrf.mxu3  ;;  %v4824_v51 = vpop.f32.mrf.mxu1 }
 0x3ab   : > { %4942 = vst.msk [vmem:[%s8831_s27 + $0xe0] sm:$0xff] %vm9551_vm3, %v4879_v6 }
 0x3ac   : > { %4939 = vst.msk [vmem:[%s8831_s27 + $0xc8] sm:$0xff] %vm9552_vm12, %v4824_v51 }
 0x3ad   : > { %v4853_v24 = vpop.f32.mrf.mxu2 }
 0x3ae   : > { %4941 = vst.msk [vmem:[%s8831_s27 + $0xd8] sm:$0xff] %vm9553_vm13, %v4853_v24 }
 0x3af   : > { %v4911_v57 = vpop.f32.mrf.mxu0 }
 0x3b0   : > { %4945 = vst.msk [vmem:[%s8831_s27 + $0xf8] sm:$0xff] %vm9554_vm14, %v4911_v57 }
 0x3b2   : > { %v4882_v13 = vpop.f32.mrf.mxu3 }
 0x3b3   : > { %4943 = vst.msk [vmem:[%s8831_s27 + $0xe8] sm:$0xff] %vm9555_vm15, %v4882_v13 }
 0x3b4 PF: > { %s13_s12 = sadd.s32 1, %s5530_s12  }
 0x3b5   : > { %p10_p4 = scmp.ge.s32.totalorder %s13_s12, 4  }
 0x3b7   :  { %12 = sbr.rel (!%p10_p4) target bundleno = 1 (0x1), region = 68 }

</bundles_post_ra>
